<compile_context>
chip_gen: v7x
topology: tpu7x:2x2x1
jax: 0.10.0
libtpu: 0.0.40
codegen_flags: <defaults>
</compile_context>

<pallas_src>
import jax
import jax.numpy as jnp
import numpy as np
from jax.experimental import pallas as pl
from jax.experimental.pallas import tpu as pltpu

SCALE = 1.5
L_DIR = 4            # embedding_dim_direction
N_GRID = 64          # plane resolution (small stand-in for the module's 512)
F_DIM = 96           # plane feature dim (module default)
HIDDEN = 64          # hidden_dim (module default)
TB = 512             # batch tile (lanes); sweep 1024-2048 for production batches,
                     # keeping grid = Bp // TB >= 2 so both v7x TensorCores stay busy
XD_ROWS = 16         # packed x|d slab rows: x in rows 0:3, d in rows 8:11
GIN_ROWS = 48        # merged block2 operand: sin(12) | cos(12) | h_feat(15) | d(3) | pad(6)


def nerf_kernel(xd_ref, fxy_ref, fyz_ref, fxz_ref,
                w1_ref, b1_ref, w2_ref, b2_ref, w3m_ref, b3_ref,
                w4_ref, b4_ref, w5_ref, b5_ref, freq_ref,
                out_ref, gin_ref):
    f32, bf16 = jnp.float32, jnp.bfloat16

    xd = xd_ref[...]                                    # [16, TB] f32
    x = xd[0:3, :]                                      # [3, TB]
    d = xd[8:11, :]                                     # [3, TB]
    tb = xd.shape[1]

    # mask = (|x0| < s) & (|x1| < s) & (|x2| < s)
    maskf = (jnp.max(jnp.abs(x), axis=0, keepdims=True) < SCALE).astype(f32)   # [1, TB]

    # K-planes feature product: three separate bf16 streams, upcast per block and
    # multiplied in f32 (v5e VPU has no bf16) -- no [3F, TB] f32 temp is materialized.
    feat = (fxy_ref[...].astype(f32) * fyz_ref[...].astype(f32)
            * fxz_ref[...].astype(f32))                 # [F, TB] f32

    # block1: Linear(F,H) -> ReLU -> Linear(H,16) -> ReLU.  bf16 MXU operands, f32 acc.
    h1 = jnp.maximum(jnp.dot(w1_ref[...], feat.astype(bf16),
                             preferred_element_type=f32) + b1_ref[...], 0.0)   # [H, TB]
    h2 = jnp.maximum(jnp.dot(w2_ref[...], h1.astype(bf16),
                             preferred_element_type=f32) + b2_ref[...], 0.0)   # [16, TB]
    h_feat = h2[0:15, :]                                # [15, TB]
    sigma = h2[15:16, :]                                # [1, TB]

    # positional encoding of d: dm[3j+k] = 2^j * d_k via an exact tiny f32 matmul
    # (freq entries are exact powers of two), then one sin and one cos on [12, TB].
    dm = jnp.dot(freq_ref[...], d, preferred_element_type=f32)                 # [12, TB]

    # merged block2 first layer: assemble the [48, TB] operand in VMEM scratch (every
    # row rewritten every grid step -> no cross-step state) and run ONE K=48 dot
    # instead of four tiny-K dots.  w3 was re-packed to this row order in the wrapper.
    gin_ref[0:12, :] = jnp.sin(dm)
    gin_ref[12:24, :] = jnp.cos(dm)
    gin_ref[24:39, :] = h_feat
    gin_ref[39:42, :] = d
    gin_ref[42:48, :] = jnp.zeros((6, tb), f32)

    g = jnp.maximum(jnp.dot(w3m_ref[...], gin_ref[...].astype(bf16),
                            preferred_element_type=f32) + b3_ref[...], 0.0)    # [H, TB]
    g = jnp.maximum(jnp.dot(w4_ref[...], g.astype(bf16),
                            preferred_element_type=f32) + b4_ref[...], 0.0)    # [H, TB]
    c = jax.nn.sigmoid(jnp.dot(w5_ref[...], g.astype(bf16),
                               preferred_element_type=f32) + b5_ref[...])      # [3, TB]

    # packed, lane-dense output slab: rows 0:3 = c, row 3 = sigma
    out_ref[0:3, :] = c * maskf
    out_ref[3:4, :] = sigma * maskf


def _plane_indices(a, b, n):
    # matches torch: ((v / (2*scale) + 0.5) * N).long().clip(0, N-1).
    # .astype(int32) truncates toward zero like .long(); pre-clip negative indices only
    # occur for rows the |x| < scale mask zeroes out anyway.
    i = ((a / (2.0 * SCALE) + 0.5) * n).astype(jnp.int32).clip(0, n - 1)
    j = ((b / (2.0 * SCALE) + 0.5) * n).astype(jnp.int32).clip(0, n - 1)
    return i, j


def _pe_constants():
    # original pe column order: [d(0:3), sin(d), cos(d), sin(2d), cos(2d), ...]
    sin_rows = np.concatenate([np.arange(3 + 6 * j, 6 + 6 * j) for j in range(L_DIR)])
    cos_rows = sin_rows + 3
    freq = np.zeros((3 * L_DIR, 3), np.float32)
    for j in range(L_DIR):
        for k in range(3):
            freq[3 * j + k, k] = 2.0 ** j
    return sin_rows, cos_rows, freq


def _kernel_weights(params):
    """Pre-transpose / re-pack / bf16-cast the MLP weights for the batch-on-lanes kernel."""
    bf16 = jnp.bfloat16
    sin_rows, cos_rows, freq = _pe_constants()
    w1, b1 = params["w1"], params["b1"]      # [F,H], [1,H]
    w2, b2 = params["w2"], params["b2"]      # [H,16], [1,16]
    w3, b3 = params["w3"], params["b3"]      # [42,H], [1,H]
    w4, b4 = params["w4"], params["b4"]      # [H,H], [1,H]
    w5, b5 = params["w5"], params["b5"]      # [H,3], [1,3]
    hidden = w1.shape[1]
    # w3 re-packed to the kernel's merged-operand row order:
    #   [sin(2^j d_k)(12) | cos(2^j d_k)(12) | h_feat(15) | d(3) | zero pad(6)]
    w3m = jnp.concatenate(
        [w3[sin_rows, :], w3[cos_rows, :], w3[27:42, :], w3[0:3, :],
         jnp.zeros((GIN_ROWS - 42, hidden), jnp.float32)], axis=0).T            # [H, 48]
    return [
        w1.T.astype(bf16), b1.T,             # [H,F] bf16, [H,1] f32
        w2.T.astype(bf16), b2.T,             # [16,H], [16,1]
        w3m.astype(bf16), b3.T,              # [H,48], [H,1]
        w4.T.astype(bf16), b4.T,             # [H,H], [H,1]
        w5.T.astype(bf16), b5.T,             # [3,H], [3,1]
        jnp.asarray(freq),                   # [12,3] f32 (exact powers of two)
    ]


def nerf_forward(params, x, d, tb=TB):
    B = x.shape[0]
    n = params["N"]
    f = params["xy_plane_k"].shape[0]

    Bp = pl.cdiv(B, tb) * tb
    pad = Bp - B

    # data-dependent tri-plane gather (plain JAX / XLA).  The tables are stored
    # pre-transposed [F, N*N] bf16, so the gather directly emits the [F, Bp] bf16
    # batch-on-lanes slabs the kernel streams -- no concat / cast / transpose passes.
    xi, yi = _plane_indices(x[:, 0], x[:, 1], n)
    yi2, zi = _plane_indices(x[:, 1], x[:, 2], n)
    xi2, zi2 = _plane_indices(x[:, 0], x[:, 2], n)
    flat = lambda i, j: jnp.pad(i * n + j, (0, pad))     # padded rows -> index 0 (discarded)
    fxy_t = jnp.take(params["xy_plane_k"], flat(xi, yi), axis=1)        # [F, Bp] bf16
    fyz_t = jnp.take(params["yz_plane_k"], flat(yi2, zi), axis=1)       # [F, Bp] bf16
    fxz_t = jnp.take(params["xz_plane_k"], flat(xi2, zi2), axis=1)      # [F, Bp] bf16

    # packed, transposed (batch-on-lanes) coordinate/direction slab
    xd_t = jnp.zeros((XD_ROWS, Bp), jnp.float32)
    xd_t = xd_t.at[0:3, :B].set(x.T).at[8:11, :B].set(d.T)              # [16, Bp]

    weights = _kernel_weights(params)

    stream = lambda rows: pl.BlockSpec((rows, tb), lambda i: (0, i))
    full = lambda shp: pl.BlockSpec(shp, lambda i: (0,) * len(shp))

    out = pl.pallas_call(
        nerf_kernel,
        grid=(Bp // tb,),
        in_specs=[stream(XD_ROWS), stream(f), stream(f), stream(f)]
                 + [full(w.shape) for w in weights],
        out_specs=pl.BlockSpec((4, tb), lambda i: (0, i)),
        out_shape=jax.ShapeDtypeStruct((4, Bp), jnp.float32),
        scratch_shapes=[pltpu.VMEM((GIN_ROWS, tb), jnp.float32)],
        compiler_params=pltpu.CompilerParams(
            dimension_semantics=("parallel",)),
    )(xd_t, fxy_t, fyz_t, fxz_t, *weights)

    return out[0:3, :B].T, out[3, :B]


def nerf_reference(params, x, d, quantized=True):
    """Pure-JAX reference mirroring the PyTorch forward.
    quantized=True  : applies the same bf16 quantization of plane features, weights and
                      dot operands the kernel uses (strict wiring check).
    quantized=False : the true f32 forward pass (quantization-quality check)."""
    HI = jax.lax.Precision.HIGHEST
    q = (lambda a: a.astype(jnp.bfloat16).astype(jnp.float32)) if quantized else (lambda a: a)
    qdot = lambda a, w: jnp.dot(q(a), q(w), precision=HI)

    n = params["N"]
    xi, yi = _plane_indices(x[:, 0], x[:, 1], n)
    yi2, zi = _plane_indices(x[:, 1], x[:, 2], n)
    xi2, zi2 = _plane_indices(x[:, 0], x[:, 2], n)
    f_xy = q(params["xy_plane"][xi, yi])
    f_yz = q(params["yz_plane"][yi2, zi])
    f_xz = q(params["xz_plane"][xi2, zi2])
    feat = f_xy * f_yz * f_xz

    mask = ((jnp.abs(x[:, 0]) < SCALE)
            & (jnp.abs(x[:, 1]) < SCALE)
            & (jnp.abs(x[:, 2]) < SCALE))

    h = jnp.maximum(qdot(feat, params["w1"]) + params["b1"], 0.0)
    h = jnp.maximum(qdot(h, params["w2"]) + params["b2"], 0.0)
    sigma = jnp.where(mask, h[:, 15], 0.0)

    pe = [d]
    for j in range(L_DIR):
        pe.append(jnp.sin((2.0 ** j) * d))
        pe.append(jnp.cos((2.0 ** j) * d))
    g_in = jnp.concatenate(pe + [h[:, :15]], axis=1)
    g = jnp.maximum(qdot(g_in, params["w3"]) + params["b3"], 0.0)
    g = jnp.maximum(qdot(g, params["w4"]) + params["b4"], 0.0)
    c = jax.nn.sigmoid(qdot(g, params["w5"]) + params["b5"])
    c = jnp.where(mask[:, None], c, 0.0)
    return c, sigma


def init_params(key, n=N_GRID, f=F_DIM, hidden=HIDDEN):
    ks = jax.random.split(key, 13)

    def lin(kw, kb, fan_in, fan_out):
        bound = 1.0 / np.sqrt(fan_in)
        w = jax.random.uniform(kw, (fan_in, fan_out), jnp.float32, -bound, bound)
        b = jax.random.uniform(kb, (1, fan_out), jnp.float32, -bound, bound)
        return w, b

    in2 = 15 + 3 * L_DIR * 2 + 3  # = 42
    params = {"N": n}
    params["xy_plane"] = jax.random.uniform(ks[0], (n, n, f), jnp.float32)
    params["yz_plane"] = jax.random.uniform(ks[1], (n, n, f), jnp.float32)
    params["xz_plane"] = jax.random.uniform(ks[2], (n, n, f), jnp.float32)
    params["w1"], params["b1"] = lin(ks[3], ks[4], f, hidden)
    params["w2"], params["b2"] = lin(ks[5], ks[6], hidden, 16)
    params["w3"], params["b3"] = lin(ks[7], ks[8], in2, hidden)
    params["w4"], params["b4"] = lin(ks[9], ks[10], hidden, hidden)
    params["w5"], params["b5"] = lin(ks[11], ks[12], hidden, 3)
    # Glue fix: store the tri-plane tables ONCE in the kernel's batch-on-lanes layout
    # ([F, N*N] bf16) so the per-call gather emits the [F, Bp] bf16 slabs directly.
    for name in ("xy", "yz", "xz"):
        p = params[f"{name}_plane"]
        params[f"{name}_plane_k"] = p.reshape(n * n, f).T.astype(jnp.bfloat16)
    return params


if __name__ == "__main__":
    key = jax.random.PRNGKey(0)
    kp, kx, kd = jax.random.split(key, 3)
    params = init_params(kp)

    B = 1000
    # coordinates partly outside |v| < scale so the mask path is exercised
    x = jax.random.uniform(kx, (B, 3), jnp.float32, -2.0, 2.0)
    d = jax.random.normal(kd, (B, 3), jnp.float32)

    fwd = jax.jit(nerf_forward)
    c, sigma = fwd(params, x, d)
    jax.block_until_ready((c, sigma))

    assert c.shape == (B, 3) and sigma.shape == (B,)

    # strict check against a reference that mirrors the kernel's bf16 quantization
    c_q, s_q = nerf_reference(params, x, d, quantized=True)
    assert np.allclose(np.asarray(c), np.asarray(c_q), atol=2e-3, rtol=2e-3)
    assert np.allclose(np.asarray(sigma), np.asarray(s_q), atol=2e-3, rtol=2e-3)

    # quantization-quality sanity check against the true f32 forward pass
    c_f, s_f = nerf_reference(params, x, d, quantized=False)
    assert np.allclose(np.asarray(c), np.asarray(c_f), atol=3e-2, rtol=3e-2)
    assert np.allclose(np.asarray(sigma), np.asarray(s_f), atol=3e-2, rtol=3e-2)

    print("KERNEL_OK")
</pallas_src>

<mosaic_0001>
module attributes {stable_mosaic.version = 11 : i64} {
  func.func @nerf_kernel(%arg0: i32, %arg1: memref<16x512xf32, #tpu.memory_space<vmem>>, %arg2: memref<96x512xbf16, #tpu.memory_space<vmem>>, %arg3: memref<96x512xbf16, #tpu.memory_space<vmem>>, %arg4: memref<96x512xbf16, #tpu.memory_space<vmem>>, %arg5: memref<64x96xbf16, #tpu.memory_space<vmem>>, %arg6: memref<64x1xf32, #tpu.memory_space<vmem>>, %arg7: memref<16x64xbf16, #tpu.memory_space<vmem>>, %arg8: memref<16x1xf32, #tpu.memory_space<vmem>>, %arg9: memref<64x48xbf16, #tpu.memory_space<vmem>>, %arg10: memref<64x1xf32, #tpu.memory_space<vmem>>, %arg11: memref<64x64xbf16, #tpu.memory_space<vmem>>, %arg12: memref<64x1xf32, #tpu.memory_space<vmem>>, %arg13: memref<3x64xbf16, #tpu.memory_space<vmem>>, %arg14: memref<3x1xf32, #tpu.memory_space<vmem>>, %arg15: memref<12x3xf32, #tpu.memory_space<vmem>>, %arg16: memref<4x512xf32, #tpu.memory_space<vmem>>, %arg17: memref<48x512xf32, #tpu.memory_space<vmem>>) attributes {dimension_semantics = [#tpu.dimension_semantics<parallel>], iteration_bounds = array<i64: 2>, scalar_prefetch = 0 : i64, scratch_operands = 1 : i64, tpu.core_type = #tpu.core_type<tc>, window_params = [{transform_indices = @transform_0, window_bounds = array<i64: 16, 512>}, {transform_indices = @transform_1, window_bounds = array<i64: 96, 512>}, {transform_indices = @transform_2, window_bounds = array<i64: 96, 512>}, {transform_indices = @transform_3, window_bounds = array<i64: 96, 512>}, {pipeline_mode = #tpu.pipeline_mode<synchronous>, transform_indices = @transform_4, window_bounds = array<i64: 64, 96>}, {pipeline_mode = #tpu.pipeline_mode<synchronous>, transform_indices = @transform_5, window_bounds = array<i64: 64, 1>}, {pipeline_mode = #tpu.pipeline_mode<synchronous>, transform_indices = @transform_6, window_bounds = array<i64: 16, 64>}, {pipeline_mode = #tpu.pipeline_mode<synchronous>, transform_indices = @transform_7, window_bounds = array<i64: 16, 1>}, {pipeline_mode = #tpu.pipeline_mode<synchronous>, transform_indices = @transform_8, window_bounds = array<i64: 64, 48>}, {pipeline_mode = #tpu.pipeline_mode<synchronous>, transform_indices = @transform_9, window_bounds = array<i64: 64, 1>}, {pipeline_mode = #tpu.pipeline_mode<synchronous>, transform_indices = @transform_10, window_bounds = array<i64: 64, 64>}, {pipeline_mode = #tpu.pipeline_mode<synchronous>, transform_indices = @transform_11, window_bounds = array<i64: 64, 1>}, {pipeline_mode = #tpu.pipeline_mode<synchronous>, transform_indices = @transform_12, window_bounds = array<i64: 3, 64>}, {pipeline_mode = #tpu.pipeline_mode<synchronous>, transform_indices = @transform_13, window_bounds = array<i64: 3, 1>}, {pipeline_mode = #tpu.pipeline_mode<synchronous>, transform_indices = @transform_14, window_bounds = array<i64: 12, 3>}, {transform_indices = @transform_15, window_bounds = array<i64: 4, 512>}]} {
    %c0 = arith.constant 0 : index
    %c0_0 = arith.constant 0 : index
    %0 = vector.load %arg1[%c0, %c0_0] : memref<16x512xf32, #tpu.memory_space<vmem>>, vector<16x512xf32>
    %1 = vector.extract_strided_slice %0 {offsets = [0, 0], sizes = [3, 512], strides = [1, 1]} : vector<16x512xf32> to vector<3x512xf32>
    %2 = vector.extract_strided_slice %0 {offsets = [8, 0], sizes = [3, 512], strides = [1, 1]} : vector<16x512xf32> to vector<3x512xf32>
    %3 = math.absf %1 : vector<3x512xf32>
    %cst = arith.constant dense<0xFF800000> : vector<512xf32>
    %4 = vector.multi_reduction <maximumf>, %3, %cst [0] : vector<3x512xf32> to vector<512xf32>
    %5 = vector.shape_cast %4 : vector<512xf32> to vector<1x512xf32>
    %cst_1 = arith.constant 1.500000e+00 : f32
    %6 = vector.broadcast %cst_1 : f32 to vector<1x512xf32>
    %7 = arith.cmpf olt, %5, %6 : vector<1x512xf32>
    %8 = arith.extui %7 : vector<1x512xi1> to vector<1x512xi32>
    %9 = arith.sitofp %8 : vector<1x512xi32> to vector<1x512xf32>
    %c0_2 = arith.constant 0 : index
    %c0_3 = arith.constant 0 : index
    %10 = vector.load %arg2[%c0_2, %c0_3] : memref<96x512xbf16, #tpu.memory_space<vmem>>, vector<96x512xbf16>
    %11 = arith.extf %10 : vector<96x512xbf16> to vector<96x512xf32>
    %c0_4 = arith.constant 0 : index
    %c0_5 = arith.constant 0 : index
    %12 = vector.load %arg3[%c0_4, %c0_5] : memref<96x512xbf16, #tpu.memory_space<vmem>>, vector<96x512xbf16>
    %13 = arith.extf %12 : vector<96x512xbf16> to vector<96x512xf32>
    %14 = arith.mulf %11, %13 : vector<96x512xf32>
    %c0_6 = arith.constant 0 : index
    %c0_7 = arith.constant 0 : index
    %15 = vector.load %arg4[%c0_6, %c0_7] : memref<96x512xbf16, #tpu.memory_space<vmem>>, vector<96x512xbf16>
    %16 = arith.extf %15 : vector<96x512xbf16> to vector<96x512xf32>
    %17 = arith.mulf %14, %16 : vector<96x512xf32>
    %c0_8 = arith.constant 0 : index
    %c0_9 = arith.constant 0 : index
    %18 = vector.load %arg5[%c0_8, %c0_9] : memref<64x96xbf16, #tpu.memory_space<vmem>>, vector<64x96xbf16>
    %19 = arith.truncf %17 : vector<96x512xf32> to vector<96x512xbf16>
    %cst_10 = arith.constant dense<0.000000e+00> : vector<64x512xf32>
    %20 = tpu.matmul %18, %19, %cst_10 {dimension_numbers = #tpu.dot_dimension_numbers<[1], [0], [0], [1], [0, 0, 1, 1], [], []>} : vector<64x96xbf16>, vector<96x512xbf16>, vector<64x512xf32> -> vector<64x512xf32>
    %c0_11 = arith.constant 0 : index
    %c0_12 = arith.constant 0 : index
    %21 = vector.load %arg6[%c0_11, %c0_12] : memref<64x1xf32, #tpu.memory_space<vmem>>, vector<64x1xf32>
    %22 = vector.broadcast %21 : vector<64x1xf32> to vector<64x512xf32>
    %23 = arith.addf %20, %22 : vector<64x512xf32>
    %cst_13 = arith.constant 0.000000e+00 : f32
    %24 = vector.broadcast %cst_13 : f32 to vector<64x512xf32>
    %25 = arith.maximumf %23, %24 : vector<64x512xf32>
    %c0_14 = arith.constant 0 : index
    %c0_15 = arith.constant 0 : index
    %26 = vector.load %arg7[%c0_14, %c0_15] : memref<16x64xbf16, #tpu.memory_space<vmem>>, vector<16x64xbf16>
    %27 = arith.truncf %25 : vector<64x512xf32> to vector<64x512xbf16>
    %cst_16 = arith.constant dense<0.000000e+00> : vector<16x512xf32>
    %28 = tpu.matmul %26, %27, %cst_16 {dimension_numbers = #tpu.dot_dimension_numbers<[1], [0], [0], [1], [0, 0, 1, 1], [], []>} : vector<16x64xbf16>, vector<64x512xbf16>, vector<16x512xf32> -> vector<16x512xf32>
    %c0_17 = arith.constant 0 : index
    %c0_18 = arith.constant 0 : index
    %29 = vector.load %arg8[%c0_17, %c0_18] : memref<16x1xf32, #tpu.memory_space<vmem>>, vector<16x1xf32>
    %30 = vector.broadcast %29 : vector<16x1xf32> to vector<16x512xf32>
    %31 = arith.addf %28, %30 : vector<16x512xf32>
    %cst_19 = arith.constant 0.000000e+00 : f32
    %32 = vector.broadcast %cst_19 : f32 to vector<16x512xf32>
    %33 = arith.maximumf %31, %32 : vector<16x512xf32>
    %34 = vector.extract_strided_slice %33 {offsets = [0, 0], sizes = [15, 512], strides = [1, 1]} : vector<16x512xf32> to vector<15x512xf32>
    %35 = vector.extract_strided_slice %33 {offsets = [15, 0], sizes = [1, 512], strides = [1, 1]} : vector<16x512xf32> to vector<1x512xf32>
    %c0_20 = arith.constant 0 : index
    %c0_21 = arith.constant 0 : index
    %36 = vector.load %arg15[%c0_20, %c0_21] : memref<12x3xf32, #tpu.memory_space<vmem>>, vector<12x3xf32>
    %cst_22 = arith.constant dense<0.000000e+00> : vector<12x512xf32>
    %37 = tpu.matmul %36, %2, %cst_22 {dimension_numbers = #tpu.dot_dimension_numbers<[1], [0], [0], [1], [0, 0, 1, 1], [], []>} : vector<12x3xf32>, vector<3x512xf32>, vector<12x512xf32> -> vector<12x512xf32>
    %38 = math.sin %37 : vector<12x512xf32>
    %c0_23 = arith.constant 0 : index
    %c0_24 = arith.constant 0 : index
    %39 = vector.load %arg17[%c0_23, %c0_24] : memref<48x512xf32, #tpu.memory_space<vmem>>, vector<12x512xf32>
    tpu.vector_store %arg17[%c0_23, %c0_24], %38 {strides = array<i32>} : memref<48x512xf32, #tpu.memory_space<vmem>>, vector<12x512xf32>,
    %40 = math.cos %37 : vector<12x512xf32>
    %c12 = arith.constant 12 : index
    %c0_25 = arith.constant 0 : index
    %41 = vector.load %arg17[%c12, %c0_25] : memref<48x512xf32, #tpu.memory_space<vmem>>, vector<12x512xf32>
    tpu.vector_store %arg17[%c12, %c0_25], %40 {strides = array<i32>} : memref<48x512xf32, #tpu.memory_space<vmem>>, vector<12x512xf32>,
    %c24 = arith.constant 24 : index
    %c0_26 = arith.constant 0 : index
    %42 = vector.load %arg17[%c24, %c0_26] : memref<48x512xf32, #tpu.memory_space<vmem>>, vector<15x512xf32>
    tpu.vector_store %arg17[%c24, %c0_26], %34 {strides = array<i32>} : memref<48x512xf32, #tpu.memory_space<vmem>>, vector<15x512xf32>,
    %c39 = arith.constant 39 : index
    %c0_27 = arith.constant 0 : index
    %43 = vector.load %arg17[%c39, %c0_27] : memref<48x512xf32, #tpu.memory_space<vmem>>, vector<3x512xf32>
    tpu.vector_store %arg17[%c39, %c0_27], %2 {strides = array<i32>} : memref<48x512xf32, #tpu.memory_space<vmem>>, vector<3x512xf32>,
    %cst_28 = arith.constant 0.000000e+00 : f32
    %44 = vector.broadcast %cst_28 : f32 to vector<6x512xf32>
    %c42 = arith.constant 42 : index
    %c0_29 = arith.constant 0 : index
    %45 = vector.load %arg17[%c42, %c0_29] : memref<48x512xf32, #tpu.memory_space<vmem>>, vector<6x512xf32>
    tpu.vector_store %arg17[%c42, %c0_29], %44 {strides = array<i32>} : memref<48x512xf32, #tpu.memory_space<vmem>>, vector<6x512xf32>,
    %c0_30 = arith.constant 0 : index
    %c0_31 = arith.constant 0 : index
    %46 = vector.load %arg9[%c0_30, %c0_31] : memref<64x48xbf16, #tpu.memory_space<vmem>>, vector<64x48xbf16>
    %c0_32 = arith.constant 0 : index
    %c0_33 = arith.constant 0 : index
    %47 = vector.load %arg17[%c0_32, %c0_33] : memref<48x512xf32, #tpu.memory_space<vmem>>, vector<48x512xf32>
    %48 = arith.truncf %47 : vector<48x512xf32> to vector<48x512xbf16>
    %cst_34 = arith.constant dense<0.000000e+00> : vector<64x512xf32>
    %49 = tpu.matmul %46, %48, %cst_34 {dimension_numbers = #tpu.dot_dimension_numbers<[1], [0], [0], [1], [0, 0, 1, 1], [], []>} : vector<64x48xbf16>, vector<48x512xbf16>, vector<64x512xf32> -> vector<64x512xf32>
    %c0_35 = arith.constant 0 : index
    %c0_36 = arith.constant 0 : index
    %50 = vector.load %arg10[%c0_35, %c0_36] : memref<64x1xf32, #tpu.memory_space<vmem>>, vector<64x1xf32>
    %51 = vector.broadcast %50 : vector<64x1xf32> to vector<64x512xf32>
    %52 = arith.addf %49, %51 : vector<64x512xf32>
    %cst_37 = arith.constant 0.000000e+00 : f32
    %53 = vector.broadcast %cst_37 : f32 to vector<64x512xf32>
    %54 = arith.maximumf %52, %53 : vector<64x512xf32>
    %c0_38 = arith.constant 0 : index
    %c0_39 = arith.constant 0 : index
    %55 = vector.load %arg11[%c0_38, %c0_39] : memref<64x64xbf16, #tpu.memory_space<vmem>>, vector<64x64xbf16>
    %56 = arith.truncf %54 : vector<64x512xf32> to vector<64x512xbf16>
    %cst_40 = arith.constant dense<0.000000e+00> : vector<64x512xf32>
    %57 = tpu.matmul %55, %56, %cst_40 {dimension_numbers = #tpu.dot_dimension_numbers<[1], [0], [0], [1], [0, 0, 1, 1], [], []>} : vector<64x64xbf16>, vector<64x512xbf16>, vector<64x512xf32> -> vector<64x512xf32>
    %c0_41 = arith.constant 0 : index
    %c0_42 = arith.constant 0 : index
    %58 = vector.load %arg12[%c0_41, %c0_42] : memref<64x1xf32, #tpu.memory_space<vmem>>, vector<64x1xf32>
    %59 = vector.broadcast %58 : vector<64x1xf32> to vector<64x512xf32>
    %60 = arith.addf %57, %59 : vector<64x512xf32>
    %cst_43 = arith.constant 0.000000e+00 : f32
    %61 = vector.broadcast %cst_43 : f32 to vector<64x512xf32>
    %62 = arith.maximumf %60, %61 : vector<64x512xf32>
    %c0_44 = arith.constant 0 : index
    %c0_45 = arith.constant 0 : index
    %63 = vector.load %arg13[%c0_44, %c0_45] : memref<3x64xbf16, #tpu.memory_space<vmem>>, vector<3x64xbf16>
    %64 = arith.truncf %62 : vector<64x512xf32> to vector<64x512xbf16>
    %cst_46 = arith.constant dense<0.000000e+00> : vector<3x512xf32>
    %65 = tpu.matmul %63, %64, %cst_46 {dimension_numbers = #tpu.dot_dimension_numbers<[1], [0], [0], [1], [0, 0, 1, 1], [], []>} : vector<3x64xbf16>, vector<64x512xbf16>, vector<3x512xf32> -> vector<3x512xf32>
    %c0_47 = arith.constant 0 : index
    %c0_48 = arith.constant 0 : index
    %66 = vector.load %arg14[%c0_47, %c0_48] : memref<3x1xf32, #tpu.memory_space<vmem>>, vector<3x1xf32>
    %67 = vector.broadcast %66 : vector<3x1xf32> to vector<3x512xf32>
    %68 = arith.addf %65, %67 : vector<3x512xf32>
    %69 = arith.negf %68 : vector<3x512xf32>
    %70 = math.exp %69 : vector<3x512xf32>
    %cst_49 = arith.constant 1.000000e+00 : f32
    %71 = vector.broadcast %cst_49 : f32 to vector<3x512xf32>
    %72 = arith.addf %71, %70 : vector<3x512xf32>
    %73 = arith.divf %71, %72 : vector<3x512xf32>
    %74 = vector.broadcast %9 : vector<1x512xf32> to vector<3x512xf32>
    %75 = arith.mulf %73, %74 : vector<3x512xf32>
    %c0_50 = arith.constant 0 : index
    %c0_51 = arith.constant 0 : index
    %76 = vector.load %arg16[%c0_50, %c0_51] : memref<4x512xf32, #tpu.memory_space<vmem>>, vector<3x512xf32>
    tpu.vector_store %arg16[%c0_50, %c0_51], %75 {strides = array<i32>} : memref<4x512xf32, #tpu.memory_space<vmem>>, vector<3x512xf32>,
    %77 = arith.mulf %35, %9 : vector<1x512xf32>
    %c3 = arith.constant 3 : index
    %c0_52 = arith.constant 0 : index
    %78 = vector.load %arg16[%c3, %c0_52] : memref<4x512xf32, #tpu.memory_space<vmem>>, vector<1x512xf32>
    tpu.vector_store %arg16[%c3, %c0_52], %77 {strides = array<i32>} : memref<4x512xf32, #tpu.memory_space<vmem>>, vector<1x512xf32>,
    return
  }
  func.func @transform_0(%arg0: i32) -> (i32, i32) {
    %c0_i32 = arith.constant 0 : i32
    %c0_i32_0 = arith.constant 0 : i32
    return %c0_i32, %arg0 : i32, i32
  }
  func.func @transform_1(%arg0: i32) -> (i32, i32) {
    %c0_i32 = arith.constant 0 : i32
    %c0_i32_0 = arith.constant 0 : i32
    return %c0_i32, %arg0 : i32, i32
  }
  func.func @transform_2(%arg0: i32) -> (i32, i32) {
    %c0_i32 = arith.constant 0 : i32
    %c0_i32_0 = arith.constant 0 : i32
    return %c0_i32, %arg0 : i32, i32
  }
  func.func @transform_3(%arg0: i32) -> (i32, i32) {
    %c0_i32 = arith.constant 0 : i32
    %c0_i32_0 = arith.constant 0 : i32
    return %c0_i32, %arg0 : i32, i32
  }
  func.func @transform_4(%arg0: i32) -> (i32, i32) {
    %c0_i32 = arith.constant 0 : i32
    %c0_i32_0 = arith.constant 0 : i32
    %c0_i32_1 = arith.constant 0 : i32
    return %c0_i32, %c0_i32_0 : i32, i32
  }
  func.func @transform_5(%arg0: i32) -> (i32, i32) {
    %c0_i32 = arith.constant 0 : i32
    %c0_i32_0 = arith.constant 0 : i32
    %c0_i32_1 = arith.constant 0 : i32
    return %c0_i32, %c0_i32_0 : i32, i32
  }
  func.func @transform_6(%arg0: i32) -> (i32, i32) {
    %c0_i32 = arith.constant 0 : i32
    %c0_i32_0 = arith.constant 0 : i32
    %c0_i32_1 = arith.constant 0 : i32
    return %c0_i32, %c0_i32_0 : i32, i32
  }
  func.func @transform_7(%arg0: i32) -> (i32, i32) {
    %c0_i32 = arith.constant 0 : i32
    %c0_i32_0 = arith.constant 0 : i32
    %c0_i32_1 = arith.constant 0 : i32
    return %c0_i32, %c0_i32_0 : i32, i32
  }
  func.func @transform_8(%arg0: i32) -> (i32, i32) {
    %c0_i32 = arith.constant 0 : i32
    %c0_i32_0 = arith.constant 0 : i32
    %c0_i32_1 = arith.constant 0 : i32
    return %c0_i32, %c0_i32_0 : i32, i32
  }
  func.func @transform_9(%arg0: i32) -> (i32, i32) {
    %c0_i32 = arith.constant 0 : i32
    %c0_i32_0 = arith.constant 0 : i32
    %c0_i32_1 = arith.constant 0 : i32
    return %c0_i32, %c0_i32_0 : i32, i32
  }
  func.func @transform_10(%arg0: i32) -> (i32, i32) {
    %c0_i32 = arith.constant 0 : i32
    %c0_i32_0 = arith.constant 0 : i32
    %c0_i32_1 = arith.constant 0 : i32
    return %c0_i32, %c0_i32_0 : i32, i32
  }
  func.func @transform_11(%arg0: i32) -> (i32, i32) {
    %c0_i32 = arith.constant 0 : i32
    %c0_i32_0 = arith.constant 0 : i32
    %c0_i32_1 = arith.constant 0 : i32
    return %c0_i32, %c0_i32_0 : i32, i32
  }
  func.func @transform_12(%arg0: i32) -> (i32, i32) {
    %c0_i32 = arith.constant 0 : i32
    %c0_i32_0 = arith.constant 0 : i32
    %c0_i32_1 = arith.constant 0 : i32
    return %c0_i32, %c0_i32_0 : i32, i32
  }
  func.func @transform_13(%arg0: i32) -> (i32, i32) {
    %c0_i32 = arith.constant 0 : i32
    %c0_i32_0 = arith.constant 0 : i32
    %c0_i32_1 = arith.constant 0 : i32
    return %c0_i32, %c0_i32_0 : i32, i32
  }
  func.func @transform_14(%arg0: i32) -> (i32, i32) {
    %c0_i32 = arith.constant 0 : i32
    %c0_i32_0 = arith.constant 0 : i32
    %c0_i32_1 = arith.constant 0 : i32
    return %c0_i32, %c0_i32_0 : i32, i32
  }
  func.func @transform_15(%arg0: i32) -> (i32, i32) {
    %c0_i32 = arith.constant 0 : i32
    %c0_i32_0 = arith.constant 0 : i32
    return %c0_i32, %arg0 : i32, i32
  }
}

</mosaic_0001>

<bundles_post_ra>
// kernel: nerf_forward.1
= control target key start
LH: loop header
LB: loop body
LE: loop exit
PB: predicated region body
PF: predicated region fallthrough
CT: control target
= control target key end

     0   :  { %s4763_s18 = smov 0   ;;  %s4765_s19 = smov 0   ;;  %s6375_s0 = inlined_call_operand.vmem [shape: f32[16,1024], index: 0, kind: input, shape index: {}]   ;;  %s6376_s1 = inlined_call_operand.vmem [shape: bf16[96,1024], index: 1, kind: input, shape index: {}]   ;;  %s6377_s2 = inlined_call_operand.vmem [shape: bf16[96,1024], index: 2, kind: input, shape index: {}]   ;;  %s6378_s3 = inlined_call_operand.vmem [shape: bf16[96,1024], index: 3, kind: input, shape index: {}]   ;;  %s6379_s4 = inlined_call_operand.vmem [shape: bf16[64,96], index: 4, kind: input, shape index: {}]   ;;  %s6380_s5 = inlined_call_operand.vmem [shape: f32[64,1], index: 5, kind: input, shape index: {}]   ;;  %s6381_s6 = inlined_call_operand.vmem [shape: bf16[16,64], index: 6, kind: input, shape index: {}]   ;;  %s6382_s7 = inlined_call_operand.vmem [shape: f32[16,1], index: 7, kind: input, shape index: {}]   ;;  %s6383_s8 = inlined_call_operand.vmem [shape: bf16[64,48], index: 8, kind: input, shape index: {}]   ;;  %s6384_s9 = inlined_call_operand.vmem [shape: f32[64,1], index: 9, kind: input, shape index: {}]   ;;  %s6385_s10 = inlined_call_operand.vmem [shape: bf16[64,64], index: 10, kind: input, shape index: {}]   ;;  %s6386_s11 = inlined_call_operand.vmem [shape: f32[64,1], index: 11, kind: input, shape index: {}]   ;;  %s6387_s12 = inlined_call_operand.vmem [shape: bf16[3,64], index: 12, kind: input, shape index: {}]   ;;  %s6388_s13 = inlined_call_operand.vmem [shape: f32[3,1], index: 13, kind: input, shape index: {}]   ;;  %s6389_s14 = inlined_call_operand.vmem [shape: f32[12,3], index: 14, kind: input, shape index: {}]   ;;  %s6390_s15 = inlined_call_operand.vmem [shape: f32[4,1024], index: 15, kind: output, shape index: {}]  }
   0x1   :  { %s4767_s20 = smov 0  }
   0x2 LB: > { %s4373_s21 = sadd.s32 4294967295, %s4672_s20   ;;  %s4780_s22 = sadd.s32 1, %s4672_s20   ;;  %s4672_s20 = sphi %s4767_s20, %s6408_s20   ;;  %s4668_s19 = sphi %s4765_s19, %s6407_s19   ;;  %s4664_s18 = sphi %s4763_s18, %s6406_s18  }
   0x3   : > { %s29_s23 = ssub.s32 %s4672_s20, %s4780_s22  ;;  %s32_s24 = sadd.s32 1, %s4668_s19 }
   0x4   : > { %p30_p0 = scmp.eq.s32.totalorder %s29_s23, 0  ;;  %p39_p1 = scmp.ne.s32.totalorder %s4668_s19, %s4664_s18 }
   0x5   : > { %p40_p2 = scmp.eq.s32.totalorder %s4672_s20, 0  ;;  %p4376_p4 = scmp.ge.s32.totalorder %s4672_s20, 2 }
   0x6   : > { %s4789_s25 = scalar_select %p30_p0, %s4668_s19, %s32_s24  }
   0x7   : > { %p4791_p3 = por %p40_p2, %p39_p1  ;;  %433 = sbr.rel (%p4376_p4) target bundleno = 70 (0x46), region = 60 }
   0xe   : > { %436 = sbr.rel (!%p4791_p3) target bundleno = 22 (0x16), region = 64  ;;  %s438_s27 = sand.u32 (%p4791_p3), 1, %s4668_s19  }
   0xf   : > { %s4514_s28 = sshll.u32 (%p4791_p3), %s4672_s20, 5  ;;  %s4377_s29 = sshll.u32 (%p4791_p3), %s438_s27, 6 }
  0x10   : > { %s443_s17 = scalar_lea.vmem (%p4791_p3), %s6375_s0, %s4514_s28  ;;  %s440_s23 = scalar_lea.vmem (%p4791_p3), [#allocation3], %s4377_s29 }
  0x11   : > { %v456_v0 = vld [vmem:[%s443_s17] sm:$0xff] (%p4791_p3)  ;;  %v458_v1 = vld [vmem:[%s443_s17 + $0x8] sm:$0xff] (%p4791_p3)  ;;  %v460_v2 = vld [vmem:[%s443_s17 + $0x10] sm:$0xff] (%p4791_p3) }
  0x12   : > { %457 = vst [vmem:[%s440_s23] sm:$0xff] (%p4791_p3), %v456_v0  ;;  %459 = vst [vmem:[%s440_s23 + $0x8] sm:$0xff] (%p4791_p3), %v458_v1  ;;  %v462_v3 = vld [vmem:[%s443_s17 + $0x18] sm:$0xff] (%p4791_p3)  ;;  %v464_v4 = vld [vmem:[%s443_s17 + $0x40] sm:$0xff] (%p4791_p3) }
  0x13   : > { %461 = vst [vmem:[%s440_s23 + $0x10] sm:$0xff] (%p4791_p3), %v460_v2  ;;  %v466_v5 = vld [vmem:[%s443_s17 + $0x48] sm:$0xff] (%p4791_p3)  ;;  %463 = vst [vmem:[%s440_s23 + $0x18] sm:$0xff] (%p4791_p3), %v462_v3  ;;  %v468_v6 = vld [vmem:[%s443_s17 + $0x50] sm:$0xff] (%p4791_p3) }
  0x14   : > { %465 = vst [vmem:[%s440_s23 + $0x20] sm:$0xff] (%p4791_p3), %v464_v4  ;;  %467 = vst [vmem:[%s440_s23 + $0x28] sm:$0xff] (%p4791_p3), %v466_v5  ;;  %v470_v7 = vld [vmem:[%s443_s17 + $0x58] sm:$0xff] (%p4791_p3) }
  0x15   : > { %469 = vst [vmem:[%s440_s23 + $0x30] sm:$0xff] %v468_v6  ;;  %471 = vst [vmem:[%s440_s23 + $0x38] sm:$0xff] %v470_v7 }
  0x16 PF: > { %477 = sbr.rel (!%p4791_p3) target bundleno = 38 (0x26), region = 87  ;;  %s479_s24 = sand.u32 (%p4791_p3), 1, %s4668_s19  }
  0x17   : > { %s4515_s27 = sshll.u32 (%p4791_p3), %s4672_s20, 4  ;;  %s4518_s28 = smul.u32 (%p4791_p3), 192, %s479_s24 }
  0x18   : > { %s4810_s16 = scalar_lea.vmem (%p4791_p3), %s6376_s1, %s4515_s27 }
  0x19   : > { %v497_v8 = vld [vmem:[%s4810_s16] sm:$0xff] (%p4791_p3)  ;;  %v499_v9 = vld [vmem:[%s4810_s16 + $0x8] sm:$0xff] (%p4791_p3)  ;;  %s4818_s17 = scalar_lea.vmem (%p4791_p3), [#allocation4], %s4518_s28 }
  0x1a   : > { %v501_v10 = vld [vmem:[%s4810_s16 + $0x20] sm:$0xff] (%p4791_p3)  ;;  %v503_v11 = vld [vmem:[%s4810_s16 + $0x28] sm:$0xff] (%p4791_p3)  ;;  %498 = vst [vmem:[%s4818_s17] sm:$0xff] (%p4791_p3), %v497_v8  ;;  %500 = vst [vmem:[%s4818_s17 + $0x8] sm:$0xff] (%p4791_p3), %v499_v9 }
  0x1b   : > { %v505_v12 = vld [vmem:[%s4810_s16 + $0x40] sm:$0xff] (%p4791_p3)  ;;  %v507_v13 = vld [vmem:[%s4810_s16 + $0x48] sm:$0xff] (%p4791_p3)  ;;  %502 = vst [vmem:[%s4818_s17 + $0x10] sm:$0xff] (%p4791_p3), %v501_v10  ;;  %504 = vst [vmem:[%s4818_s17 + $0x18] sm:$0xff] (%p4791_p3), %v503_v11 }
  0x1c   : > { %506 = vst [vmem:[%s4818_s17 + $0x20] sm:$0xff] (%p4791_p3), %v505_v12  ;;  %508 = vst [vmem:[%s4818_s17 + $0x28] sm:$0xff] (%p4791_p3), %v507_v13  ;;  %v509_v14 = vld [vmem:[%s4810_s16 + $0x60] sm:$0xff] (%p4791_p3)  ;;  %v511_v15 = vld [vmem:[%s4810_s16 + $0x68] sm:$0xff] (%p4791_p3) }
  0x1d   : > { %v513_v16 = vld [vmem:[%s4810_s16 + $0x80] sm:$0xff]  ;;  %510 = vst [vmem:[%s4818_s17 + $0x30] sm:$0xff] %v509_v14  ;;  %512 = vst [vmem:[%s4818_s17 + $0x38] sm:$0xff] %v511_v15  ;;  %v515_v17 = vld [vmem:[%s4810_s16 + $0x88] sm:$0xff] }
  0x1e   : > { %514 = vst [vmem:[%s4818_s17 + $0x40] sm:$0xff] %v513_v16  ;;  %v517_v18 = vld [vmem:[%s4810_s16 + $0xa0] sm:$0xff]  ;;  %v519_v19 = vld [vmem:[%s4810_s16 + $0xa8] sm:$0xff]  ;;  %516 = vst [vmem:[%s4818_s17 + $0x48] sm:$0xff] %v515_v17 }
  0x1f   : > { %518 = vst [vmem:[%s4818_s17 + $0x50] sm:$0xff] %v517_v18  ;;  %520 = vst [vmem:[%s4818_s17 + $0x58] sm:$0xff] %v519_v19  ;;  %v521_v20 = vld [vmem:[%s4810_s16 + $0xc0] sm:$0xff]  ;;  %v523_v21 = vld [vmem:[%s4810_s16 + $0xc8] sm:$0xff] }
  0x20   : > { %v525_v22 = vld [vmem:[%s4810_s16 + $0xe0] sm:$0xff]  ;;  %522 = vst [vmem:[%s4818_s17 + $0x60] sm:$0xff] %v521_v20  ;;  %524 = vst [vmem:[%s4818_s17 + $0x68] sm:$0xff] %v523_v21  ;;  %v527_v23 = vld [vmem:[%s4810_s16 + $0xe8] sm:$0xff] }
  0x21   : > { %526 = vst [vmem:[%s4818_s17 + $0x70] sm:$0xff] %v525_v22  ;;  %v529_v24 = vld [vmem:[%s4810_s16 + $0x100] sm:$0xff]  ;;  %v531_v25 = vld [vmem:[%s4810_s16 + $0x108] sm:$0xff]  ;;  %528 = vst [vmem:[%s4818_s17 + $0x78] sm:$0xff] %v527_v23 }
  0x22   : > { %530 = vst [vmem:[%s4818_s17 + $0x80] sm:$0xff] %v529_v24  ;;  %532 = vst [vmem:[%s4818_s17 + $0x88] sm:$0xff] %v531_v25  ;;  %v533_v26 = vld [vmem:[%s4810_s16 + $0x120] sm:$0xff]  ;;  %v535_v27 = vld [vmem:[%s4810_s16 + $0x128] sm:$0xff] }
  0x23   : > { %v537_v28 = vld [vmem:[%s4810_s16 + $0x140] sm:$0xff]  ;;  %534 = vst [vmem:[%s4818_s17 + $0x90] sm:$0xff] %v533_v26  ;;  %536 = vst [vmem:[%s4818_s17 + $0x98] sm:$0xff] %v535_v27  ;;  %v539_v29 = vld [vmem:[%s4810_s16 + $0x148] sm:$0xff] }
  0x24   : > { %538 = vst [vmem:[%s4818_s17 + $0xa0] sm:$0xff] %v537_v28  ;;  %v541_v30 = vld [vmem:[%s4810_s16 + $0x160] sm:$0xff]  ;;  %v543_v31 = vld [vmem:[%s4810_s16 + $0x168] sm:$0xff]  ;;  %540 = vst [vmem:[%s4818_s17 + $0xa8] sm:$0xff] %v539_v29 }
  0x25   : > { %542 = vst [vmem:[%s4818_s17 + $0xb0] sm:$0xff] %v541_v30  ;;  %544 = vst [vmem:[%s4818_s17 + $0xb8] sm:$0xff] %v543_v31 }
  0x26 PF: > { %550 = sbr.rel (!%p4791_p3) target bundleno = 54 (0x36), region = 110  ;;  %s552_s23 = sand.u32 (%p4791_p3), 1, %s4668_s19  }
  0x27   : > { %s4516_s24 = sshll.u32 (%p4791_p3), %s4672_s20, 4  ;;  %s4519_s27 = smul.u32 (%p4791_p3), 192, %s552_s23 }
  0x28   : > { %s4869_s30 = scalar_lea.vmem (%p4791_p3), %s6377_s2, %s4516_s24 }
  0x29   : > { %v570_v32 = vld [vmem:[%s4869_s30] sm:$0xff] (%p4791_p3)  ;;  %v572_v33 = vld [vmem:[%s4869_s30 + $0x8] sm:$0xff] (%p4791_p3)  ;;  %s4877_s16 = scalar_lea.vmem (%p4791_p3), [#allocation5], %s4519_s27 }
  0x2a   : > { %v574_v34 = vld [vmem:[%s4869_s30 + $0x20] sm:$0xff] (%p4791_p3)  ;;  %v576_v35 = vld [vmem:[%s4869_s30 + $0x28] sm:$0xff] (%p4791_p3)  ;;  %571 = vst [vmem:[%s4877_s16] sm:$0xff] (%p4791_p3), %v570_v32  ;;  %573 = vst [vmem:[%s4877_s16 + $0x8] sm:$0xff] (%p4791_p3), %v572_v33 }
  0x2b   : > { %v578_v36 = vld [vmem:[%s4869_s30 + $0x40] sm:$0xff] (%p4791_p3)  ;;  %v580_v37 = vld [vmem:[%s4869_s30 + $0x48] sm:$0xff] (%p4791_p3)  ;;  %575 = vst [vmem:[%s4877_s16 + $0x10] sm:$0xff] (%p4791_p3), %v574_v34  ;;  %577 = vst [vmem:[%s4877_s16 + $0x18] sm:$0xff] (%p4791_p3), %v576_v35 }
  0x2c   : > { %579 = vst [vmem:[%s4877_s16 + $0x20] sm:$0xff] (%p4791_p3), %v578_v36  ;;  %581 = vst [vmem:[%s4877_s16 + $0x28] sm:$0xff] (%p4791_p3), %v580_v37  ;;  %v582_v38 = vld [vmem:[%s4869_s30 + $0x60] sm:$0xff] (%p4791_p3)  ;;  %v584_v39 = vld [vmem:[%s4869_s30 + $0x68] sm:$0xff] (%p4791_p3) }
  0x2d   : > { %v586_v40 = vld [vmem:[%s4869_s30 + $0x80] sm:$0xff]  ;;  %583 = vst [vmem:[%s4877_s16 + $0x30] sm:$0xff] %v582_v38  ;;  %585 = vst [vmem:[%s4877_s16 + $0x38] sm:$0xff] %v584_v39  ;;  %v588_v41 = vld [vmem:[%s4869_s30 + $0x88] sm:$0xff] }
  0x2e   : > { %587 = vst [vmem:[%s4877_s16 + $0x40] sm:$0xff] %v586_v40  ;;  %v590_v42 = vld [vmem:[%s4869_s30 + $0xa0] sm:$0xff]  ;;  %v592_v43 = vld [vmem:[%s4869_s30 + $0xa8] sm:$0xff]  ;;  %589 = vst [vmem:[%s4877_s16 + $0x48] sm:$0xff] %v588_v41 }
  0x2f   : > { %591 = vst [vmem:[%s4877_s16 + $0x50] sm:$0xff] %v590_v42  ;;  %593 = vst [vmem:[%s4877_s16 + $0x58] sm:$0xff] %v592_v43  ;;  %v594_v44 = vld [vmem:[%s4869_s30 + $0xc0] sm:$0xff]  ;;  %v596_v45 = vld [vmem:[%s4869_s30 + $0xc8] sm:$0xff] }
  0x30   : > { %v598_v46 = vld [vmem:[%s4869_s30 + $0xe0] sm:$0xff]  ;;  %595 = vst [vmem:[%s4877_s16 + $0x60] sm:$0xff] %v594_v44  ;;  %597 = vst [vmem:[%s4877_s16 + $0x68] sm:$0xff] %v596_v45  ;;  %v600_v47 = vld [vmem:[%s4869_s30 + $0xe8] sm:$0xff] }
  0x31   : > { %599 = vst [vmem:[%s4877_s16 + $0x70] sm:$0xff] %v598_v46  ;;  %v602_v48 = vld [vmem:[%s4869_s30 + $0x100] sm:$0xff]  ;;  %v604_v49 = vld [vmem:[%s4869_s30 + $0x108] sm:$0xff]  ;;  %601 = vst [vmem:[%s4877_s16 + $0x78] sm:$0xff] %v600_v47 }
  0x32   : > { %603 = vst [vmem:[%s4877_s16 + $0x80] sm:$0xff] %v602_v48  ;;  %605 = vst [vmem:[%s4877_s16 + $0x88] sm:$0xff] %v604_v49  ;;  %v606_v50 = vld [vmem:[%s4869_s30 + $0x120] sm:$0xff]  ;;  %v608_v51 = vld [vmem:[%s4869_s30 + $0x128] sm:$0xff] }
  0x33   : > { %v610_v52 = vld [vmem:[%s4869_s30 + $0x140] sm:$0xff]  ;;  %607 = vst [vmem:[%s4877_s16 + $0x90] sm:$0xff] %v606_v50  ;;  %609 = vst [vmem:[%s4877_s16 + $0x98] sm:$0xff] %v608_v51  ;;  %v612_v53 = vld [vmem:[%s4869_s30 + $0x148] sm:$0xff] }
  0x34   : > { %611 = vst [vmem:[%s4877_s16 + $0xa0] sm:$0xff] %v610_v52  ;;  %v614_v54 = vld [vmem:[%s4869_s30 + $0x160] sm:$0xff]  ;;  %v616_v55 = vld [vmem:[%s4869_s30 + $0x168] sm:$0xff]  ;;  %613 = vst [vmem:[%s4877_s16 + $0xa8] sm:$0xff] %v612_v53 }
  0x35   : > { %615 = vst [vmem:[%s4877_s16 + $0xb0] sm:$0xff] %v614_v54  ;;  %617 = vst [vmem:[%s4877_s16 + $0xb8] sm:$0xff] %v616_v55 }
  0x36 PF: > { %623 = sbr.rel (!%p4791_p3) target bundleno = 70 (0x46), region = 133  ;;  %s625_s17 = sand.u32 (%p4791_p3), 1, %s4668_s19  }
  0x37   : > { %s4517_s23 = sshll.u32 (%p4791_p3), %s4672_s20, 4  ;;  %s4520_s24 = smul.u32 (%p4791_p3), 192, %s625_s17 }
  0x38   : > { %s4928_s29 = scalar_lea.vmem (%p4791_p3), %s6378_s3, %s4517_s23 }
  0x39   : > { %v643_v56 = vld [vmem:[%s4928_s29] sm:$0xff] (%p4791_p3)  ;;  %v645_v57 = vld [vmem:[%s4928_s29 + $0x8] sm:$0xff] (%p4791_p3)  ;;  %s4936_s26 = scalar_lea.vmem (%p4791_p3), [#allocation6], %s4520_s24 }
  0x3a   : > { %v647_v58 = vld [vmem:[%s4928_s29 + $0x20] sm:$0xff] (%p4791_p3)  ;;  %v649_v59 = vld [vmem:[%s4928_s29 + $0x28] sm:$0xff] (%p4791_p3)  ;;  %644 = vst [vmem:[%s4936_s26] sm:$0xff] (%p4791_p3), %v643_v56  ;;  %646 = vst [vmem:[%s4936_s26 + $0x8] sm:$0xff] (%p4791_p3), %v645_v57 }
  0x3b   : > { %v651_v60 = vld [vmem:[%s4928_s29 + $0x40] sm:$0xff] (%p4791_p3)  ;;  %v653_v61 = vld [vmem:[%s4928_s29 + $0x48] sm:$0xff] (%p4791_p3)  ;;  %648 = vst [vmem:[%s4936_s26 + $0x10] sm:$0xff] (%p4791_p3), %v647_v58  ;;  %650 = vst [vmem:[%s4936_s26 + $0x18] sm:$0xff] (%p4791_p3), %v649_v59 }
  0x3c   : > { %652 = vst [vmem:[%s4936_s26 + $0x20] sm:$0xff] (%p4791_p3), %v651_v60  ;;  %654 = vst [vmem:[%s4936_s26 + $0x28] sm:$0xff] (%p4791_p3), %v653_v61  ;;  %v655_v62 = vld [vmem:[%s4928_s29 + $0x60] sm:$0xff] (%p4791_p3)  ;;  %v657_v63 = vld [vmem:[%s4928_s29 + $0x68] sm:$0xff] (%p4791_p3) }
  0x3d   : > { %v659_v0 = vld [vmem:[%s4928_s29 + $0x80] sm:$0xff]  ;;  %656 = vst [vmem:[%s4936_s26 + $0x30] sm:$0xff] %v655_v62  ;;  %658 = vst [vmem:[%s4936_s26 + $0x38] sm:$0xff] %v657_v63  ;;  %v661_v1 = vld [vmem:[%s4928_s29 + $0x88] sm:$0xff] }
  0x3e   : > { %660 = vst [vmem:[%s4936_s26 + $0x40] sm:$0xff] %v659_v0  ;;  %v663_v2 = vld [vmem:[%s4928_s29 + $0xa0] sm:$0xff]  ;;  %v665_v3 = vld [vmem:[%s4928_s29 + $0xa8] sm:$0xff]  ;;  %662 = vst [vmem:[%s4936_s26 + $0x48] sm:$0xff] %v661_v1 }
  0x3f   : > { %664 = vst [vmem:[%s4936_s26 + $0x50] sm:$0xff] %v663_v2  ;;  %666 = vst [vmem:[%s4936_s26 + $0x58] sm:$0xff] %v665_v3  ;;  %v667_v4 = vld [vmem:[%s4928_s29 + $0xc0] sm:$0xff]  ;;  %v669_v5 = vld [vmem:[%s4928_s29 + $0xc8] sm:$0xff] }
  0x40   : > { %v671_v6 = vld [vmem:[%s4928_s29 + $0xe0] sm:$0xff]  ;;  %668 = vst [vmem:[%s4936_s26 + $0x60] sm:$0xff] %v667_v4  ;;  %670 = vst [vmem:[%s4936_s26 + $0x68] sm:$0xff] %v669_v5  ;;  %v673_v7 = vld [vmem:[%s4928_s29 + $0xe8] sm:$0xff] }
  0x41   : > { %672 = vst [vmem:[%s4936_s26 + $0x70] sm:$0xff] %v671_v6  ;;  %v675_v8 = vld [vmem:[%s4928_s29 + $0x100] sm:$0xff]  ;;  %v677_v9 = vld [vmem:[%s4928_s29 + $0x108] sm:$0xff]  ;;  %674 = vst [vmem:[%s4936_s26 + $0x78] sm:$0xff] %v673_v7 }
  0x42   : > { %676 = vst [vmem:[%s4936_s26 + $0x80] sm:$0xff] %v675_v8  ;;  %678 = vst [vmem:[%s4936_s26 + $0x88] sm:$0xff] %v677_v9  ;;  %v679_v10 = vld [vmem:[%s4928_s29 + $0x120] sm:$0xff]  ;;  %v681_v11 = vld [vmem:[%s4928_s29 + $0x128] sm:$0xff] }
  0x43   : > { %v683_v12 = vld [vmem:[%s4928_s29 + $0x140] sm:$0xff]  ;;  %680 = vst [vmem:[%s4936_s26 + $0x90] sm:$0xff] %v679_v10  ;;  %682 = vst [vmem:[%s4936_s26 + $0x98] sm:$0xff] %v681_v11  ;;  %v685_v13 = vld [vmem:[%s4928_s29 + $0x148] sm:$0xff] }
  0x44   : > { %684 = vst [vmem:[%s4936_s26 + $0xa0] sm:$0xff] %v683_v12  ;;  %v687_v14 = vld [vmem:[%s4928_s29 + $0x160] sm:$0xff]  ;;  %v689_v15 = vld [vmem:[%s4928_s29 + $0x168] sm:$0xff]  ;;  %686 = vst [vmem:[%s4936_s26 + $0xa8] sm:$0xff] %v685_v13 }
  0x45   : > { %688 = vst [vmem:[%s4936_s26 + $0xb0] sm:$0xff] %v687_v14  ;;  %690 = vst [vmem:[%s4936_s26 + $0xb8] sm:$0xff] %v689_v15 }
  0x46 PF: > { %p4386_p5 = scmp.ge.s32.totalorder %s4672_s20, 1  ;;  %p695_p6 = scmp.lt.s32.totalorder %s4672_s20, 3 }
  0x48   : > { %p696_p7 = pnand %p4386_p5, %p695_p6 }
  0x49   : > { %s702_s30 = sand.u32 (!%p696_p7), 1, %s4664_s18   ;;  %v4674_v16 = vmov (!%p696_p7), 0   ;;  %vm1258_vm0 = vcmask (!%p696_p7), 785408   ;;  %vm805_vm1 = vcmask (!%p696_p7), 1042432   ;;  %vm1484_vm2 = vcmask (!%p696_p7), 523264  }
  0x4a   : > { %699 = sbr.rel (%p696_p7) target bundleno = 1636 (0x664), region = 156  ;;  %1303 = vmatprep.mubr.bf16.mxu0 (!%p696_p7), %v4674_v16  ;;  %1376 = vmatprep.mubr.bf16.mxu1 (!%p696_p7), %v4674_v16  ;;  %vm1584_vm3 = vcmask (!%p696_p7), 23552  }
  0x4b   : > { %s4521_s16 = smul.u32 (!%p696_p7), 192, %s702_s30  ;;  %4587 = vset.pattern.permute.xlu0 (!%p696_p7), %v4674_v16  ;;  %4588 = vset.pattern.permute.xlu1 (!%p696_p7), %v4674_v16 }
  0x4d   : > { %s4989_s17 = scalar_lea.vmem (!%p696_p7), [#allocation4], %s4521_s16  ;;  %s4993_s23 = scalar_lea.vmem (!%p696_p7), [#allocation5], %s4521_s16 }
  0x4e   : > { %v846_v17 = vld [vmem:[%s4989_s17] sm:$0xff] (!%p696_p7)  ;;  %v848_v18 = vld [vmem:[%s4989_s17 + $0x10] sm:$0xff] (!%p696_p7)  ;;  %s4997_s24 = scalar_lea.vmem (!%p696_p7), [#allocation6], %s4521_s16  ;;  %v847_v30 = vld [vmem:[%s4989_s17 + $0x8] sm:$0xff] (!%p696_p7) }
  0x4f   : > { %v918_v19 = vld [vmem:[%s4993_s23] sm:$0xff] (!%p696_p7)  ;;  %v871_v20 = vunpack.c.h.bf16 (!%p696_p7), %v846_v17  ;;  %v875_v21 = vunpack.c.h.bf16 (!%p696_p7), %v848_v18  ;;  %v920_v22 = vld [vmem:[%s4993_s23 + $0x10] sm:$0xff] (!%p696_p7)  ;;  %v870_v26 = vunpack.c.l.bf16 (!%p696_p7), %v846_v17  ;;  %v849_v31 = vld [vmem:[%s4989_s17 + $0x18] sm:$0xff] (!%p696_p7)  ;;  %v874_v33 = vunpack.c.l.bf16 (!%p696_p7), %v848_v18 }
  0x50   : > { %v943_v23 = vunpack.c.h.bf16 (!%p696_p7), %v918_v19  ;;  %v1038_v24 = vld [vmem:[%s4997_s24] sm:$0xff] (!%p696_p7)  ;;  %v1040_v25 = vld [vmem:[%s4997_s24 + $0x10] sm:$0xff] (!%p696_p7)  ;;  %v947_v27 = vunpack.c.h.bf16 (!%p696_p7), %v920_v22  ;;  %v919_v32 = vld [vmem:[%s4993_s23 + $0x8] sm:$0xff] (!%p696_p7)  ;;  %v873_v35 = vunpack.c.h.bf16 (!%p696_p7), %v847_v30  ;;  %v877_v36 = vunpack.c.h.bf16 (!%p696_p7), %v849_v31 }
  0x51   : > { %v1063_v28 = vunpack.c.h.bf16 %v1038_v24  ;;  %v1067_v29 = vunpack.c.h.bf16 %v1040_v25  ;;  %v921_v37 = vld [vmem:[%s4993_s23 + $0x18] sm:$0xff]  ;;  %v945_v38 = vunpack.c.h.bf16 %v919_v32  ;;  %v1039_v39 = vld [vmem:[%s4997_s24 + $0x8] sm:$0xff]  ;;  %v942_v47 = vunpack.c.l.bf16 %v918_v19  ;;  %v850_v57 = vld [vmem:[%s4989_s17 + $0x20] sm:$0xff] }
  0x52   : > { %v991_v34 = vmul.f32 %v943_v23, %v871_v20  ;;  %v1041_v40 = vld [vmem:[%s4997_s24 + $0x18] sm:$0xff]  ;;  %v995_v41 = vmul.f32 %v947_v27, %v875_v21  ;;  %v949_v42 = vunpack.c.h.bf16 %v921_v37  ;;  %v1065_v43 = vunpack.c.h.bf16 %v1039_v39  ;;  %v852_v62 = vld [vmem:[%s4989_s17 + $0x30] sm:$0xff]  ;;  %v922_v63 = vld [vmem:[%s4993_s23 + $0x20] sm:$0xff] }
  0x53   : > { %v1069_v44 = vunpack.c.h.bf16 %v1041_v40  ;;  %v993_v46 = vmul.f32 %v945_v38, %v873_v35  ;;  %v946_v48 = vunpack.c.l.bf16 %v920_v22  ;;  %v1062_v51 = vunpack.c.l.bf16 %v1038_v24  ;;  %v924_v4 = vld [vmem:[%s4993_s23 + $0x30] sm:$0xff]  ;;  %v5012_v5 = vld [vmem:[%s4997_s24 + $0x20] sm:$0xff]  ;;  %v851_v11 = vld [vmem:[%s4989_s17 + $0x28] sm:$0xff] }
  0x54   : > { %v1111_v45 = vmul.f32 %v1063_v28, %v991_v34  ;;  %v1115_v49 = vmul.f32 %v1067_v29, %v995_v41  ;;  %v997_v50 = vmul.f32 %v949_v42, %v877_v36  ;;  %v1066_v52 = vunpack.c.l.bf16 %v1040_v25  ;;  %v5015_v6 = vld [vmem:[%s4997_s24 + $0x30] sm:$0xff]  ;;  %v5019_v12 = vld [vmem:[%s4989_s17 + $0x38] sm:$0xff]  ;;  %v923_v18 = vld [vmem:[%s4993_s23 + $0x28] sm:$0xff] }
  0x55   : > { %v1113_v53 = vmul.f32 %v1065_v43, %v993_v46  ;;  %v990_v54 = vmul.f32 %v942_v47, %v870_v26  ;;  %v994_v55 = vmul.f32 %v946_v48, %v874_v33  ;;  %v872_v56 = vunpack.c.l.bf16 %v847_v30  ;;  %v925_v19 = vld [vmem:[%s4993_s23 + $0x38] sm:$0xff]  ;;  %v5024_v20 = vld [vmem:[%s4997_s24 + $0x28] sm:$0xff] }
  0x56   : > { %v1167_v58 = vpack.c.bf16 %v1115_v49, %v1111_v45  ;;  %v1117_v59 = vmul.f32 %v1069_v44, %v997_v50  ;;  %v876_v60 = vunpack.c.l.bf16 %v849_v31  ;;  %v944_v61 = vunpack.c.l.bf16 %v919_v32  ;;  %v1045_v25 = vld [vmem:[%s4997_s24 + $0x38] sm:$0xff]  ;;  %v5034_v50 = vld [vmem:[%s4989_s17 + $0x40] sm:$0xff] }
  0x57   : > { %v1110_v0 = vmul.f32 %v1062_v51, %v990_v54  ;;  %v1114_v1 = vmul.f32 %v1066_v52, %v994_v55  ;;  %v948_v2 = vunpack.c.l.bf16 %v921_v37  ;;  %v1064_v3 = vunpack.c.l.bf16 %v1039_v39  ;;  %v5038_v55 = vld [vmem:[%s4989_s17 + $0x50] sm:$0xff] }
  0x58   : > { %1271 = vmatprep.subr.bf16.mxu0 %v1167_v58  ;;  %v1169_v7 = vpack.c.bf16 %v1117_v59, %v1113_v53  ;;  %v992_v8 = vmul.f32 %v944_v61, %v872_v56  ;;  %v1068_v9 = vunpack.c.l.bf16 %v1041_v40  ;;  %v879_v10 = vunpack.c.h.bf16 %v850_v57  ;;  %v5041_v56 = vld [vmem:[%s4993_s23 + $0x40] sm:$0xff] }
  0x59   : > { %v1166_v13 = vpack.c.bf16 %v1114_v1, %v1110_v0  ;;  %v996_v14 = vmul.f32 %v948_v2, %v876_v60  ;;  %v883_v15 = vunpack.c.h.bf16 %v852_v62  ;;  %v951_v17 = vunpack.c.h.bf16 %v922_v63 }
  0x5a   : > { %1344 = vmatprep.subr.bf16.mxu1 %v1169_v7  ;;  %v1112_v21 = vmul.f32 %v1064_v3, %v992_v8  ;;  %v955_v22 = vunpack.c.h.bf16 %v924_v4  ;;  %v1071_v23 = vunpack.c.h.bf16 %v5012_v5  ;;  %v1075_v24 = vunpack.c.h.bf16 %v5015_v6 }
  0x5b   : > { %1272 = vmatpush1.bf16.msra.mxu0 %v1166_v13  ;;  %v1116_v26 = vmul.f32 %v1068_v9, %v996_v14  ;;  %v999_v27 = vmul.f32 %v951_v17, %v879_v10  ;;  %v881_v28 = vunpack.c.h.bf16 %v851_v11  ;;  %v885_v29 = vunpack.c.h.bf16 %v5019_v12  ;;  %v5064_v10 = vld [vmem:[%s4993_s23 + $0x48] sm:$0xff] }
  0x5c   : > { %v1003_v30 = vmul.f32 %v955_v22, %v883_v15  ;;  %v953_v31 = vunpack.c.h.bf16 %v923_v18  ;;  %v957_v32 = vunpack.c.h.bf16 %v925_v19  ;;  %v1073_v33 = vunpack.c.h.bf16 %v5024_v20 }
  0x5d   : > { %v1168_v34 = vpack.c.bf16 %v1116_v26, %v1112_v21  ;;  %v1119_v35 = vmul.f32 %v1071_v23, %v999_v27  ;;  %v1077_v36 = vunpack.c.h.bf16 %v1045_v25  ;;  %v878_v37 = vunpack.c.l.bf16 %v850_v57  ;;  %v5044_v57 = vld [vmem:[%s4993_s23 + $0x50] sm:$0xff]  ;;  %v1190_v23 = vld [vmem:[%s6380_s5] sm:$0xff] }
  0x5e   : > { %v1123_v38 = vmul.f32 %v1075_v24, %v1003_v30  ;;  %v1001_v39 = vmul.f32 %v953_v31, %v881_v28  ;;  %v1005_v40 = vmul.f32 %v957_v32, %v885_v29  ;;  %v882_v41 = vunpack.c.l.bf16 %v852_v62  ;;  %v5048_v62 = vld [vmem:[%s4997_s24 + $0x40] sm:$0xff]  ;;  %1200 = vperm.xlu0 %4587, %v1190_v23   ;;  %v1192_v28 = vld [vmem:[%s6380_s5 + $0x10] sm:$0xff] }
  0x5f   : > { %1345 = vmatpush1.bf16.msra.mxu1 %v1168_v34  ;;  %v950_v42 = vunpack.c.l.bf16 %v922_v63  ;;  %v954_v43 = vunpack.c.l.bf16 %v924_v4  ;;  %v1070_v44 = vunpack.c.l.bf16 %v5012_v5  ;;  %v1074_v45 = vunpack.c.l.bf16 %v5015_v6  ;;  %v5051_v63 = vld [vmem:[%s4997_s24 + $0x50] sm:$0xff]  ;;  %v5055_v4 = vld [vmem:[%s4989_s17 + $0x48] sm:$0xff]  ;;  %v5058_v5 = vld [vmem:[%s4989_s17 + $0x58] sm:$0xff]  ;;  %1210 = vperm.xlu1 %4588, %v1192_v28  }
  0x60   : > { %v1171_v46 = vpack.c.bf16 %v1123_v38, %v1119_v35  ;;  %v1121_v47 = vmul.f32 %v1073_v33, %v1001_v39  ;;  %v1125_v48 = vmul.f32 %v1077_v36, %v1005_v40  ;;  %v880_v49 = vunpack.c.l.bf16 %v851_v11  ;;  %v5067_v11 = vld [vmem:[%s4993_s23 + $0x58] sm:$0xff]  ;;  %v1191_v33 = vld [vmem:[%s6380_s5 + $0x8] sm:$0xff]  ;;  %v1467_v28 = vld [vmem:[%s6382_s7] sm:$0xff] }
  0x61   : > { %v998_v51 = vmul.f32 %v950_v42, %v878_v37  ;;  %v1002_v52 = vmul.f32 %v954_v43, %v882_v41  ;;  %v884_v53 = vunpack.c.l.bf16 %v5019_v12  ;;  %v952_v54 = vunpack.c.l.bf16 %v923_v18  ;;  %v5070_v12 = vld [vmem:[%s4997_s24 + $0x48] sm:$0xff]  ;;  %v5075_v18 = vld [vmem:[%s4997_s24 + $0x58] sm:$0xff]  ;;  %v5101_v43 = vld [vmem:[%s4989_s17 + $0x60] sm:$0xff] }
  0x62   : > { %1273 = vmatprep.subr.bf16.mxu0 %v1171_v46  ;;  %v1173_v58 = vpack.c.bf16 %v1125_v48, %v1121_v47  ;;  %v956_v59 = vunpack.c.l.bf16 %v925_v19  ;;  %v1072_v60 = vunpack.c.l.bf16 %v5024_v20  ;;  %v1076_v61 = vunpack.c.l.bf16 %v1045_v25  ;;  %v1193_v38 = vld [vmem:[%s6380_s5 + $0x18] sm:$0xff]  ;;  %1205 = vperm.xlu0 %4587, %v1191_v33  }
  0x63   : > { %v1118_v0 = vmul.f32 %v1070_v44, %v998_v51  ;;  %v1122_v1 = vmul.f32 %v1074_v45, %v1002_v52  ;;  %v1000_v2 = vmul.f32 %v952_v54, %v880_v49  ;;  %v887_v3 = vunpack.c.h.bf16 %v5034_v50  ;;  %v5104_v44 = vld [vmem:[%s4989_s17 + $0x70] sm:$0xff]  ;;  %v5109_v49 = vld [vmem:[%s4993_s23 + $0x60] sm:$0xff]  ;;  %1215 = vperm.xlu1 %4588, %v1193_v38  }
  0x64   : > { %1346 = vmatprep.subr.bf16.mxu1 %v1173_v58  ;;  %v1004_v6 = vmul.f32 %v956_v59, %v884_v53  ;;  %v891_v7 = vunpack.c.h.bf16 %v5038_v55  ;;  %v959_v8 = vunpack.c.h.bf16 %v5041_v56  ;;  %v963_v9 = vunpack.c.h.bf16 %v5044_v57  ;;  %v5115_v51 = vld [vmem:[%s4997_s24 + $0x60] sm:$0xff] }
  0x65   : > { %v1170_v13 = vpack.c.bf16 %v1122_v1, %v1118_v0  ;;  %v1120_v14 = vmul.f32 %v1072_v60, %v1000_v2  ;;  %v1079_v15 = vunpack.c.h.bf16 %v5048_v62  ;;  %v1083_v17 = vunpack.c.h.bf16 %v5051_v63  ;;  %v1194_v58 = vld [vmem:[%s6380_s5 + $0x20] sm:$0xff]  ;;  %v5135_v0 = vld [vmem:[%s4993_s23 + $0x68] sm:$0xff]  ;;  %v5138_v1 = vld [vmem:[%s4993_s23 + $0x78] sm:$0xff] }
  0x66   : > { %v1124_v19 = vmul.f32 %v1076_v61, %v1004_v6  ;;  %v1007_v20 = vmul.f32 %v959_v8, %v887_v3  ;;  %v1011_v21 = vmul.f32 %v963_v9, %v891_v7  ;;  %v889_v22 = vunpack.c.h.bf16 %v5055_v4  ;;  %v1195_v2 = vld [vmem:[%s6380_s5 + $0x28] sm:$0xff]  ;;  %v5148_v8 = vld [vmem:[%s4997_s24 + $0x78] sm:$0xff]  ;;  %v1196_v9 = vld [vmem:[%s6380_s5 + $0x30] sm:$0xff]  ;;  %1220 = vperm.xlu0 %4587, %v1194_v58  }
  0x67   : > { %1274 = vmatpush1.bf16.msra.mxu0 %v1170_v13  ;;  %v893_v24 = vunpack.c.h.bf16 %v5058_v5  ;;  %v961_v25 = vunpack.c.h.bf16 %v5064_v10  ;;  %v965_v26 = vunpack.c.h.bf16 %v5067_v11  ;;  %v1081_v27 = vunpack.c.h.bf16 %v5070_v12  ;;  %v5145_v7 = vld [vmem:[%s4997_s24 + $0x68] sm:$0xff]  ;;  %1225 = vperm.xlu1 %4588, %v1195_v2   ;;  %v5198_v58 = vld [vmem:[%s4997_s24 + $0x80] sm:$0xff]  ;;  %v5211_v2 = vld [vmem:[%s4989_s17 + $0x98] sm:$0xff] }
  0x68   : > { %v1172_v29 = vpack.c.bf16 %v1124_v19, %v1120_v14  ;;  %v1127_v30 = vmul.f32 %v1079_v15, %v1007_v20  ;;  %v1131_v31 = vmul.f32 %v1083_v17, %v1011_v21  ;;  %v1085_v32 = vunpack.c.h.bf16 %v5075_v18  ;;  %v1197_v14 = vld [vmem:[%s6380_s5 + $0x38] sm:$0xff] }
  0x69   : > { %v1009_v34 = vmul.f32 %v961_v25, %v889_v22  ;;  %v1013_v35 = vmul.f32 %v965_v26, %v893_v24  ;;  %v886_v36 = vunpack.c.l.bf16 %v5034_v50  ;;  %v890_v37 = vunpack.c.l.bf16 %v5038_v55  ;;  %v5112_v50 = vld [vmem:[%s4993_s23 + $0x70] sm:$0xff] }
  0x6a   : > { %1347 = vmatpush1.bf16.msra.mxu1 %v1172_v29  ;;  %v1175_v39 = vpack.c.bf16 %v1131_v31, %v1127_v30  ;;  %v958_v40 = vunpack.c.l.bf16 %v5041_v56  ;;  %v962_v41 = vunpack.c.l.bf16 %v5044_v57  ;;  %v1078_v42 = vunpack.c.l.bf16 %v5048_v62  ;;  %v5120_v56 = vld [vmem:[%s4997_s24 + $0x70] sm:$0xff]  ;;  %v5123_v57 = vld [vmem:[%s4989_s17 + $0x68] sm:$0xff]  ;;  %1230 = vperm.xlu0 %4587, %v1196_v9   ;;  %v5221_v9 = vld [vmem:[%s4993_s23 + $0x98] sm:$0xff] }
  0x6b   : > { %v1129_v45 = vmul.f32 %v1081_v27, %v1009_v34  ;;  %v1133_v46 = vmul.f32 %v1085_v32, %v1013_v35  ;;  %v1082_v47 = vunpack.c.l.bf16 %v5051_v63  ;;  %v888_v48 = vunpack.c.l.bf16 %v5055_v4  ;;  %v5132_v63 = vld [vmem:[%s4989_s17 + $0x78] sm:$0xff]  ;;  %1235 = vperm.xlu1 %4588, %v1197_v14  }
  0x6c   : > { %1275 = vmatprep.subr.bf16.mxu0 %v1175_v39  ;;  %v1006_v52 = vmul.f32 %v958_v40, %v886_v36  ;;  %v1010_v53 = vmul.f32 %v962_v41, %v890_v37  ;;  %v892_v54 = vunpack.c.l.bf16 %v5058_v5  ;;  %v960_v55 = vunpack.c.l.bf16 %v5064_v10  ;;  %v1468_v41 = vld [vmem:[%s6382_s7 + $0x8] sm:$0xff] }
  0x6d   : > { %v1177_v59 = vpack.c.bf16 %v1133_v46, %v1129_v45  ;;  %v964_v60 = vunpack.c.l.bf16 %v5067_v11  ;;  %v1080_v61 = vunpack.c.l.bf16 %v5070_v12  ;;  %v1084_v62 = vunpack.c.l.bf16 %v5075_v18  ;;  %v5181_v46 = vld [vmem:[%s4989_s17 + $0x80] sm:$0xff] }
  0x6e   : > { %v1126_v3 = vmul.f32 %v1078_v42, %v1006_v52  ;;  %v1130_v4 = vmul.f32 %v1082_v47, %v1010_v53  ;;  %v1008_v5 = vmul.f32 %v960_v55, %v888_v48  ;;  %v895_v6 = vunpack.c.h.bf16 %v5101_v43  ;;  %v5189_v52 = vld [vmem:[%s4993_s23 + $0x80] sm:$0xff]  ;;  %v5192_v53 = vld [vmem:[%s4993_s23 + $0x90] sm:$0xff]  ;;  %1471 = vperm.xlu0 %4587, %v1467_v28  }
  0x6f   : > { %1348 = vmatprep.subr.bf16.mxu1 %v1177_v59  ;;  %v1012_v10 = vmul.f32 %v964_v60, %v892_v54  ;;  %v899_v11 = vunpack.c.h.bf16 %v5104_v44  ;;  %v967_v12 = vunpack.c.h.bf16 %v5109_v49  ;;  %v971_v13 = vunpack.c.h.bf16 %v5112_v50  ;;  %v5201_v59 = vld [vmem:[%s4997_s24 + $0x90] sm:$0xff]  ;;  %v3530_v60 = vld [vmem:[%s6384_s9] sm:$0xff]  ;;  %1476 = vperm.xlu1 %4588, %v1468_v41  }
  0x70   : > { %v1174_v15 = vpack.c.bf16 %v1130_v4, %v1126_v3  ;;  %v1128_v17 = vmul.f32 %v1080_v61, %v1008_v5  ;;  %v1087_v18 = vunpack.c.h.bf16 %v5115_v51  ;;  %v1091_v19 = vunpack.c.h.bf16 %v5120_v56  ;;  %v3531_v3 = vld [vmem:[%s6384_s9 + $0x8] sm:$0xff] }
  0x71   : > { %v1132_v20 = vmul.f32 %v1084_v62, %v1012_v10  ;;  %v1015_v21 = vmul.f32 %v967_v12, %v895_v6  ;;  %v1019_v22 = vmul.f32 %v971_v13, %v899_v11  ;;  %v897_v23 = vunpack.c.h.bf16 %v5123_v57  ;;  %v5224_v10 = vld [vmem:[%s4997_s24 + $0x88] sm:$0xff] }
  0x72   : > { %1276 = vmatpush1.bf16.msra.mxu0 %v1174_v15  ;;  %v901_v24 = vunpack.c.h.bf16 %v5132_v63  ;;  %v969_v25 = vunpack.c.h.bf16 %v5135_v0  ;;  %v973_v26 = vunpack.c.h.bf16 %v5138_v1  ;;  %v1089_v27 = vunpack.c.h.bf16 %v5145_v7  ;;  %v5229_v15 = vld [vmem:[%s4997_s24 + $0x98] sm:$0xff]  ;;  %3540 = vperm.xlu0 %4587, %v3530_v60  }
  0x73   : > { %v1176_v29 = vpack.c.bf16 %v1132_v20, %v1128_v17  ;;  %v1135_v30 = vmul.f32 %v1087_v18, %v1015_v21  ;;  %v1139_v31 = vmul.f32 %v1091_v19, %v1019_v22  ;;  %v1093_v32 = vunpack.c.h.bf16 %v5148_v8  ;;  %v3532_v21 = vld [vmem:[%s6384_s9 + $0x10] sm:$0xff]  ;;  %3545 = vperm.xlu1 %4588, %v3531_v3  }
  0x74   : > { %v1017_v33 = vmul.f32 %v969_v25, %v897_v23  ;;  %v1021_v34 = vmul.f32 %v973_v26, %v901_v24  ;;  %v894_v35 = vunpack.c.l.bf16 %v5101_v43  ;;  %v898_v36 = vunpack.c.l.bf16 %v5104_v44  ;;  %v3533_v26 = vld [vmem:[%s6384_s9 + $0x18] sm:$0xff] }
  0x75   : > { %1349 = vmatpush1.bf16.msra.mxu1 %v1176_v29  ;;  %v1179_v37 = vpack.c.bf16 %v1139_v31, %v1135_v30  ;;  %v966_v38 = vunpack.c.l.bf16 %v5109_v49  ;;  %v970_v39 = vunpack.c.l.bf16 %v5112_v50  ;;  %v1086_v40 = vunpack.c.l.bf16 %v5115_v51  ;;  %v5186_v51 = vld [vmem:[%s4989_s17 + $0x90] sm:$0xff] }
  0x76   : > { %v1137_v42 = vmul.f32 %v1089_v27, %v1017_v33  ;;  %v1141_v43 = vmul.f32 %v1093_v32, %v1021_v34  ;;  %v1090_v44 = vunpack.c.l.bf16 %v5120_v56  ;;  %v896_v45 = vunpack.c.l.bf16 %v5123_v57  ;;  %3550 = vperm.xlu0 %4587, %v3532_v21  }
  0x77   : > { %1277 = vmatprep.subr.bf16.mxu0 %v1179_v37  ;;  %v1014_v47 = vmul.f32 %v966_v38, %v894_v35  ;;  %v1018_v48 = vmul.f32 %v970_v39, %v898_v36  ;;  %v900_v49 = vunpack.c.l.bf16 %v5132_v63  ;;  %v968_v50 = vunpack.c.l.bf16 %v5135_v0  ;;  %v3534_v39 = vld [vmem:[%s6384_s9 + $0x20] sm:$0xff]  ;;  %3555 = vperm.xlu1 %4588, %v3533_v26  }
  0x78   : > { %v1181_v54 = vpack.c.bf16 %v1141_v43, %v1137_v42  ;;  %v972_v55 = vunpack.c.l.bf16 %v5138_v1  ;;  %v1088_v56 = vunpack.c.l.bf16 %v5145_v7  ;;  %v1092_v57 = vunpack.c.l.bf16 %v5148_v8  ;;  %v5208_v1 = vld [vmem:[%s4989_s17 + $0x88] sm:$0xff] }
  0x79   : > { %v1134_v61 = vmul.f32 %v1086_v40, %v1014_v47  ;;  %v1138_v62 = vmul.f32 %v1090_v44, %v1018_v48  ;;  %v1016_v63 = vmul.f32 %v968_v50, %v896_v45  ;;  %v903_v0 = vunpack.c.h.bf16 %v5181_v46  ;;  %v935_v8 = vld [vmem:[%s4993_s23 + $0x88] sm:$0xff]  ;;  %v5253_v44 = vld [vmem:[%s4989_s17 + $0xa0] sm:$0xff]  ;;  %v5260_v50 = vld [vmem:[%s4989_s17 + $0xb0] sm:$0xff] }
  0x7a   : > { %1350 = vmatprep.subr.bf16.mxu1 %v1181_v54  ;;  %v1020_v4 = vmul.f32 %v972_v55, %v900_v49  ;;  %v907_v5 = vunpack.c.h.bf16 %v5186_v51  ;;  %v975_v6 = vunpack.c.h.bf16 %v5189_v52  ;;  %v979_v7 = vunpack.c.h.bf16 %v5192_v53  ;;  %v3535_v45 = vld [vmem:[%s6384_s9 + $0x28] sm:$0xff]  ;;  %3560 = vperm.xlu0 %4587, %v3534_v39  }
  0x7b   : > { %v1178_v11 = vpack.c.bf16 %v1138_v62, %v1134_v61  ;;  %v1136_v12 = vmul.f32 %v1088_v56, %v1016_v63  ;;  %v1095_v13 = vunpack.c.h.bf16 %v5198_v58  ;;  %v1099_v14 = vunpack.c.h.bf16 %v5201_v59  ;;  %3565 = vperm.xlu1 %4588, %v3535_v45  }
  0x7c   : > { %v1140_v17 = vmul.f32 %v1092_v57, %v1020_v4  ;;  %v1023_v18 = vmul.f32 %v975_v6, %v903_v0  ;;  %v1027_v19 = vmul.f32 %v979_v7, %v907_v5  ;;  %v905_v20 = vunpack.c.h.bf16 %v5208_v1  ;;  %v5272_v57 = vld [vmem:[%s4997_s24 + $0xa0] sm:$0xff]  ;;  %v5282_v0 = vld [vmem:[%s4989_s17 + $0xb8] sm:$0xff] }
  0x7d   : > { %1278 = vmatpush1.bf16.msra.mxu0 %v1178_v11  ;;  %v909_v22 = vunpack.c.h.bf16 %v5211_v2  ;;  %v977_v23 = vunpack.c.h.bf16 %v935_v8  ;;  %v981_v24 = vunpack.c.h.bf16 %v5221_v9  ;;  %v1097_v25 = vunpack.c.h.bf16 %v5224_v10  ;;  %v941_v7 = vld [vmem:[%s4993_s23 + $0xb8] sm:$0xff] }
  0x7e   : > { %v1180_v27 = vpack.c.bf16 %v1140_v17, %v1136_v12  ;;  %v1143_v28 = vmul.f32 %v1095_v13, %v1023_v18  ;;  %v1147_v29 = vmul.f32 %v1099_v14, %v1027_v19  ;;  %v1101_v30 = vunpack.c.h.bf16 %v5229_v15  ;;  %v1061_v14 = vld [vmem:[%s4997_s24 + $0xb8] sm:$0xff] }
  0x7f   : > { %v1025_v31 = vmul.f32 %v977_v23, %v905_v20  ;;  %v1029_v32 = vmul.f32 %v981_v24, %v909_v22  ;;  %v902_v33 = vunpack.c.l.bf16 %v5181_v46  ;;  %v906_v34 = vunpack.c.l.bf16 %v5186_v51  ;;  %v5263_v51 = vld [vmem:[%s4993_s23 + $0xa0] sm:$0xff] }
  0x80   : > { %1351 = vmatpush1.bf16.msra.mxu1 %v1180_v27  ;;  %v1183_v35 = vpack.c.bf16 %v1147_v29, %v1143_v28  ;;  %v974_v36 = vunpack.c.l.bf16 %v5189_v52  ;;  %v978_v37 = vunpack.c.l.bf16 %v5192_v53  ;;  %v1094_v38 = vunpack.c.l.bf16 %v5198_v58  ;;  %v5266_v52 = vld [vmem:[%s4993_s23 + $0xb0] sm:$0xff]  ;;  %v3813_v24 = vld [vmem:[%s6386_s11] sm:$0xff]  ;;  %v3814_v29 = vld [vmem:[%s6386_s11 + $0x8] sm:$0xff] }
  0x81   : > { %v1145_v40 = vmul.f32 %v1097_v25, %v1025_v31  ;;  %v1149_v41 = vmul.f32 %v1101_v30, %v1029_v32  ;;  %v1098_v42 = vunpack.c.l.bf16 %v5201_v59  ;;  %v904_v43 = vunpack.c.l.bf16 %v5208_v1  ;;  %v5275_v58 = vld [vmem:[%s4997_s24 + $0xb0] sm:$0xff]  ;;  %v5278_v59 = vld [vmem:[%s4989_s17 + $0xa8] sm:$0xff] }
  0x82   : > { %1279 = vmatprep.subr.bf16.mxu0 %v1183_v35  ;;  %v1022_v46 = vmul.f32 %v974_v36, %v902_v33  ;;  %v1026_v47 = vmul.f32 %v978_v37, %v906_v34  ;;  %v908_v48 = vunpack.c.l.bf16 %v5211_v2  ;;  %v976_v49 = vunpack.c.l.bf16 %v935_v8  ;;  %v939_v1 = vld [vmem:[%s4993_s23 + $0xa8] sm:$0xff]  ;;  %v3536_v2 = vld [vmem:[%s6384_s9 + $0x30] sm:$0xff]  ;;  %s5430_s23 = sshll.u32 %s4373_s21, 2 }
  0x83   : > { %v1185_v53 = vpack.c.bf16 %v1149_v41, %v1145_v40  ;;  %v980_v54 = vunpack.c.l.bf16 %v5221_v9  ;;  %v1096_v55 = vunpack.c.l.bf16 %v5224_v10  ;;  %v1100_v56 = vunpack.c.l.bf16 %v5229_v15  ;;  %v1059_v8 = vld [vmem:[%s4997_s24 + $0xa8] sm:$0xff]  ;;  %v3537_v9 = vld [vmem:[%s6384_s9 + $0x38] sm:$0xff]  ;;  %3570 = vperm.xlu0 %4587, %v3536_v2   ;;  %s4387_s24 = sshll.u32 %s702_s30, 6  ;;  %p787_p8 = scmp.lt.s32.totalorder %s5430_s23, 7 }
  0x84   : > { %v1142_v60 = vmul.f32 %v1094_v38, %v1022_v46  ;;  %v1146_v61 = vmul.f32 %v1098_v42, %v1026_v47  ;;  %v1024_v62 = vmul.f32 %v976_v49, %v904_v43  ;;  %v911_v63 = vunpack.c.h.bf16 %v5253_v44  ;;  %3575 = vperm.xlu1 %4588, %v3537_v9   ;;  %v3815_v42 = vld [vmem:[%s6386_s11 + $0x10] sm:$0xff]  ;;  %v3816_v47 = vld [vmem:[%s6386_s11 + $0x18] sm:$0xff]  ;;  %v4590_v2 = vld [vmem:[%s6379_s4 + $0x8] sm:$0xff]   ;;  %s5366_s28 = scalar_lea.vmem [#allocation3], %s4387_s24 }
  0x85   : > { %1352 = vmatprep.subr.bf16.mxu1 %v1185_v53  ;;  %v1028_v3 = vmul.f32 %v980_v54, %v908_v48  ;;  %v915_v4 = vunpack.c.h.bf16 %v5260_v50  ;;  %v983_v5 = vunpack.c.h.bf16 %v5263_v51  ;;  %v987_v6 = vunpack.c.h.bf16 %v5266_v52  ;;  %s6410_s23 = smov (!%p787_p8, %s5430_s23), 7 }
  0x86   : > { %v1182_v10 = vpack.c.bf16 %v1146_v61, %v1142_v60  ;;  %v1144_v11 = vmul.f32 %v1096_v55, %v1024_v62  ;;  %v1103_v12 = vunpack.c.h.bf16 %v5272_v57  ;;  %v1107_v13 = vunpack.c.h.bf16 %v5275_v58  ;;  %v4589_v61 = vld [vmem:[%s6379_s4] sm:$0xff]   ;;  %s4389_s20 = sshll.u32 %s6410_s23, 2 }
  0x87   : > { %v1148_v15 = vmul.f32 %v1100_v56, %v1028_v3  ;;  %v1031_v17 = vmul.f32 %v983_v5, %v911_v63  ;;  %v1035_v18 = vmul.f32 %v987_v6, %v915_v4  ;;  %v913_v19 = vunpack.c.h.bf16 %v5278_v59  ;;  %3823 = vperm.xlu0 %4587, %v3813_v24   ;;  %v3817_v56 = vld [vmem:[%s6386_s11 + $0x20] sm:$0xff]  ;;  %v3819_v63 = vld [vmem:[%s6386_s11 + $0x30] sm:$0xff]  ;;  %v4592_v4 = vld [vmem:[%s6379_s4 + $0x18] sm:$0xff]   ;;  %s5479_s24 = scalar_lea.vmem %s6390_s15, %s4389_s20 }
  0x88   : > { %1280 = vmatpush1.bf16.msra.mxu0 %v1182_v10  ;;  %v917_v20 = vunpack.c.h.bf16 %v5282_v0  ;;  %v985_v21 = vunpack.c.h.bf16 %v939_v1  ;;  %v989_v22 = vunpack.c.h.bf16 %v941_v7  ;;  %v1105_v23 = vunpack.c.h.bf16 %v1059_v8  ;;  %3828 = vperm.xlu1 %4588, %v3814_v29   ;;  %v4591_v3 = vld [vmem:[%s6379_s4 + $0x10] sm:$0xff]   ;;  %v5369_v5 = vld [vmem:[%s5366_s28 + $0x28] sm:$0xff]  ;;  %v5372_v6 = vld [vmem:[%s5366_s28 + $0x20] sm:$0xff] }
  0x89   : > { %v1184_v25 = vpack.c.bf16 %v1148_v15, %v1144_v11  ;;  %v1151_v26 = vmul.f32 %v1103_v12, %v1031_v17  ;;  %v1155_v27 = vmul.f32 %v1107_v13, %v1035_v18  ;;  %v1109_v28 = vunpack.c.h.bf16 %v1061_v14  ;;  %v5385_v12 = vld [vmem:[%s5366_s28 + $0x30] sm:$0xff] }
  0x8a   : > { %v1033_v30 = vmul.f32 %v985_v21, %v913_v19  ;;  %v1037_v31 = vmul.f32 %v989_v22, %v917_v20  ;;  %v910_v32 = vunpack.c.l.bf16 %v5253_v44  ;;  %v914_v33 = vunpack.c.l.bf16 %v5260_v50 }
  0x8b   : > { %1353 = vmatpush1.bf16.msra.mxu1 %v1184_v25  ;;  %v1187_v34 = vpack.c.bf16 %v1155_v27, %v1151_v26  ;;  %v982_v35 = vunpack.c.l.bf16 %v5263_v51  ;;  %v986_v36 = vunpack.c.l.bf16 %v5266_v52  ;;  %v1102_v37 = vunpack.c.l.bf16 %v5272_v57  ;;  %3833 = vperm.xlu0 %4587, %v3815_v42  }
  0x8c   : > { %v1153_v38 = vmul.f32 %v1105_v23, %v1033_v30  ;;  %v1157_v39 = vmul.f32 %v1109_v28, %v1037_v31  ;;  %v1106_v40 = vunpack.c.l.bf16 %v5275_v58  ;;  %v912_v41 = vunpack.c.l.bf16 %v5278_v59  ;;  %3838 = vperm.xlu1 %4588, %v3816_v47   ;;  %v3818_v59 = vld [vmem:[%s6386_s11 + $0x28] sm:$0xff] }
  0x8d   : > { %1281 = vmatprep.subr.bf16.mxu0 %v1187_v34  ;;  %v1030_v43 = vmul.f32 %v982_v35, %v910_v32  ;;  %v1034_v44 = vmul.f32 %v986_v36, %v914_v33  ;;  %v916_v45 = vunpack.c.l.bf16 %v5282_v0  ;;  %v984_v46 = vunpack.c.l.bf16 %v939_v1  ;;  %v3820_v0 = vld [vmem:[%s6386_s11 + $0x38] sm:$0xff]  ;;  %v4088_v1 = vld [vmem:[%s6388_s13] sm:$0x7] }
  0x8e   : > { %v1189_v48 = vpack.c.bf16 %v1157_v39, %v1153_v38  ;;  %v988_v49 = vunpack.c.l.bf16 %v941_v7  ;;  %v1104_v50 = vunpack.c.l.bf16 %v1059_v8  ;;  %v1108_v51 = vunpack.c.l.bf16 %v1061_v14  ;;  %v5375_v7 = vld [vmem:[%s5366_s28 + $0x38] sm:$0xff] }
  0x8f   : > { %v1150_v52 = vmul.f32 %v1102_v37, %v1030_v43  ;;  %v1154_v53 = vmul.f32 %v1106_v40, %v1034_v44  ;;  %v1032_v54 = vmul.f32 %v984_v46, %v912_v41  ;;  %3843 = vperm.xlu0 %4587, %v3817_v56   ;;  %v4675_v8 = vmov 0.0  }
  0x90   : > { %1354 = vmatprep.subr.bf16.mxu1 %v1189_v48  ;;  %v1036_v55 = vmul.f32 %v988_v49, %v916_v45  ;;  %3848 = vperm.xlu1 %4588, %v3818_v59   ;;  %3482 = vst [vmem:[#allocation2 + $0xa0] sm:$0xfc] %v4675_v8  ;;  %3483 = vst [vmem:[#allocation2 + $0xa8] sm:$0xfc] %v4675_v8  ;;  %v3467_v9 = vrot.slane %v5369_v5, 1  ;;  %v3466_v10 = vrot.slane %v5372_v6, 1 }
  0x91   : > { %v1186_v57 = vpack.c.bf16 %v1154_v53, %v1150_v52  ;;  %v1152_v58 = vmul.f32 %v1104_v50, %v1032_v54  ;;  %3484 = vst [vmem:[#allocation2 + $0xb0] sm:$0xfc] %v4675_v8  ;;  %3485 = vst [vmem:[#allocation2 + $0xb8] sm:$0xfc] %v4675_v8  ;;  %v3469_v11 = vrot.slane %v5375_v7, 1  ;;  %v3468_v13 = vrot.slane %v5385_v12, 1 }
  0x92   : > { %v1156_v60 = vmul.f32 %v1108_v51, %v1036_v55  ;;  %3475 = vst [vmem:[#allocation2 + $0xa8] ss:$-28 sps:$4 sm:$0x83] %v3467_v9   ;;  %3474 = vst [vmem:[#allocation2 + $0xa0] ss:$-28 sps:$4 sm:$0x83] %v3466_v10  }
  0x93   : > { %1282 = vmatpush1.bf16.msra.mxu0 %v1186_v57  ;;  %3853 = vperm.xlu0 %4587, %v3819_v63   ;;  %3477 = vst [vmem:[#allocation2 + $0xb8] ss:$-28 sps:$4 sm:$0x83] %v3469_v11   ;;  %3476 = vst [vmem:[#allocation2 + $0xb0] ss:$-28 sps:$4 sm:$0x83] %v3468_v13  }
  0x94   : > { %v1188_v62 = vpack.c.bf16 %v1156_v60, %v1152_v58  ;;  %3858 = vperm.xlu1 %4588, %v3820_v0  }
  0x96   : > { %1355 = vmatpush1.bf16.msra.mxu1 %v1188_v62  ;;  %4398 = vmatmul.mubr.msk.bf16.vlgmr.msra.gmra.mrb[0].mxu0 %vm1258_vm0, %v4589_v61 }
  0x97   : > { %1313 = vmatprep.mubr.bf16.mxu0 %v4674_v16  ;;  %4091 = vperm.xlu0 %4587, %v4088_v1  }
  0x99   : > { %4402 = vmatmul.mubr.msk.bf16.vlgmr.msra.gmra.mrb[0].mxu1 %vm1258_vm0, %v4589_v61 }
  0x9a   : > { %1386 = vmatprep.mubr.bf16.mxu1 %v4674_v16 }
  0x9e   : > { %4399 = vmatmul.mubr.msk.bf16.gmra.mrb[4].mxu0 %vm1258_vm0, %v4590_v2 }
  0x9f   : > { %1323 = vmatprep.mubr.bf16.mxu0 %v4674_v16 }
  0xa1   : > { %4403 = vmatmul.mubr.msk.bf16.gmra.mrb[4].mxu1 %vm1258_vm0, %v4590_v2 }
  0xa2   : > { %1396 = vmatprep.mubr.bf16.mxu1 %v4674_v16 }
  0xa6   : > { %4400 = vmatmul.mubr.msk.bf16.gmra.mrb[8].mxu0 %vm1258_vm0, %v4591_v3 }
  0xa7   : > { %1333 = vmatprep.mubr.bf16.mxu0 %v4674_v16 }
  0xa9   : > { %4404 = vmatmul.mubr.msk.bf16.gmra.mrb[8].mxu1 %vm1258_vm0, %v4591_v3 }
  0xaa   : > { %1406 = vmatprep.mubr.bf16.mxu1 %v4674_v16 }
  0xae   : > { %4401 = vmatmul.mubr.msk.bf16.gmra.mrb[12].mxu0 %vm1258_vm0, %v4592_v4 }
  0xaf   : > { %1520 = vmatprep.mubr.bf16.mxu0 %v4674_v16 }
  0xb1   : > { %4405 = vmatmul.mubr.msk.bf16.gmra.mrb[12].mxu1 %vm1258_vm0, %v4592_v4 }
  0xb2   : > { %1563 = vmatprep.mubr.bf16.mxu1 %v4674_v16 }
  0xdd   : > { %v1201_v14 = vpop.permute.xlu0 %1200 }
  0xde   : > { %v1211_v25 = vpop.permute.xlu1 %1210 }
  0xe1   : > { %v1206_v19 = vpop.permute.xlu0 %1205 }
  0xe2   : > { %v1216_v47 = vpop.permute.xlu1 %1215 }
  0xe5   : > { %v1221_v9 = vpop.permute.xlu0 %1220 }
 0x169   : > { %v1305_v15 = vpop.f32.mrb[0].mxu0 }
 0x16a   : > { %v1306_v17 = vadd.f32 %v1305_v15, %v1201_v14  ;;  %v1307_v18 = vpop.f32.mrb[1].mxu0 }
 0x16b   : > { %v1308_v20 = vadd.f32 %v1307_v18, %v1201_v14  ;;  %v1309_v21 = vpop.f32.mrb[2].mxu0 }
 0x16c   : > { %v1378_v22 = vpop.f32.mrb[0].mxu1  ;;  %v1310_v23 = vadd.f32 %v1309_v21, %v1206_v19  ;;  %v1311_v24 = vpop.f32.mrb[3].mxu0  ;;  %v1417_v29 = vmax.f32 %v1306_v17, 0.0 }
 0x16d   : > { %v1379_v26 = vadd.f32 %v1378_v22, %v1201_v14  ;;  %v1380_v27 = vpop.f32.mrb[1].mxu1  ;;  %v1312_v28 = vadd.f32 %v1311_v24, %v1206_v19  ;;  %v1418_v34 = vmax.f32 %v1308_v20, 0.0 }
 0x16e   : > { %v1381_v30 = vadd.f32 %v1380_v27, %v1201_v14  ;;  %v1421_v31 = vmax.f32 %v1310_v23, 0.0  ;;  %v1382_v32 = vpop.f32.mrb[2].mxu1 }
 0x16f   : > { %v1419_v33 = vmax.f32 %v1379_v26, 0.0  ;;  %v1383_v35 = vadd.f32 %v1382_v32, %v1206_v19  ;;  %v1422_v36 = vmax.f32 %v1312_v28, 0.0  ;;  %v1384_v37 = vpop.f32.mrb[3].mxu1 }
 0x170   : > { %v1451_v38 = vpack.c.bf16 %v1421_v31, %v1417_v29  ;;  %v1385_v39 = vadd.f32 %v1384_v37, %v1206_v19  ;;  %v1420_v43 = vmax.f32 %v1381_v30, 0.0  ;;  %v1226_v19 = vpop.permute.xlu1 %1225 }
 0x171   : > { %v1423_v40 = vmax.f32 %v1383_v35, 0.0  ;;  %v1452_v41 = vpack.c.bf16 %v1422_v36, %v1418_v34  ;;  %v1315_v42 = vpop.f32.mrb[4].mxu0 }
 0x172   : > { %v1424_v44 = vmax.f32 %v1385_v39, 0.0  ;;  %v1316_v45 = vadd.f32 %v1315_v42, %v1211_v25  ;;  %v1317_v46 = vpop.f32.mrb[5].mxu0 }
 0x173   : > { %v1453_v48 = vpack.c.bf16 %v1423_v40, %v1419_v33  ;;  %v1318_v49 = vadd.f32 %v1317_v46, %v1211_v25  ;;  %v1319_v50 = vpop.f32.mrb[6].mxu0  ;;  %1488 = vmatprep.subr.bf16.mxu0 %v1452_v41  ;;  %v1231_v40 = vpop.permute.xlu0 %1230 }
 0x174   : > { %v1454_v51 = vpack.c.bf16 %v1424_v44, %v1420_v43  ;;  %v1388_v52 = vpop.f32.mrb[4].mxu1  ;;  %v1320_v53 = vadd.f32 %v1319_v50, %v1216_v47  ;;  %v1321_v54 = vpop.f32.mrb[7].mxu0  ;;  %1489 = vmatpush1.bf16.msra.mxu0 %v1451_v38  ;;  %v1425_v58 = vmax.f32 %v1316_v45, 0.0 }
 0x175   : > { %v1389_v55 = vadd.f32 %v1388_v52, %v1211_v25  ;;  %v1390_v56 = vpop.f32.mrb[5].mxu1  ;;  %v1322_v57 = vadd.f32 %v1321_v54, %v1216_v47  ;;  %v1426_v63 = vmax.f32 %v1318_v49, 0.0  ;;  %v1236_v49 = vpop.permute.xlu1 %1235 }
 0x176   : > { %v1391_v59 = vadd.f32 %v1390_v56, %v1211_v25  ;;  %v1429_v60 = vmax.f32 %v1320_v53, 0.0  ;;  %v1392_v61 = vpop.f32.mrb[6].mxu1  ;;  %1531 = vmatprep.subr.bf16.mxu1 %v1454_v51 }
 0x177   : > { %v1427_v62 = vmax.f32 %v1389_v55, 0.0  ;;  %v1393_v0 = vadd.f32 %v1392_v61, %v1216_v47  ;;  %v1430_v1 = vmax.f32 %v1322_v57, 0.0  ;;  %v1394_v2 = vpop.f32.mrb[7].mxu1  ;;  %1532 = vmatpush1.bf16.msra.mxu1 %v1453_v48 }
 0x178   : > { %v1455_v3 = vpack.c.bf16 %v1429_v60, %v1425_v58  ;;  %v1395_v4 = vadd.f32 %v1394_v2, %v1216_v47  ;;  %v1428_v14 = vmax.f32 %v1391_v59, 0.0 }
 0x179   : > { %v1431_v10 = vmax.f32 %v1393_v0, 0.0  ;;  %v1456_v11 = vpack.c.bf16 %v1430_v1, %v1426_v63  ;;  %v1325_v13 = vpop.f32.mrb[8].mxu0 }
 0x17a   : > { %v1432_v15 = vmax.f32 %v1395_v4, 0.0  ;;  %v1326_v17 = vadd.f32 %v1325_v13, %v1221_v9  ;;  %v1327_v18 = vpop.f32.mrb[9].mxu0 }
 0x17b   : > { %v1457_v20 = vpack.c.bf16 %v1431_v10, %v1427_v62  ;;  %v1328_v21 = vadd.f32 %v1327_v18, %v1221_v9  ;;  %v1329_v22 = vpop.f32.mrb[10].mxu0  ;;  %1490 = vmatprep.subr.bf16.mxu0 %v1456_v11  ;;  %v4593_v18 = vld [vmem:[%s6381_s6] sm:$0xff]  }
 0x17c   : > { %v1458_v23 = vpack.c.bf16 %v1432_v15, %v1428_v14  ;;  %v1398_v24 = vpop.f32.mrb[8].mxu1  ;;  %v1330_v25 = vadd.f32 %v1329_v22, %v1226_v19  ;;  %v1331_v26 = vpop.f32.mrb[11].mxu0  ;;  %1491 = vmatpush1.bf16.msra.mxu0 %v1455_v3  ;;  %v1433_v30 = vmax.f32 %v1326_v17, 0.0 }
 0x17d   : > { %v1399_v27 = vadd.f32 %v1398_v24, %v1221_v9  ;;  %v1400_v28 = vpop.f32.mrb[9].mxu1  ;;  %v1332_v29 = vadd.f32 %v1331_v26, %v1226_v19  ;;  %v1434_v34 = vmax.f32 %v1328_v21, 0.0 }
 0x17e   : > { %v1401_v31 = vadd.f32 %v1400_v28, %v1221_v9  ;;  %v1437_v32 = vmax.f32 %v1330_v25, 0.0  ;;  %v1402_v33 = vpop.f32.mrb[10].mxu1  ;;  %1533 = vmatprep.subr.bf16.mxu1 %v1458_v23  ;;  %v796_v23 = vld [vmem:[%s5366_s28 + $0x18] sm:$0xff] }
 0x17f   : > { %v1403_v35 = vadd.f32 %v1402_v33, %v1226_v19  ;;  %v1438_v36 = vmax.f32 %v1332_v29, 0.0  ;;  %v1404_v37 = vpop.f32.mrb[11].mxu1  ;;  %1534 = vmatpush1.bf16.msra.mxu1 %v1457_v20  ;;  %v1435_v41 = vmax.f32 %v1399_v27, 0.0  ;;  %v795_v20 = vld [vmem:[%s5366_s28 + $0x10] sm:$0xff]  ;;  %v804_v27 = vand.u32 2147483647, %v796_v23 }
 0x180   : > { %v1459_v38 = vpack.c.bf16 %v1437_v32, %v1433_v30  ;;  %v1405_v39 = vadd.f32 %v1404_v37, %v1226_v19  ;;  %v1436_v45 = vmax.f32 %v1401_v31, 0.0  ;;  %v803_v24 = vand.u32 2147483647, %v795_v20 }
 0x181   : > { %v1439_v42 = vmax.f32 %v1403_v35, 0.0  ;;  %v1460_v43 = vpack.c.bf16 %v1438_v36, %v1434_v34  ;;  %v1335_v44 = vpop.f32.mrb[12].mxu0  ;;  %v827_v31 = vsel %vm805_vm1, %v804_v27, -inf }
 0x182   : > { %v1440_v46 = vmax.f32 %v1405_v39, 0.0  ;;  %v1336_v47 = vadd.f32 %v1335_v44, %v1231_v40  ;;  %v1337_v48 = vpop.f32.mrb[13].mxu0  ;;  %v820_v28 = vsel %vm805_vm1, %v803_v24, -inf  ;;  %v828_v35 = vrot.slane %v827_v31, 4 }
 0x183   : > { %v1461_v50 = vpack.c.bf16 %v1439_v42, %v1435_v41  ;;  %v1338_v51 = vadd.f32 %v1337_v48, %v1231_v40  ;;  %v1339_v52 = vpop.f32.mrb[14].mxu0  ;;  %1492 = vmatprep.subr.bf16.mxu0 %v1460_v43  ;;  %v821_v32 = vrot.slane %v820_v28, 4 }
 0x184   : > { %v1462_v53 = vpack.c.bf16 %v1440_v46, %v1436_v45  ;;  %v1408_v54 = vpop.f32.mrb[12].mxu1  ;;  %v1340_v55 = vadd.f32 %v1339_v52, %v1236_v49  ;;  %v1341_v56 = vpop.f32.mrb[15].mxu0  ;;  %1493 = vmatpush1.bf16.msra.mxu0 %v1459_v38  ;;  %v1441_v60 = vmax.f32 %v1336_v47, 0.0  ;;  %v829_v39 = vmax.f32 %v827_v31, %v828_v35 }
 0x185   : > { %v1409_v57 = vadd.f32 %v1408_v54, %v1231_v40  ;;  %v1410_v58 = vpop.f32.mrb[13].mxu1  ;;  %v1342_v59 = vadd.f32 %v1341_v56, %v1236_v49  ;;  %v1442_v0 = vmax.f32 %v1338_v51, 0.0  ;;  %v822_v36 = vmax.f32 %v820_v28, %v821_v32 }
 0x186   : > { %v1411_v61 = vadd.f32 %v1410_v58, %v1231_v40  ;;  %v1445_v62 = vmax.f32 %v1340_v55, 0.0  ;;  %v1412_v63 = vpop.f32.mrb[14].mxu1  ;;  %1535 = vmatprep.subr.bf16.mxu1 %v1462_v53  ;;  %v830_v43 = vrot.slane %v829_v39, 2  ;;  %v1472_v53 = vpop.permute.xlu0 %1471  ;;  %v4676_v58 = vmov 1966171168  }
 0x187   : > { %v1413_v1 = vadd.f32 %v1412_v63, %v1236_v49  ;;  %v1446_v2 = vmax.f32 %v1342_v59, 0.0  ;;  %v1414_v3 = vpop.f32.mrb[15].mxu1  ;;  %1536 = vmatpush1.bf16.msra.mxu1 %v1461_v50  ;;  %v1443_v10 = vmax.f32 %v1409_v57, 0.0  ;;  %v823_v40 = vrot.slane %v822_v36, 2 }
 0x188   : > { %v1463_v4 = vpack.c.bf16 %v1445_v62, %v1441_v60  ;;  %v1415_v9 = vadd.f32 %v1414_v3, %v1236_v49  ;;  %v1444_v14 = vmax.f32 %v1411_v61, 0.0  ;;  %v831_v47 = vmax.f32 %v829_v39, %v830_v43  ;;  %v1477_v61 = vpop.permute.xlu1 %1476 }
 0x189   : > { %v1447_v11 = vmax.f32 %v1413_v1, 0.0  ;;  %v1464_v13 = vpack.c.bf16 %v1446_v2, %v1442_v0  ;;  %v824_v44 = vmax.f32 %v822_v36, %v823_v40  ;;  %v4228_v59 = vunpack.c.l.s4 %v4676_v58 }
 0x18a   : > { %v1448_v15 = vmax.f32 %v1415_v9, 0.0  ;;  %v832_v51 = vrot.slane %v831_v47, 1  ;;  %v4230_v60 = vlaneseq }
 0x18b   : > { %v1465_v17 = vpack.c.bf16 %v1447_v11, %v1443_v10  ;;  %1494 = vmatprep.subr.bf16.mxu0 %v1464_v13  ;;  %v825_v48 = vrot.slane %v824_v44, 1 }
 0x18c   : > { %v1466_v19 = vpack.c.bf16 %v1448_v15, %v1444_v14  ;;  %1495 = vmatpush1.bf16.msra.mxu0 %v1463_v4  ;;  %v833_v55 = vmax.f32 %v831_v47, %v832_v51  ;;  %vm5467_vm8 = vcmp.lt.s32.totalorder %v4230_v60, 512 }
 0x18d   : > { %4409 = vmatprep.subr.msk.mxu0 %vm805_vm1, %v5369_v5  ;;  %v1582_v5 = vld [vmem:[%s6389_s14] sm:$0xff]  ;;  %v826_v52 = vmax.f32 %v824_v44, %v825_v48 }
 0x18e   : > { %1537 = vmatprep.subr.bf16.mxu1 %v1466_v19  ;;  %vm837_vm7 = vcmp.lt.f32.partialorder %v833_v55, 1.5  ;;  %v4229_v19 = vunpack.c.0.s8 %v4228_v59 }
 0x18f   : > { %1538 = vmatpush1.bf16.msra.mxu1 %v1465_v17  ;;  %4407 = vmatmul.mubr.msk.bf16.vlgmr.msra.gmra.mrb[16].mxu0 %vm1484_vm2, %v4593_v18  ;;  %vm836_vm6 = vcmp.lt.f32.partialorder %v826_v52, 1.5  ;;  %v5440_v27 = vsel %vm837_vm7, 1.0, %v4675_v8 }
 0x190   : > { %4410 = vmatpush1.msk.msra.mxu0 %vm805_vm1, %v5372_v6  ;;  %4413 = vmatprep.subr.msk.mxu1 %vm805_vm1, %v5375_v7  ;;  %v1583_v6 = vld [vmem:[%s6389_s14 + $0x8] sm:$0xf]  ;;  %v793_v7 = vld [vmem:[%s5366_s28] sm:$0xff]  ;;  %v5435_v23 = vsel %vm836_vm6, 1.0, %v4675_v8 }
 0x191   : > { %1667 = vmatprep.mubr.f32.mxu0 %v4675_v8  ;;  %v801_v21 = vand.u32 2147483647, %v793_v7 }
 0x192   : > { %4408 = vmatmul.mubr.msk.bf16.vlgmr.msra.gmra.mrb[16].mxu1 %vm1484_vm2, %v4593_v18 }
 0x193   : > { %4414 = vmatpush1.msk.msra.mxu1 %vm805_vm1, %v5385_v12  ;;  %1744 = vmatprep.mubr.f32.mxu1 %v4675_v8  ;;  %v794_v12 = vld [vmem:[%s5366_s28 + $0x8] sm:$0xff]  ;;  %v806_v25 = vsel %vm805_vm1, %v801_v21, -inf }
 0x194   : > { %v802_v22 = vand.u32 2147483647, %v794_v12  ;;  %v807_v29 = vrot.slane %v806_v25, 4 }
 0x196   : > { %v813_v26 = vsel %vm805_vm1, %v802_v22, -inf  ;;  %v808_v33 = vmax.f32 %v806_v25, %v807_v29 }
 0x197   : > { %4411 = vmatmul.mubr.msk.f32.vlgmr.msra.gmra.mrb[20].mxu0 %vm1584_vm3, %v1582_v5  ;;  %v814_v30 = vrot.slane %v813_v26, 4 }
 0x198   : > { %1673 = vmatprep.mubr.f32.mxu0 %v4675_v8  ;;  %v809_v37 = vrot.slane %v808_v33, 2 }
 0x199   : > { %v815_v34 = vmax.f32 %v813_v26, %v814_v30 }
 0x19a   : > { %4415 = vmatmul.mubr.msk.f32.vlgmr.msra.gmra.mrb[20].mxu1 %vm1584_vm3, %v1582_v5  ;;  %v810_v41 = vmax.f32 %v808_v33, %v809_v37  ;;  %v4231_v5 = vshrl.u32 %v4230_v60, 7 }
 0x19b   : > { %1750 = vmatprep.mubr.f32.mxu1 %v4675_v8  ;;  %4412 = vmatmul.mubr.msk.f32.gmra.mrb[22].mxu0 %vm1584_vm3, %v1583_v6  ;;  %v816_v38 = vrot.slane %v815_v34, 2 }
 0x19c   : > { %3643 = vmatprep.mubr.bf16.mxu0 %v4674_v16  ;;  %v811_v45 = vrot.slane %v810_v41, 1  ;;  %v4232_v29 = vsub.s32 %v4229_v19, %v4231_v5  ;;  %v4681_v5 = vmov 920167782  }
 0x19d   : > { %v817_v42 = vmax.f32 %v815_v34, %v816_v38 }
 0x19e   : > { %4416 = vmatmul.mubr.msk.f32.gmra.mrb[22].mxu1 %vm1584_vm3, %v1583_v6  ;;  %v812_v49 = vmax.f32 %v810_v41, %v811_v45 }
 0x19f   : > { %3716 = vmatprep.mubr.bf16.mxu1 %v4674_v16  ;;  %v818_v46 = vrot.slane %v817_v42, 1 }
 0x1a0   : > { %vm834_vm4 = vcmp.lt.f32.partialorder %v812_v49, 1.5 }
 0x1a1   : > { %v819_v50 = vmax.f32 %v817_v42, %v818_v46  ;;  %v5422_v2 = vsel %vm834_vm4, 1.0, %v4675_v8 }
 0x1a3   : > { %vm835_vm5 = vcmp.lt.f32.partialorder %v819_v50, 1.5 }
 0x1a4   : > { %v5425_v4 = vsel %vm835_vm5, 1.0, %v4675_v8 }
 0x262   : > { %v1522_v54 = vpop.f32.mrb[16].mxu0 }
 0x263   : > { %v1523_v56 = vadd.f32 %v1522_v54, %v1472_v53  ;;  %v1524_v57 = vpop.f32.mrb[17].mxu0 }
 0x264   : > { %v1525_v62 = vadd.f32 %v1524_v57, %v1472_v53  ;;  %v1526_v63 = vpop.f32.mrb[18].mxu0 }
 0x265   : > { %v1574_v0 = vmax.f32 %v1523_v56, 0.0  ;;  %v1565_v1 = vpop.f32.mrb[16].mxu1  ;;  %v1527_v3 = vadd.f32 %v1526_v63, %v1477_v61  ;;  %v1528_v9 = vpop.f32.mrb[19].mxu0 }
 0x266   : > { %v1566_v10 = vadd.f32 %v1565_v1, %v1472_v53  ;;  %v1575_v11 = vmax.f32 %v1525_v62, 0.0  ;;  %v1567_v13 = vpop.f32.mrb[17].mxu1  ;;  %v1529_v14 = vadd.f32 %v1528_v9, %v1477_v61  ;;  %v4677_v9 = vmov 683565275  }
 0x267   : > { %3458 = vst [vmem:[#allocation2 + $0x60] sm:$0xff] %v1574_v0  ;;  %v1568_v15 = vadd.f32 %v1567_v13, %v1472_v53  ;;  %v1578_v17 = vmax.f32 %v1527_v3, 0.0  ;;  %v1569_v18 = vpop.f32.mrb[18].mxu1  ;;  %v4678_v13 = vmov 2475754826  }
 0x268   : > { %v1576_v6 = vmax.f32 %v1566_v10, 0.0  ;;  %3459 = vst [vmem:[#allocation2 + $0x68] sm:$0xff] %v1575_v11  ;;  %v1570_v7 = vadd.f32 %v1569_v18, %v1477_v61  ;;  %v1579_v12 = vmax.f32 %v1529_v14, 0.0  ;;  %v1571_v20 = vpop.f32.mrb[19].mxu1  ;;  %v4680_v18 = vmov 2102212464  }
 0x269   : > { %v1577_v21 = vmax.f32 %v1568_v15, 0.0  ;;  %3462 = vst [vmem:[#allocation2 + $0x80] sm:$0x7f] %v1578_v17  ;;  %v4217_v22 = vmul.f32 %v5422_v2, %v1578_v17  ;;  %v1572_v24 = vadd.f32 %v1571_v20, %v1477_v61  ;;  %v4679_v15 = vmov 2131351028  }
 0x26a   : > { %3460 = vst [vmem:[#allocation2 + $0x70] sm:$0xff] %v1576_v6  ;;  %v1580_v25 = vmax.f32 %v1570_v7, 0.0  ;;  %3463 = vst [vmem:[#allocation2 + $0x88] sm:$0x7f] %v1579_v12  ;;  %v4218_v26 = vmul.f32 %v5425_v4, %v1579_v12  ;;  %v5442_v28 = vpop.f32.mrb[20].mxu0 }
 0x26b   : > { %3461 = vst [vmem:[#allocation2 + $0x78] sm:$0xff] %v1577_v21  ;;  %v1581_v30 = vmax.f32 %v1572_v24, 0.0  ;;  %v1757_v31 = vand.u32 2147483647, %v5442_v28  ;;  %v1760_v32 = vand.u32 2139095040, %v5442_v28  ;;  %v5447_v33 = vpop.f32.mrb[21].mxu0 }
 0x26c   : > { %3464 = vst [vmem:[#allocation2 + $0x90] sm:$0x7f] %v1580_v25  ;;  %v4219_v34 = vmul.f32 %v5435_v23, %v1580_v25  ;;  %v4225_v35 = vcombine.high %v4217_v22, %v4218_v26  ;;  %v1864_v55 = vand.u32 2139095040, %v5447_v33  ;;  %v4682_v24 = vmov 1326507024  }
 0x26d   : > { %3465 = vst [vmem:[#allocation2 + $0x98] sm:$0x7f] %v1581_v30  ;;  %v4220_v8 = vmul.f32 %v5440_v27, %v1581_v30  ;;  %v1761_v36 = vshrl.u32 %v1760_v32, 23  ;;  %v1764_v37 = vand.u32 8388607, %v1757_v31  ;;  %v5453_v38 = vpop.f32.mrb[20].mxu1 }
 0x26e   : > { %v1965_v39 = vand.u32 2147483647, %v5453_v38  ;;  %v1968_v40 = vand.u32 2139095040, %v5453_v38  ;;  %v5457_v41 = vpop.f32.mrb[21].mxu1  ;;  %v5459_v42 = vpop.f32.mrb[22].mxu0  ;;  %v4233_v43 = vrot.slane %v4225_v35, %v4232_v29  ;;  %v1865_v59 = vshrl.u32 %v1864_v55, 23 }
 0x26f   : > { %v4226_v44 = vcombine.high %v4219_v34, %v4220_v8  ;;  %v4417_v45 = vadd.s32 4294967169, %v1761_v36  ;;  %v5464_v46 = vpop.f32.mrb[23].mxu0  ;;  %v1765_v52 = vor.u32 8388608, %v1764_v37  ;;  %vm1759_vm7 = vcmp.lt.s32.totalorder %v5442_v28, 0 }
 0x270   : > { %v1969_v47 = vshrl.u32 %v1968_v40, 23  ;;  %v1972_v54 = vand.u32 8388607, %v1965_v39  ;;  %v4421_v11 = vadd.s32 4294967169, %v1865_v59 }
 0x271   : > { %v4240_v49 = vrot.slane %v4226_v44, %v4232_v29  ;;  %v1767_v50 = vadd.s32 1, %v4417_v45  ;;  %v5471_v51 = vpop.f32.mrb[22].mxu1  ;;  %v5481_v63 = vshll.u32 %v1765_v52, 8 }
 0x272   : > { %v4425_v53 = vadd.s32 4294967169, %v1969_v47  ;;  %v1973_v0 = vor.u32 8388608, %v1972_v54  ;;  %v5502_v48 = vpop.f32.mrb[23].mxu1 }
 0x273   : > { %v4241_v56 = vcombine.high %v4233_v43, %v4240_v49  ;;  %vm1768_vm9 = vcmp.gt.s32.totalorder %v1767_v50, 0 }
 0x274   : > { %v1769_v57 = vsel %vm1768_vm9, %v1767_v50, 0  ;;  %v1975_v58 = vadd.s32 1, %v4425_v53 }
 0x275   : > { %v4248_v60 = vrot.slane %v4241_v56, %v4232_v29  ;;  %v1770_v61 = vshrl.u32 %v1769_v57, 5  ;;  %v1771_v62 = vand.u32 31, %v1769_v57  ;;  %v5509_v56 = vshll.u32 %v1973_v0, 8 }
 0x276   : > { %vm1976_vm10 = vcmp.gt.s32.totalorder %v1975_v58, 0  ;;  %v1861_v57 = vand.u32 2147483647, %v5447_v33 }
 0x277   : > { %v4249_v1 = vcombine.high %v4248_v60, %v4248_v60  ;;  %v1772_v3 = vsub.s32 32, %v1771_v62  ;;  %v1774_v10 = vshll.u32 %v4677_v9, %v1771_v62  ;;  %v1777_v14 = vshll.u32 %v4678_v13, %v1771_v62 }
 0x278   : > { %v1780_v17 = vshll.u32 %v4679_v15, %v1771_v62  ;;  %v1783_v19 = vshll.u32 %v4680_v18, %v1771_v62  ;;  %v1786_v6 = vshll.u32 %v4681_v5, %v1771_v62  ;;  %vm1789_vm11 = vcmp.lt.s32.totalorder %v1770_v61, 1 }
 0x279   : > { %4511 = vst.msk [vmem:[%s5479_s24 + $0x3] ss:$4 sm:$0xf] %vm5467_vm8, %v4249_v1  ;;  %v1775_v7 = vshrl.u32 %v4678_v13, %v1772_v3  ;;  %v1778_v12 = vshrl.u32 %v4679_v15, %v1772_v3  ;;  %v1781_v20 = vshrl.u32 %v4680_v18, %v1772_v3  ;;  %v1773_v21 = vshrl.u32 %v4677_v9, %v1772_v3 }
 0x27a   : > { %v1784_v22 = vshrl.u32 %v4681_v5, %v1772_v3  ;;  %v1787_v25 = vshrl.u32 %v4682_v24, %v1772_v3  ;;  %vm1790_vm12 = vcmp.lt.s32.totalorder %v1770_v61, 2  ;;  %vm1791_vm13 = vcmp.lt.s32.totalorder %v1770_v61, 3 }
 0x27b   : > { %v1776_v26 = vor.u32 %v1775_v7, %v1774_v10  ;;  %v1779_v29 = vor.u32 %v1778_v12, %v1777_v14  ;;  %v1782_v30 = vor.u32 %v1781_v20, %v1780_v17  ;;  %vm1792_vm14 = vcmp.lt.s32.totalorder %v1770_v61, 4 }
 0x27c   : > { %v1785_v32 = vor.u32 %v1784_v22, %v1783_v19  ;;  %v1788_v34 = vor.u32 %v1787_v25, %v1786_v6  ;;  %v1977_v35 = vsel %vm1976_vm10, %v1975_v58, 0  ;;  %v1871_v10 = vadd.s32 1, %v4421_v11 }
 0x27d   : > { %v1793_v8 = vsel %vm1789_vm11, %v1773_v21, %v1776_v26  ;;  %v1794_v36 = vsel %vm1792_vm14, %v1782_v30, 2102212464  ;;  %v1797_v37 = vsel %vm1789_vm11, %v1776_v26, %v1779_v29  ;;  %v1801_v40 = vsel %vm1789_vm11, %v1779_v29, %v1782_v30 }
 0x27e   : > { %v1795_v43 = vsel %vm1791_vm13, %v1779_v29, %v1794_v36  ;;  %v1798_v44 = vsel %vm1792_vm14, %v1785_v32, 920167782  ;;  %v1802_v45 = vsel %vm1792_vm14, %v1788_v34, 1326507024  ;;  %v1978_v47 = vshrl.u32 %v1977_v35, 5 }
 0x27f   : > { %v1796_v49 = vsel %vm1790_vm12, %v1793_v8, %v1795_v43  ;;  %v1799_v50 = vsel %vm1791_vm13, %v1782_v30, %v1798_v44  ;;  %v1803_v52 = vsel %vm1791_vm13, %v1785_v32, %v1802_v45  ;;  %v1979_v53 = vand.u32 31, %v1977_v35 }
 0x280   : > { %v1800_v54 = vsel %vm1790_vm12, %v1797_v37, %v1799_v50  ;;  %v1804_v55 = vsel %vm1790_vm12, %v1801_v40, %v1803_v52  ;;  %v1812_v1 = vmul.u32 %v5481_v63, %v1796_v49  ;;  %vm1997_vm15 = vcmp.lt.s32.totalorder %v1978_v47, 1 }
 0x281   : > { %v5513_v58 = vmul.u32.u64.low %v5481_v63, %v1804_v55  ;;  %v5514_v59 = vmul.u32.u64.high %v5481_v63, %v1804_v55, %v5513_v58  ;;  %v5517_v60 = vmul.u32.u64.low %v5481_v63, %v1800_v54  ;;  %v5518_v62 = vmul.u32.u64.high %v5481_v63, %v1800_v54, %v5517_v60 }
 0x282   : > { %v1980_v3 = vsub.s32 32, %v1979_v53  ;;  %v1982_v61 = vshll.u32 %v4677_v9, %v1979_v53  ;;  %v1985_v0 = vshll.u32 %v4678_v13, %v1979_v53  ;;  %v1988_v14 = vshll.u32 %v4679_v15, %v1979_v53 }
 0x283   : > { %v1991_v17 = vshll.u32 %v4680_v18, %v1979_v53  ;;  %v1994_v12 = vshll.u32 %v4681_v5, %v1979_v53  ;;  %vm1814_vm0 = vc.u32 %v5514_v59, %v5517_v60  ;;  %v1815_v63 = vadd.s32 1, %v5518_v62 }
 0x284   : > { %v1983_v19 = vshrl.u32 %v4678_v13, %v1980_v3  ;;  %v1986_v6 = vshrl.u32 %v4679_v15, %v1980_v3  ;;  %v1989_v7 = vshrl.u32 %v4680_v18, %v1980_v3  ;;  %v1992_v11 = vshrl.u32 %v4681_v5, %v1980_v3 }
 0x285   : > { %vm1998_vm1 = vcmp.lt.s32.totalorder %v1978_v47, 2  ;;  %v1995_v25 = vshrl.u32 %v4682_v24, %v1980_v3  ;;  %v1816_v26 = vsel %vm1814_vm0, %v1815_v63, %v5518_v62  ;;  %v1981_v29 = vshrl.u32 %v4677_v9, %v1980_v3 }
 0x286   : > { %v1984_v20 = vor.u32 %v1983_v19, %v1982_v61  ;;  %v1987_v21 = vor.u32 %v1986_v6, %v1985_v0  ;;  %v1990_v22 = vor.u32 %v1989_v7, %v1988_v14  ;;  %v1993_v30 = vor.u32 %v1992_v11, %v1991_v17 }
 0x287   : > { %vm2000_vm3 = vcmp.lt.s32.totalorder %v1978_v47, 4  ;;  %v1817_v32 = vadd.s32 %v1816_v26, %v1812_v1  ;;  %v1996_v34 = vor.u32 %v1995_v25, %v1994_v12  ;;  %vm1872_vm4 = vcmp.gt.s32.totalorder %v1871_v10, 0 }
 0x288   : > { %v2002_v35 = vsel %vm2000_vm3, %v1990_v22, 2102212464  ;;  %vm1999_vm5 = vcmp.lt.s32.totalorder %v1978_v47, 3  ;;  %v2005_v8 = vsel %vm1997_vm15, %v1984_v20, %v1987_v21  ;;  %v2006_v36 = vsel %vm2000_vm3, %v1993_v30, 920167782 }
 0x289   : > { %v2009_v37 = vsel %vm1997_vm15, %v1987_v21, %v1990_v22  ;;  %v1818_v40 = vadd.s32 536870912, %v1817_v32  ;;  %v2001_v43 = vsel %vm1997_vm15, %v1981_v29, %v1984_v20  ;;  %v2007_v44 = vsel %vm1999_vm5, %v1990_v22, %v2006_v36 }
 0x28a   : > { %v2010_v45 = vsel %vm2000_vm3, %v1996_v34, 1326507024  ;;  %v2003_v49 = vsel %vm1999_vm5, %v1987_v21, %v2002_v35  ;;  %v2008_v50 = vsel %vm1998_vm1, %v2005_v8, %v2007_v44  ;;  %v1873_v53 = vsel %vm1872_vm4, %v1871_v10, 0 }
 0x28b   : > { %v2011_v52 = vsel %vm1999_vm5, %v1993_v30, %v2010_v45  ;;  %v1819_v54 = vshrl.u32 %v1818_v40, 30  ;;  %v5543_v58 = vmul.u32.u64.low %v5509_v56, %v2008_v50  ;;  %v5544_v62 = vmul.u32.u64.high %v5509_v56, %v2008_v50, %v5543_v58 }
 0x28c   : > { %v2012_v55 = vsel %vm1998_vm1, %v2009_v37, %v2011_v52  ;;  %v2004_v0 = vsel %vm1998_vm1, %v2001_v43, %v2003_v49  ;;  %v1868_v14 = vand.u32 8388607, %v1861_v57  ;;  %v1875_v17 = vand.u32 31, %v1873_v53 }
 0x28d   : > { %v5547_v1 = vmul.u32.u64.low %v5509_v56, %v2012_v55  ;;  %v5548_v3 = vmul.u32.u64.high %v5509_v56, %v2012_v55, %v5547_v1  ;;  %v1820_v61 = vshll.u32 %v1819_v54, 30  ;;  %v2023_v10 = vadd.s32 1, %v5544_v62 }
 0x28e   : > { %v2020_v6 = vmul.u32 %v5509_v56, %v2004_v0  ;;  %v1869_v63 = vor.u32 8388608, %v1868_v14  ;;  %v1876_v11 = vsub.s32 32, %v1875_v17  ;;  %v1843_v20 = vsub.s32 4, %v1819_v54 }
 0x28f   : > { %v1821_v19 = vsub.s32 %v1817_v32, %v1820_v61  ;;  %vm2022_vm6 = vc.u32 %v5548_v3, %v5543_v58  ;;  %vm5560_vm8 = vcmp.le.f32.partialorder %v1757_v31, 0.7853982  ;;  %v1813_v56 = vadd.s32 %v5517_v60, %v5514_v59 }
 0x290   : > { %v2024_v12 = vsel %vm2022_vm6, %v2023_v10, %v5544_v62  ;;  %v2069_v26 = vand.u32 2147483647, %v5457_v41  ;;  %v5567_v30 = vshrl.u32 %v1873_v53, 5  ;;  %v1879_v32 = vshrl.u32 %v4678_v13, %v1876_v11 }
 0x291   : > { %v1823_v7 = vsub.s32 0, %v1821_v19  ;;  %v2025_v21 = vadd.s32 %v2024_v12, %v2020_v6  ;;  %v5570_v34 = vshll.u32 %v1869_v63, 8  ;;  %v1844_v35 = vsel %vm1759_vm7, %v1843_v20, %v1819_v54 }
 0x292   : > { %v1885_v8 = vshrl.u32 %v4680_v18, %v1876_v11  ;;  %v2072_v36 = vand.u32 2139095040, %v5457_v41  ;;  %v1878_v59 = vshll.u32 %v4677_v9, %v1875_v17  ;;  %v1882_v60 = vshrl.u32 %v4679_v15, %v1876_v11 }
 0x293   : > { %v4418_v47 = vmin.u32 %v1823_v7, %v1821_v19  ;;  %v2026_v25 = vadd.s32 536870912, %v2025_v21  ;;  %v1888_v40 = vshrl.u32 %v4681_v5, %v1876_v11  ;;  %v1881_v44 = vshll.u32 %v4678_v13, %v1875_v17 }
 0x294   : > { %v1884_v45 = vshll.u32 %v4679_v15, %v1875_v17  ;;  %v1887_v49 = vshll.u32 %v4680_v18, %v1875_v17  ;;  %v5584_v50 = vsel %vm5560_vm8, 0, %v1844_v35  ;;  %v2021_v52 = vadd.s32 %v5543_v58, %v5548_v3 }
 0x295   : > { %v1825_v29 = vclz %v4418_v47  ;;  %v2027_v31 = vshrl.u32 %v2026_v25, 30  ;;  %v1880_v53 = vor.u32 %v1879_v32, %v1878_v59  ;;  %v1891_v1 = vshrl.u32 %v4682_v24, %v1876_v11 }
 0x296   : > { %v1886_v62 = vor.u32 %v1885_v8, %v1884_v45  ;;  %vm1967_vm10 = vcmp.lt.s32.totalorder %v5453_v38, 0  ;;  %v1883_v14 = vor.u32 %v1882_v60, %v1881_v44  ;;  %v1889_v10 = vor.u32 %v1888_v40, %v1887_v49 }
 0x297   : > { %v4419_v37 = vadd.s32 4294967294, %v1825_v29  ;;  %v2028_v43 = vshll.u32 %v2027_v31, 30  ;;  %v1877_v7 = vshrl.u32 %v4677_v9, %v1876_v11  ;;  %v1890_v12 = vshll.u32 %v4681_v5, %v1875_v17 }
 0x298   : > { %vm1893_vm11 = vcmp.lt.s32.totalorder %v5567_v30, 1  ;;  %vm1896_vm12 = vcmp.lt.s32.totalorder %v5567_v30, 4  ;;  %vm5598_vm13 = vcmp.le.f32.partialorder %v1965_v39, 0.7853982  ;;  %vm1894_vm14 = vcmp.lt.s32.totalorder %v5567_v30, 2 }
 0x299   : > { %vm4420_vm9 = vcmp.lt.s32.totalorder %v4419_v37, 0  ;;  %v5587_v55 = vsub.s32 %v2025_v21, %v2028_v43  ;;  %v1892_v47 = vor.u32 %v1891_v1, %v1890_v12  ;;  %v1898_v17 = vsel %vm1896_vm12, %v1886_v62, 2102212464 }
 0x29a   : > { %v1828_v54 = vsel %vm4420_vm9, 0, %v4419_v37  ;;  %v1902_v25 = vsel %vm1896_vm12, %v1889_v10, 920167782  ;;  %v2051_v29 = vsub.s32 4, %v2027_v31  ;;  %vm1895_vm15 = vcmp.lt.s32.totalorder %v5567_v30, 3 }
 0x29b   : > { %v1829_v61 = vsub.s32 32, %v1828_v54  ;;  %v1833_v0 = vsub.s32 4294967266, %v1828_v54  ;;  %v2031_v6 = vsub.s32 0, %v5587_v55  ;;  %v1830_v58 = vshll.u32 %v1821_v19, %v1828_v54 }
 0x29c   : > { %v1897_v32 = vsel %vm1893_vm11, %v1877_v7, %v1880_v53  ;;  %v1899_v8 = vsel %vm1895_vm15, %v1883_v14, %v1898_v17  ;;  %v1903_v37 = vsel %vm1895_vm15, %v1886_v62, %v1902_v25  ;;  %v1905_v59 = vsel %vm1893_vm11, %v1883_v14, %v1886_v62 }
 0x29d   : > { %v1831_v3 = vshrl.u32 %v1813_v56, %v1829_v61  ;;  %v1834_v63 = vadd.s32 127, %v1833_v0  ;;  %v4426_v21 = vmin.u32 %v2031_v6, %v5587_v55  ;;  %v1901_v56 = vsel %vm1893_vm11, %v1880_v53, %v1883_v14 }
 0x29e   : > { %v1904_v43 = vsel %vm1894_vm14, %v1901_v56, %v1903_v37  ;;  %v1906_v44 = vsel %vm1896_vm12, %v1892_v47, 1326507024  ;;  %v2052_v53 = vsel %vm1967_vm10, %v2051_v29, %v2027_v31  ;;  %v2073_v61 = vshrl.u32 %v2072_v36, 23 }
 0x29f   : > { %v1832_v11 = vor.u32 %v1831_v3, %v1830_v58  ;;  %v1835_v19 = vshll.u32 %v1834_v63, 23  ;;  %v2033_v39 = vclz %v4426_v21  ;;  %v1907_v49 = vsel %vm1895_vm15, %v1889_v10, %v1906_v44 }
 0x2a0   : > { %v5620_v54 = vmul.u32.u64.low %v5570_v34, %v1904_v43  ;;  %v5621_v1 = vmul.u32.u64.high %v5570_v34, %v1904_v43, %v5620_v54  ;;  %v1908_v62 = vsel %vm1894_vm14, %v1905_v59, %v1907_v49  ;;  %v1900_v58 = vsel %vm1894_vm14, %v1897_v32, %v1899_v8 }
 0x2a1   : > { %v1836_v35 = vor.u32 4788187, %v1835_v19  ;;  %v1839_v60 = vcvt.s32.f32 %v1832_v11  ;;  %v4427_v40 = vadd.s32 4294967294, %v2033_v39  ;;  %v4429_v3 = vadd.s32 4294967169, %v2073_v61 }
 0x2a2   : > { %v5628_v6 = vmul.u32.u64.low %v5570_v34, %v1908_v62  ;;  %v5629_v7 = vmul.u32.u64.high %v5570_v34, %v1908_v62, %v5628_v6  ;;  %v1850_v21 = vadd.s32 3, %v5584_v50  ;;  %v2054_v31 = vsel %vm5598_vm13, 0, %v2052_v53 }
 0x2a3   : > { %v1837_v45 = vand.u32 2147483647, %v1836_v35  ;;  %vm4428_vm0 = vcmp.lt.s32.totalorder %v4427_v40, 0  ;;  %v1919_v36 = vadd.s32 1, %v5621_v1  ;;  %v2079_v19 = vadd.s32 1, %v4429_v3 }
 0x2a4   : > { %v2036_v14 = vsel %vm4428_vm0, 0, %v4427_v40  ;;  %v1916_v30 = vmul.u32 %v5570_v34, %v1900_v58  ;;  %vm1918_vm1 = vc.u32 %v5629_v7, %v5620_v54  ;;  %v2076_v25 = vand.u32 8388607, %v2069_v26 }
 0x2a5   : > { %v1840_v0 = vmul.f32 %v1839_v60, %v1837_v45  ;;  %v2037_v12 = vsub.s32 32, %v2036_v14  ;;  %v2041_v10 = vsub.s32 4294967266, %v2036_v14  ;;  %v2038_v47 = vshll.u32 %v5587_v55, %v2036_v14 }
 0x2a6   : > { %v5649_v55 = vand.u32 3, %v5584_v50  ;;  %vm2080_vm3 = vcmp.gt.s32.totalorder %v2079_v19, 0  ;;  %v1851_v34 = vand.u32 3, %v1850_v21  ;;  %v2058_v59 = vadd.s32 3, %v2054_v31 }
 0x2a7   : > { %v1841_v63 = vxor.u32 2147483648, %v1840_v0  ;;  %v2039_v17 = vshrl.u32 %v2021_v52, %v2037_v12  ;;  %v2042_v11 = vadd.s32 127, %v2041_v10  ;;  %v1920_v52 = vsel %vm1918_vm1, %v1919_v36, %v5621_v1 }
 0x2a8   : > { %v1921_v35 = vadd.s32 %v1920_v52, %v1916_v30  ;;  %v2081_v37 = vsel %vm2080_vm3, %v2079_v19, 0  ;;  %v2077_v44 = vor.u32 8388608, %v2076_v25  ;;  %vm2695_vm4 = vcmp.eq.s32.totalorder %v5649_v55, 2 }
 0x2a9   : > { %v1842_v56 = vsel %vm1759_vm7, %v1841_v63, %v1840_v0  ;;  %v2040_v29 = vor.u32 %v2039_v17, %v2038_v47  ;;  %v2043_v32 = vshll.u32 %v2042_v11, 23  ;;  %v2083_v40 = vand.u32 31, %v2081_v37 }
 0x2aa   : > { %v1845_v39 = vsel %vm5560_vm8, %v5442_v28, %v1842_v56  ;;  %v1922_v60 = vadd.s32 536870912, %v1921_v35  ;;  %vm1853_vm5 = vcmp.eq.s32.totalorder %v1851_v34, 0  ;;  %vm1856_vm6 = vcmp.eq.s32.totalorder %v1851_v34, 2 }
 0x2ab   : > { %4602 = vcosq.f32 %v1845_v39  ;;  %v2044_v8 = vor.u32 4788187, %v2043_v32  ;;  %v2047_v22 = vcvt.s32.f32 %v2040_v29  ;;  %vm2692_vm7 = vcmp.eq.s32.totalorder %v5649_v55, 0 }
 0x2ac   : > { %4604 = vsinq.f32 %v1845_v39  ;;  %v1923_v45 = vshrl.u32 %v1922_v60, 30  ;;  %v2084_v49 = vsub.s32 32, %v2083_v40  ;;  %vm1852_vm8 = vcmp.lt.s32.totalorder %v1851_v34, 2 }
 0x2ad   : > { %v2045_v43 = vand.u32 2147483647, %v2044_v8  ;;  %vm2691_vm9 = vcmp.lt.s32.totalorder %v5649_v55, 2  ;;  %v5654_v1 = vand.u32 3, %v2058_v59  ;;  %v5656_v53 = vand.u32 3, %v2054_v31 }
 0x2ae   : > { %v5659_v62 = vadd.s32 %v5620_v54, %v5629_v7  ;;  %v1924_v61 = vshll.u32 %v1923_v45, 30  ;;  %vm1849_vm11 = vweird.f32 %v5442_v28  ;;  %vm1863_vm12 = vcmp.lt.s32.totalorder %v5447_v33, 0 }
 0x2af   : > { %v2048_v50 = vmul.f32 %v2047_v22, %v2045_v43  ;;  %v5663_v14 = vshrl.u32 %v2081_v37, 5  ;;  %v5665_v6 = vshll.u32 %v2077_v44, 8  ;;  %v2176_v12 = vand.u32 2139095040, %v5459_v42 }
 0x2b0   : > { %v5668_v10 = vsub.s32 %v1921_v35, %v1924_v61  ;;  %v2086_v58 = vshll.u32 %v4677_v9, %v2083_v40  ;;  %v2089_v3 = vshll.u32 %v4678_v13, %v2083_v40  ;;  %v2092_v54 = vshll.u32 %v4679_v15, %v2083_v40 }
 0x2b1   : > { %v2049_v0 = vxor.u32 2147483648, %v2048_v50  ;;  %v2087_v63 = vshrl.u32 %v4678_v13, %v2084_v49  ;;  %v2095_v21 = vshll.u32 %v4680_v18, %v2083_v40  ;;  %v2098_v31 = vshll.u32 %v4681_v5, %v2083_v40 }
 0x2b2   : > { %v1927_v17 = vsub.s32 0, %v5668_v10  ;;  %v1947_v11 = vsub.s32 4, %v1923_v45  ;;  %v2090_v19 = vshrl.u32 %v4679_v15, %v2084_v49  ;;  %v2093_v25 = vshrl.u32 %v4680_v18, %v2084_v49 }
 0x2b3   : > { %v2050_v7 = vsel %vm1967_vm10, %v2049_v0, %v2048_v50  ;;  %v2096_v39 = vshrl.u32 %v4681_v5, %v2084_v49  ;;  %v2085_v52 = vshrl.u32 %v4677_v9, %v2084_v49  ;;  %v2088_v8 = vor.u32 %v2087_v63, %v2086_v58 }
 0x2b4   : > { %v2053_v47 = vsel %vm5598_vm13, %v5453_v38, %v2050_v7  ;;  %v4422_v32 = vmin.u32 %v1927_v17, %v5668_v10  ;;  %v2099_v37 = vshrl.u32 %v4682_v24, %v2084_v49  ;;  %v2091_v43 = vor.u32 %v2090_v19, %v2089_v3 }
 0x2b5   : > { %v4603_v36 = vpop.eup %4602  ;;  %4606 = vcosq.f32 %v2053_v47  ;;  %vm2064_vm10 = vcmp.eq.s32.totalorder %v5654_v1, 2  ;;  %vm2901_vm13 = vcmp.eq.s32.totalorder %v5656_v53, 2  ;;  %v2094_v50 = vor.u32 %v2093_v25, %v2092_v54 }
 0x2b6   : > { %v4605_v56 = vpop.eup %4604  ;;  %v1857_v30 = vxor.u32 2147483648, %v4603_v36  ;;  %4608 = vsinq.f32 %v2053_v47  ;;  %v1929_v40 = vclz %v4422_v32  ;;  %v2097_v61 = vor.u32 %v2096_v39, %v2095_v21 }
 0x2b7   : > { %v1854_v29 = vxor.u32 2147483648, %v4605_v56  ;;  %vm2061_vm14 = vcmp.eq.s32.totalorder %v5654_v1, 0  ;;  %vm2898_vm15 = vcmp.eq.s32.totalorder %v5656_v53, 0  ;;  %v1948_v55 = vsel %vm1863_vm12, %v1947_v11, %v1923_v45 }
 0x2b8   : > { %v1858_v20 = vsel %vm1856_vm6, %v1857_v30, %v4605_v56  ;;  %v2697_v35 = vsel %vm2695_vm4, %v1857_v30, %v4605_v56  ;;  %v4423_v34 = vadd.s32 4294967294, %v1929_v40  ;;  %vm2060_vm0 = vcmp.lt.s32.totalorder %v5654_v1, 2 }
 0x2b9   : > { %v1855_v59 = vsel %vm1853_vm5, %v4603_v36, %v1854_v29  ;;  %v2694_v60 = vsel %vm2692_vm7, %v4603_v36, %v1854_v29  ;;  %vm2897_vm1 = vcmp.lt.s32.totalorder %v5656_v53, 2  ;;  %v2100_v3 = vor.u32 %v2099_v37, %v2098_v31 }
 0x2ba   : > { %v1859_v22 = vsel %vm1852_vm8, %v1855_v59, %v1858_v20  ;;  %v2698_v44 = vsel %vm2691_vm9, %v2694_v60, %v2697_v35  ;;  %vm2101_vm3 = vcmp.lt.s32.totalorder %v5663_v14, 1  ;;  %vm2102_vm4 = vcmp.lt.s32.totalorder %v5663_v14, 2 }
 0x2bb   : > { %v1860_v49 = vsel %vm1849_vm11, nan, %v1859_v22  ;;  %v5703_v0 = vsel %vm1849_vm11, nan, %v2698_v44  ;;  %vm2057_vm5 = vweird.f32 %v5453_v38  ;;  %vm4424_vm6 = vcmp.lt.s32.totalorder %v4423_v34, 0 }
 0x2bc   : > { %2589 = vst [vmem:[#allocation2] sm:$0xff] %v1860_v49  ;;  %v3430_v58 = vrot.slane %v5703_v0, 4  ;;  %vm2103_vm7 = vcmp.lt.s32.totalorder %v5663_v14, 3  ;;  %vm2104_vm8 = vcmp.lt.s32.totalorder %v5663_v14, 4  ;;  %v2105_v28 = vsel %vm2101_vm3, %v2085_v52, %v2088_v8 }
 0x2bd   : > { %v1932_v45 = vsel %vm4424_vm6, 0, %v4423_v34  ;;  %v2106_v54 = vsel %vm2104_vm8, %v2094_v50, 2102212464  ;;  %v2109_v7 = vsel %vm2101_vm3, %v2088_v8, %v2091_v43  ;;  %v2110_v63 = vsel %vm2104_vm8, %v2097_v61, 920167782 }
 0x2be   : > { %3450 = vst [vmem:[#allocation2 + $0x20] sm:$0xf0] %v3430_v58  ;;  %vm5725_vm9 = vcmp.le.f32.partialorder %v1861_v57, 0.7853982  ;;  %v1933_v31 = vsub.s32 32, %v1932_v45  ;;  %v1934_v36 = vshll.u32 %v5668_v10, %v1932_v45  ;;  %v1937_v47 = vsub.s32 4294967266, %v1932_v45 }
 0x2bf   : > { %v2113_v17 = vsel %vm2101_vm3, %v2091_v43, %v2094_v50  ;;  %v4607_v11 = vpop.eup %4606  ;;  %v2107_v19 = vsel %vm2103_vm7, %v2091_v43, %v2106_v54  ;;  %v2111_v56 = vsel %vm2103_vm7, %v2094_v50, %v2110_v63  ;;  %v2114_v30 = vsel %vm2104_vm8, %v2100_v3, 1326507024 }
 0x2c0   : > { %v2177_v57 = vshrl.u32 %v2176_v12, 23  ;;  %v4609_v25 = vpop.eup %4608  ;;  %v2065_v39 = vxor.u32 2147483648, %v4607_v11  ;;  %v1935_v29 = vshrl.u32 %v5659_v62, %v1933_v31  ;;  %v1938_v10 = vadd.s32 127, %v1937_v47 }
 0x2c1   : > { %v2112_v32 = vsel %vm2102_vm4, %v2109_v7, %v2111_v56  ;;  %v2062_v52 = vxor.u32 2147483648, %v4609_v25  ;;  %v2115_v20 = vsel %vm2103_vm7, %v2097_v61, %v2114_v30  ;;  %v2108_v43 = vsel %vm2102_vm4, %v2105_v28, %v2107_v19 }
 0x2c2   : > { %v5744_v35 = vmul.u32.u64.low %v5665_v6, %v2112_v32  ;;  %v5745_v8 = vmul.u32.u64.high %v5665_v6, %v2112_v32, %v5744_v35  ;;  %v2066_v12 = vsel %vm2064_vm10, %v2065_v39, %v4609_v25  ;;  %v2903_v37 = vsel %vm2901_vm13, %v2065_v39, %v4609_v25 }
 0x2c3   : > { %v1936_v62 = vor.u32 %v1935_v29, %v1934_v36  ;;  %v1939_v59 = vshll.u32 %v1938_v10, 23  ;;  %v2063_v60 = vsel %vm2061_vm14, %v4607_v11, %v2062_v52  ;;  %v2900_v40 = vsel %vm2898_vm15, %v4607_v11, %v2062_v52 }
 0x2c4   : > { %v2116_v22 = vsel %vm2102_vm4, %v2113_v17, %v2115_v20  ;;  %v2067_v44 = vsel %vm2060_vm0, %v2063_v60, %v2066_v12  ;;  %v2904_v50 = vsel %vm2897_vm1, %v2900_v40, %v2903_v37  ;;  %v2127_v53 = vadd.s32 1, %v5745_v8 }
 0x2c5   : > { %v1940_v61 = vor.u32 4788187, %v1939_v59  ;;  %v1943_v49 = vcvt.s32.f32 %v1936_v62  ;;  %v2068_v34 = vsel %vm2057_vm5, nan, %v2067_v44  ;;  %v5768_v3 = vsel %vm2057_vm5, nan, %v2904_v50 }
 0x2c6   : > { %v5771_v28 = vmul.u32.u64.low %v5665_v6, %v2116_v22  ;;  %v5772_v45 = vmul.u32.u64.high %v5665_v6, %v2116_v22, %v5771_v28  ;;  %2591 = vst [vmem:[#allocation2 + $0x10] sm:$0xff] %v2068_v34  ;;  %v3432_v1 = vrot.slane %v5768_v3, 4  ;;  %v4433_v54 = vadd.s32 4294967169, %v2177_v57 }
 0x2c7   : > { %v1941_v14 = vand.u32 2147483647, %v1940_v61  ;;  %v1950_v7 = vsel %vm5725_vm9, 0, %v1948_v55  ;;  %v2173_v63 = vand.u32 2147483647, %v5459_v42  ;;  %v2124_v36 = vmul.u32 %v5665_v6, %v2108_v43 }
 0x2c8   : > { %3452 = vst [vmem:[#allocation2 + $0x30] sm:$0xf0] %v3432_v1  ;;  %v2183_v31 = vadd.s32 1, %v4433_v54  ;;  %vm2126_vm11 = vc.u32 %v5772_v45, %v5744_v35  ;;  %v1954_v17 = vadd.s32 3, %v1950_v7  ;;  %v2384_v10 = vand.u32 2139095040, %v5471_v51 }
 0x2c9   : > { %v1944_v38 = vmul.f32 %v1943_v49, %v1941_v14  ;;  %v2128_v11 = vsel %vm2126_vm11, %v2127_v53, %v5745_v8  ;;  %v2180_v30 = vand.u32 8388607, %v2173_v63  ;;  %v5795_v32 = vand.u32 3, %v1950_v7 }
 0x2ca   : > { %vm2184_vm10 = vcmp.gt.s32.totalorder %v2183_v31, 0  ;;  %v2129_v19 = vadd.s32 %v2128_v11, %v2124_v36  ;;  %v5792_v39 = vand.u32 3, %v1954_v17  ;;  %v2381_v22 = vand.u32 2147483647, %v5471_v51 }
 0x2cb   : > { %v1945_v47 = vxor.u32 2147483648, %v1944_v38  ;;  %v2185_v56 = vsel %vm2184_vm10, %v2183_v31, 0  ;;  %v2181_v20 = vor.u32 8388608, %v2180_v30  ;;  %v2385_v44 = vshrl.u32 %v2384_v10, 23 }
 0x2cc   : > { %v2187_v57 = vand.u32 31, %v2185_v56  ;;  %v2130_v25 = vadd.s32 536870912, %v2129_v19  ;;  %v5798_v8 = vshrl.u32 %v2185_v56, 5  ;;  %vm1960_vm13 = vcmp.eq.s32.totalorder %v5792_v39, 2 }
 0x2cd   : > { %v1946_v55 = vsel %vm1863_vm12, %v1945_v47, %v1944_v38  ;;  %vm2071_vm12 = vcmp.lt.s32.totalorder %v5457_v41, 0  ;;  %vm1957_vm14 = vcmp.eq.s32.totalorder %v5792_v39, 0  ;;  %vm2795_vm15 = vcmp.eq.s32.totalorder %v5795_v32, 0 }
 0x2ce   : > { %v1949_v6 = vsel %vm5725_vm9, %v5447_v33, %v1946_v55  ;;  %v2188_v29 = vsub.s32 32, %v2187_v57  ;;  %v2131_v52 = vshrl.u32 %v2130_v25, 30  ;;  %v2199_v21 = vshll.u32 %v4680_v18, %v2187_v57 }
 0x2cf   : > { %4610 = vcosq.f32 %v1949_v6  ;;  %v2190_v40 = vshll.u32 %v4677_v9, %v2187_v57  ;;  %v2193_v43 = vshll.u32 %v4678_v13, %v2187_v57  ;;  %v2196_v61 = vshll.u32 %v4679_v15, %v2187_v57 }
 0x2d0   : > { %4612 = vsinq.f32 %v1949_v6  ;;  %v2191_v12 = vshrl.u32 %v4678_v13, %v2188_v29  ;;  %v2132_v37 = vshll.u32 %v2131_v52, 30  ;;  %v2194_v62 = vshrl.u32 %v4679_v15, %v2188_v29 }
 0x2d1   : > { %v2197_v59 = vshrl.u32 %v4680_v18, %v2188_v29  ;;  %v2200_v60 = vshrl.u32 %v4681_v5, %v2188_v29  ;;  %v2203_v34 = vshrl.u32 %v4682_v24, %v2188_v29  ;;  %vm1956_vm0 = vcmp.lt.s32.totalorder %v5792_v39, 2 }
 0x2d2   : > { %v5811_v50 = vsub.s32 %v2129_v19, %v2132_v37  ;;  %vm2794_vm1 = vcmp.lt.s32.totalorder %v5795_v32, 2  ;;  %vm2798_vm3 = vcmp.eq.s32.totalorder %v5795_v32, 2  ;;  %v2155_v28 = vsub.s32 4, %v2131_v52 }
 0x2d3   : > { %v2201_v49 = vor.u32 %v2200_v60, %v2199_v21  ;;  %v2192_v14 = vor.u32 %v2191_v12, %v2190_v40  ;;  %v2202_v53 = vshll.u32 %v4681_v5, %v2187_v57  ;;  %vm1953_vm4 = vweird.f32 %v5447_v33 }
 0x2d4   : > { %v2135_v54 = vsub.s32 0, %v5811_v50  ;;  %v2195_v7 = vor.u32 %v2194_v62, %v2193_v43  ;;  %v2198_v38 = vor.u32 %v2197_v59, %v2196_v61  ;;  %vm2208_vm5 = vcmp.lt.s32.totalorder %v5798_v8, 4 }
 0x2d5   : > { %v2125_v31 = vadd.s32 %v5744_v35, %v5772_v45  ;;  %v2214_v36 = vsel %vm2208_vm5, %v2201_v49, 920167782  ;;  %v5826_v47 = vshll.u32 %v2181_v20, 8  ;;  %v5830_v17 = vand.u32 8388607, %v2381_v22 }
 0x2d6   : > { %v4430_v11 = vmin.u32 %v2135_v54, %v5811_v50  ;;  %v2189_v19 = vshrl.u32 %v4677_v9, %v2188_v29  ;;  %v2204_v56 = vor.u32 %v2203_v34, %v2202_v53  ;;  %v4441_v55 = vadd.s32 4294967169, %v2385_v44 }
 0x2d7   : > { %v2156_v57 = vsel %vm2071_vm12, %v2155_v28, %v2131_v52  ;;  %vm2205_vm6 = vcmp.lt.s32.totalorder %v5798_v8, 1  ;;  %vm2206_vm7 = vcmp.lt.s32.totalorder %v5798_v8, 2  ;;  %vm2207_vm8 = vcmp.lt.s32.totalorder %v5798_v8, 3 }
 0x2d8   : > { %v2137_v6 = vclz %v4430_v11  ;;  %v2213_v25 = vsel %vm2205_vm6, %v2192_v14, %v2195_v7  ;;  %v2215_v10 = vsel %vm2207_vm8, %v2198_v38, %v2214_v36  ;;  %v2209_v20 = vsel %vm2205_vm6, %v2189_v19, %v2192_v14 }
 0x2d9   : > { %v4611_v30 = vpop.eup %4610  ;;  %v2210_v12 = vsel %vm2208_vm5, %v2198_v38, 2102212464  ;;  %v2217_v21 = vsel %vm2205_vm6, %v2195_v7, %v2198_v38  ;;  %v2218_v59 = vsel %vm2208_vm5, %v2204_v56, 1326507024  ;;  %v2216_v43 = vsel %vm2206_vm7, %v2213_v25, %v2215_v10 }
 0x2da   : > { %v4613_v35 = vpop.eup %4612  ;;  %v1961_v45 = vxor.u32 2147483648, %v4611_v30  ;;  %v4431_v62 = vadd.s32 4294967294, %v2137_v6  ;;  %v2219_v44 = vsel %vm2207_vm8, %v2201_v49, %v2218_v59  ;;  %v2391_v38 = vadd.s32 1, %v4441_v55 }
 0x2db   : > { %v1958_v29 = vxor.u32 2147483648, %v4613_v35  ;;  %v2220_v28 = vsel %vm2206_vm7, %v2217_v21, %v2219_v44  ;;  %v2211_v32 = vsel %vm2207_vm8, %v2195_v7, %v2210_v12  ;;  %vm5888_vm10 = vcmp.le.f32.partialorder %v2069_v26, 0.7853982 }
 0x2dc   : > { %v1962_v52 = vsel %vm1960_vm13, %v1961_v45, %v4613_v35  ;;  %v2800_v37 = vsel %vm2798_vm3, %v1961_v45, %v4613_v35  ;;  %vm4432_vm9 = vcmp.lt.s32.totalorder %v4431_v62, 0  ;;  %vm2392_vm11 = vcmp.gt.s32.totalorder %v2391_v38, 0 }
 0x2dd   : > { %v1959_v60 = vsel %vm1957_vm14, %v4611_v30, %v1958_v29  ;;  %v2797_v40 = vsel %vm2795_vm15, %v4611_v30, %v1958_v29  ;;  %v2140_v54 = vsel %vm4432_vm9, 0, %v4431_v62  ;;  %v2212_v7 = vsel %vm2206_vm7, %v2209_v20, %v2211_v32 }
 0x2de   : > { %v1963_v61 = vsel %vm1956_vm0, %v1959_v60, %v1962_v52  ;;  %v2801_v34 = vsel %vm2794_vm1, %v2797_v40, %v2800_v37  ;;  %v2141_v49 = vsub.s32 32, %v2140_v54  ;;  %v2145_v36 = vsub.s32 4294967266, %v2140_v54 }
 0x2df   : > { %v1964_v14 = vsel %vm1953_vm4, nan, %v1963_v61  ;;  %v5867_v53 = vsel %vm1953_vm4, nan, %v2801_v34  ;;  %v5873_v11 = vmul.u32.u64.low %v5826_v47, %v2220_v28  ;;  %v5874_v19 = vmul.u32.u64.high %v5826_v47, %v2220_v28, %v5873_v11 }
 0x2e0   : > { %2590 = vst [vmem:[#allocation2 + $0x8] sm:$0xff] %v1964_v14  ;;  %v3431_v39 = vrot.slane %v5867_v53, 4  ;;  %v5877_v56 = vmul.u32.u64.low %v5826_v47, %v2216_v43  ;;  %v5878_v30 = vmul.u32.u64.high %v5826_v47, %v2216_v43, %v5877_v56  ;;  %v2142_v33 = vshll.u32 %v5811_v50, %v2140_v54 }
 0x2e1   : > { %v2143_v55 = vshrl.u32 %v2125_v31, %v2141_v49  ;;  %v2146_v35 = vadd.s32 127, %v2145_v36  ;;  %v2393_v45 = vsel %vm2392_vm11, %v2391_v38, 0  ;;  %v2158_v12 = vsel %vm5888_vm10, 0, %v2156_v57 }
 0x2e2   : > { %3451 = vst [vmem:[#allocation2 + $0x28] sm:$0xf0] %v3431_v39  ;;  %v2395_v29 = vand.u32 31, %v2393_v45  ;;  %vm2230_vm13 = vc.u32 %v5874_v19, %v5877_v56  ;;  %v2231_v50 = vadd.s32 1, %v5878_v30  ;;  %v2389_v8 = vor.u32 8388608, %v5830_v17 }
 0x2e3   : > { %v2144_v25 = vor.u32 %v2143_v55, %v2142_v33  ;;  %v2147_v10 = vshll.u32 %v2146_v35, 23  ;;  %v2228_v20 = vmul.u32 %v5826_v47, %v2212_v7  ;;  %v2280_v21 = vand.u32 2139095040, %v5464_v46 }
 0x2e4   : > { %v2396_v26 = vsub.s32 32, %v2395_v29  ;;  %v2232_v37 = vsel %vm2230_vm13, %v2231_v50, %v5878_v30  ;;  %v5901_v62 = vshrl.u32 %v2393_v45, 5  ;;  %v2398_v57 = vshll.u32 %v4677_v9, %v2395_v29 }
 0x2e5   : > { %v2148_v31 = vor.u32 4788187, %v2147_v10  ;;  %v2151_v52 = vcvt.s32.f32 %v2144_v25  ;;  %v2233_v60 = vadd.s32 %v2232_v37, %v2228_v20  ;;  %v2401_v43 = vshll.u32 %v4678_v13, %v2395_v29 }
 0x2e6   : > { %v2399_v40 = vshrl.u32 %v4678_v13, %v2396_v26  ;;  %v2402_v17 = vshrl.u32 %v4679_v15, %v2396_v26  ;;  %v2405_v47 = vshrl.u32 %v4680_v18, %v2396_v26  ;;  %v2407_v44 = vshll.u32 %v4680_v18, %v2395_v29 }
 0x2e7   : > { %v2149_v59 = vand.u32 2147483647, %v2148_v31  ;;  %v2408_v61 = vshrl.u32 %v4681_v5, %v2396_v26  ;;  %v2234_v28 = vadd.s32 536870912, %v2233_v60  ;;  %v2404_v14 = vshll.u32 %v4679_v15, %v2395_v29 }
 0x2e8   : > { %v2411_v54 = vshrl.u32 %v4682_v24, %v2396_v26  ;;  %v2400_v38 = vor.u32 %v2399_v40, %v2398_v57  ;;  %v2403_v49 = vor.u32 %v2402_v17, %v2401_v43  ;;  %v2410_v32 = vshll.u32 %v4681_v5, %v2395_v29 }
 0x2e9   : > { %v2152_v34 = vmul.f32 %v2151_v52, %v2149_v59  ;;  %v2409_v36 = vor.u32 %v2408_v61, %v2407_v44  ;;  %v2162_v30 = vadd.s32 3, %v2158_v12  ;;  %v2235_v33 = vshrl.u32 %v2234_v28, 30 }
 0x2ea   : > { %v5913_v55 = vand.u32 3, %v2158_v12  ;;  %v2406_v35 = vor.u32 %v2405_v47, %v2404_v14  ;;  %v2412_v7 = vor.u32 %v2411_v54, %v2410_v32  ;;  %v5915_v45 = vshll.u32 %v2389_v8, 8 }
 0x2eb   : > { %v2153_v11 = vxor.u32 2147483648, %v2152_v34  ;;  %v2236_v10 = vshll.u32 %v2235_v33, 30  ;;  %vm2413_vm14 = vcmp.lt.s32.totalorder %v5901_v62, 1  ;;  %vm2416_vm15 = vcmp.lt.s32.totalorder %v5901_v62, 4 }
 0x2ec   : > { %v2421_v12 = vsel %vm2413_vm14, %v2400_v38, %v2403_v49  ;;  %v2422_v50 = vsel %vm2416_vm15, %v2409_v36, 920167782  ;;  %v2281_v31 = vshrl.u32 %v2280_v21, 23  ;;  %v2397_v20 = vshrl.u32 %v4677_v9, %v2396_v26 }
 0x2ed   : > { %v2154_v25 = vsel %vm2071_vm12, %v2153_v11, %v2152_v34  ;;  %v5926_v8 = vsub.s32 %v2233_v60, %v2236_v10  ;;  %vm2415_vm12 = vcmp.lt.s32.totalorder %v5901_v62, 3  ;;  %vm2414_vm0 = vcmp.lt.s32.totalorder %v5901_v62, 2 }
 0x2ee   : > { %v2157_v29 = vsel %vm5888_vm10, %v5457_v41, %v2154_v25  ;;  %v2423_v52 = vsel %vm2415_vm12, %v2406_v35, %v2422_v50  ;;  %v2426_v6 = vsel %vm2416_vm15, %v2412_v7, 1326507024  ;;  %v2418_v57 = vsel %vm2416_vm15, %v2406_v35, 2102212464 }
 0x2ef   : > { %4614 = vcosq.f32 %v2157_v29  ;;  %v2239_v37 = vsub.s32 0, %v5926_v8  ;;  %v2424_v21 = vsel %vm2414_vm0, %v2421_v12, %v2423_v52  ;;  %v2425_v59 = vsel %vm2413_vm14, %v2403_v49, %v2406_v35 }
 0x2f0   : > { %4616 = vsinq.f32 %v2157_v29  ;;  %v2259_v60 = vsub.s32 4, %v2235_v33  ;;  %v2427_v26 = vsel %vm2415_vm12, %v2409_v36, %v2426_v6  ;;  %v2163_v17 = vand.u32 3, %v2162_v30 }
 0x2f1   : > { %v5941_v40 = vmul.u32.u64.low %v5915_v45, %v2424_v21  ;;  %v5942_v43 = vmul.u32.u64.high %v5915_v45, %v2424_v21, %v5941_v40  ;;  %vm5947_vm1 = vcmp.le.f32.partialorder %v2173_v63, 0.7853982  ;;  %v4434_v44 = vmin.u32 %v2239_v37, %v5926_v8 }
 0x2f2   : > { %v2417_v61 = vsel %vm2413_vm14, %v2397_v20, %v2400_v38  ;;  %v2419_v34 = vsel %vm2415_vm12, %v2403_v49, %v2418_v57  ;;  %v2428_v28 = vsel %vm2414_vm0, %v2425_v59, %v2427_v26  ;;  %v4437_v14 = vadd.s32 4294967169, %v2281_v31 }
 0x2f3   : > { %vm3000_vm3 = vcmp.lt.s32.totalorder %v5913_v55, 2  ;;  %vm2175_vm4 = vcmp.lt.s32.totalorder %v5459_v42, 0  ;;  %v2241_v63 = vclz %v4434_v44  ;;  %v2277_v54 = vand.u32 2147483647, %v5464_v46 }
 0x2f4   : > { %vm2161_vm5 = vweird.f32 %v5457_v41  ;;  %v2260_v36 = vsel %vm2175_vm4, %v2259_v60, %v2235_v33  ;;  %v5965_v38 = vmul.u32.u64.low %v5915_v45, %v2428_v28  ;;  %v5966_v32 = vmul.u32.u64.high %v5915_v45, %v2428_v28, %v5965_v38 }
 0x2f5   : > { %v2287_v49 = vadd.s32 1, %v4437_v14  ;;  %vm3001_vm6 = vcmp.eq.s32.totalorder %v5913_v55, 0  ;;  %vm3004_vm7 = vcmp.eq.s32.totalorder %v5913_v55, 2  ;;  %v4435_v11 = vadd.s32 4294967294, %v2241_v63 }
 0x2f6   : > { %v2420_v30 = vsel %vm2414_vm0, %v2417_v61, %v2419_v34  ;;  %vm2164_vm8 = vcmp.lt.s32.totalorder %v2163_v17, 2  ;;  %vm2165_vm9 = vcmp.eq.s32.totalorder %v2163_v17, 0  ;;  %v2439_v35 = vadd.s32 1, %v5942_v43 }
 0x2f7   : > { %vm2288_vm11 = vcmp.gt.s32.totalorder %v2287_v49, 0  ;;  %vm2168_vm10 = vcmp.eq.s32.totalorder %v2163_v17, 2  ;;  %v2229_v33 = vadd.s32 %v5877_v56, %v5874_v19  ;;  %vm4436_vm13 = vcmp.lt.s32.totalorder %v4435_v11, 0 }
 0x2f8   : > { %v2262_v25 = vsel %vm5947_vm1, 0, %v2260_v36  ;;  %v2244_v12 = vsel %vm4436_vm13, 0, %v4435_v11  ;;  %v2436_v62 = vmul.u32 %v5915_v45, %v2420_v30  ;;  %vm2438_vm14 = vc.u32 %v5966_v32, %v5941_v40 }
 0x2f9   : > { %v4615_v7 = vpop.eup %4614  ;;  %v2245_v31 = vsub.s32 32, %v2244_v12  ;;  %v2249_v20 = vsub.s32 4294967266, %v2244_v12  ;;  %v2289_v52 = vsel %vm2288_vm11, %v2287_v49, 0  ;;  %v2246_v56 = vshll.u32 %v5926_v8, %v2244_v12 }
 0x2fa   : > { %v4617_v10 = vpop.eup %4616  ;;  %v2169_v29 = vxor.u32 2147483648, %v4615_v7  ;;  %v2440_v37 = vsel %vm2438_vm14, %v2439_v35, %v5942_v43  ;;  %v2291_v61 = vand.u32 31, %v2289_v52  ;;  %v2266_v63 = vadd.s32 3, %v2262_v25 }
 0x2fb   : > { %v2166_v50 = vxor.u32 2147483648, %v4617_v10  ;;  %v2247_v21 = vshrl.u32 %v2229_v33, %v2245_v31  ;;  %v2250_v59 = vadd.s32 127, %v2249_v20  ;;  %v2441_v44 = vadd.s32 %v2440_v37, %v2436_v62 }
 0x2fc   : > { %v2170_v6 = vsel %vm2168_vm10, %v2169_v29, %v4617_v10  ;;  %v3006_v19 = vsel %vm3004_vm7, %v2169_v29, %v4617_v10  ;;  %v2292_v36 = vsub.s32 32, %v2291_v61  ;;  %v2284_v55 = vand.u32 8388607, %v2277_v54 }
 0x2fd   : > { %v2167_v57 = vsel %vm2165_vm9, %v4615_v7, %v2166_v50  ;;  %v3003_v45 = vsel %vm3001_vm6, %v4615_v7, %v2166_v50  ;;  %v2248_v43 = vor.u32 %v2247_v21, %v2246_v56  ;;  %v2251_v28 = vshll.u32 %v2250_v59, 23 }
 0x2fe   : > { %v2171_v60 = vsel %vm2164_vm8, %v2167_v57, %v2170_v6  ;;  %v3007_v26 = vsel %vm3000_vm3, %v3003_v45, %v3006_v19  ;;  %v2442_v17 = vadd.s32 536870912, %v2441_v44  ;;  %v6005_v30 = vand.u32 3, %v2262_v25 }
 0x2ff   : > { %v5992_v34 = vsel %vm2161_vm5, nan, %v2171_v60  ;;  %v5996_v8 = vsel %vm2161_vm5, nan, %v3007_v26  ;;  %v2252_v38 = vor.u32 4788187, %v2251_v28  ;;  %v2255_v41 = vcvt.s32.f32 %v2248_v43 }
 0x300   : > { %v3433_v14 = vrot.slane %v5996_v8, 4  ;;  %v6003_v49 = vshrl.u32 %v2442_v17, 30  ;;  %v2295_v35 = vshrl.u32 %v4678_v13, %v2292_v36  ;;  %v6008_v7 = vand.u32 3, %v2266_v63  ;;  %v3513_v8 = vld [vmem:[#allocation2 + $0x98] sm:$0xff] }
 0x301   : > { %v2253_v11 = vand.u32 2147483647, %v2252_v38  ;;  %v2298_v10 = vshrl.u32 %v4679_v15, %v2292_v36  ;;  %v2301_v29 = vshrl.u32 %v4680_v18, %v2292_v36  ;;  %v2285_v62 = vor.u32 8388608, %v2284_v55 }
 0x302   : > { %3453 = vst [vmem:[#allocation2 + $0x38] sm:$0xf0] %v3433_v14  ;;  %v2444_v33 = vshll.u32 %v6003_v49, 30  ;;  %v2294_v50 = vshll.u32 %v4677_v9, %v2291_v61  ;;  %v2304_v31 = vshrl.u32 %v4681_v5, %v2292_v36  ;;  %v2297_v25 = vshll.u32 %v4678_v13, %v2291_v61 }
 0x303   : > { %v2256_v12 = vmul.f32 %v2255_v41, %v2253_v11  ;;  %v2300_v6 = vshll.u32 %v4679_v15, %v2291_v61  ;;  %v2307_v19 = vshrl.u32 %v4682_v24, %v2292_v36  ;;  %v2290_v37 = vshrl.u32 %v2289_v52, 5 }
 0x304   : > { %v6015_v20 = vsub.s32 %v2441_v44, %v2444_v33  ;;  %v2296_v57 = vor.u32 %v2295_v35, %v2294_v50  ;;  %v2303_v45 = vshll.u32 %v4680_v18, %v2291_v61  ;;  %v2299_v59 = vor.u32 %v2298_v10, %v2297_v25 }
 0x305   : > { %v2257_v56 = vxor.u32 2147483648, %v2256_v12  ;;  %v2302_v60 = vor.u32 %v2301_v29, %v2300_v6  ;;  %v2306_v26 = vshll.u32 %v4681_v5, %v2291_v61  ;;  %v6025_v28 = vshll.u32 %v2285_v62, 8 }
 0x306   : > { %v2447_v21 = vsub.s32 0, %v6015_v20  ;;  %v2305_v43 = vor.u32 %v2304_v31, %v2303_v45  ;;  %v2488_v63 = vand.u32 2139095040, %v5502_v48  ;;  %v2293_v38 = vshrl.u32 %v4677_v9, %v2292_v36 }
 0x307   : > { %v2258_v44 = vsel %vm2175_vm4, %v2257_v56, %v2256_v12  ;;  %v2308_v55 = vor.u32 %v2307_v19, %v2306_v26  ;;  %v2467_v61 = vsub.s32 4, %v6003_v49  ;;  %vm2309_vm15 = vcmp.lt.s32.totalorder %v2290_v37, 1 }
 0x308   : > { %v2261_v52 = vsel %vm5947_vm1, %v5459_v42, %v2258_v44  ;;  %v4442_v17 = vmin.u32 %v2447_v21, %v6015_v20  ;;  %vm2312_vm12 = vcmp.lt.s32.totalorder %v2290_v37, 4  ;;  %vm2383_vm0 = vcmp.lt.s32.totalorder %v5471_v51, 0 }
 0x309   : > { %4618 = vcosq.f32 %v2261_v52  ;;  %v2314_v41 = vsel %vm2312_vm12, %v2302_v60, 2102212464  ;;  %v2317_v35 = vsel %vm2309_vm15, %v2296_v57, %v2299_v59  ;;  %vm2310_vm3 = vcmp.lt.s32.totalorder %v2290_v37, 2 }
 0x30a   : > { %4620 = vsinq.f32 %v2261_v52  ;;  %v2449_v11 = vclz %v4442_v17  ;;  %vm2311_vm4 = vcmp.lt.s32.totalorder %v2290_v37, 3  ;;  %v2318_v47 = vsel %vm2312_vm12, %v2305_v43, 920167782 }
 0x30b   : > { %v2321_v33 = vsel %vm2309_vm15, %v2299_v59, %v2302_v60  ;;  %v2313_v29 = vsel %vm2309_vm15, %v2293_v38, %v2296_v57  ;;  %v2319_v12 = vsel %vm2311_vm4, %v2302_v60, %v2318_v47  ;;  %v2322_v36 = vsel %vm2312_vm12, %v2308_v55, 1326507024 }
 0x30c   : > { %v4443_v10 = vadd.s32 4294967294, %v2449_v11  ;;  %vm3107_vm1 = vcmp.eq.s32.totalorder %v6005_v30, 2  ;;  %vm6038_vm5 = vcmp.le.f32.partialorder %v2381_v22, 0.7853982  ;;  %v2315_v50 = vsel %vm2311_vm4, %v2299_v59, %v2314_v41 }
 0x30d   : > { %v2320_v31 = vsel %vm2310_vm3, %v2317_v35, %v2319_v12  ;;  %v2323_v25 = vsel %vm2311_vm4, %v2305_v43, %v2322_v36  ;;  %v2489_v6 = vshrl.u32 %v2488_v63, 23  ;;  %vm3104_vm6 = vcmp.eq.s32.totalorder %v6005_v30, 0 }
 0x30e   : > { %vm4444_vm7 = vcmp.lt.s32.totalorder %v4443_v10, 0  ;;  %v2324_v19 = vsel %vm2310_vm3, %v2321_v33, %v2323_v25  ;;  %v6046_v56 = vmul.u32.u64.low %v6025_v28, %v2320_v31  ;;  %v6047_v57 = vmul.u32.u64.high %v6025_v28, %v2320_v31, %v6046_v56 }
 0x30f   : > { %vm3103_vm8 = vcmp.lt.s32.totalorder %v6005_v30, 2  ;;  %v2452_v22 = vsel %vm4444_vm7, 0, %v4443_v10  ;;  %v6052_v45 = vmul.u32.u64.low %v6025_v28, %v2324_v19  ;;  %v6053_v21 = vmul.u32.u64.high %v6025_v28, %v2324_v19, %v6052_v45 }
 0x310   : > { %v4445_v59 = vadd.s32 4294967169, %v2489_v6  ;;  %vm2265_vm9 = vweird.f32 %v5459_v42  ;;  %v2437_v60 = vadd.s32 %v5941_v40, %v5966_v32  ;;  %v2453_v26 = vsub.s32 32, %v2452_v22 }
 0x311   : > { %v2457_v44 = vsub.s32 4294967266, %v2452_v22  ;;  %v2316_v43 = vsel %vm2310_vm3, %v2313_v29, %v2315_v50  ;;  %vm2268_vm11 = vcmp.lt.s32.totalorder %v6008_v7, 2  ;;  %vm2269_vm10 = vcmp.eq.s32.totalorder %v6008_v7, 0 }
 0x312   : > { %vm2272_vm13 = vcmp.eq.s32.totalorder %v6008_v7, 2  ;;  %vm3429_vm14 = vcmask 1043456   ;;  %v2495_v63 = vadd.s32 1, %v4445_v59  ;;  %v2454_v52 = vshll.u32 %v6015_v20, %v2452_v22 }
 0x313   : > { %v2455_v17 = vshrl.u32 %v2437_v60, %v2453_v26  ;;  %v2458_v38 = vadd.s32 127, %v2457_v44  ;;  %v2335_v55 = vadd.s32 1, %v6047_v57  ;;  %v4619_v11 = vpop.eup %4618  ;;  %v2468_v40 = vsel %vm2383_vm0, %v2467_v61, %v6003_v49 }
 0x314   : > { %v2332_v32 = vmul.u32 %v6025_v28, %v2316_v43  ;;  %vm2334_vm15 = vc.u32 %v6053_v21, %v6046_v56  ;;  %vm2496_vm12 = vcmp.gt.s32.totalorder %v2495_v63, 0  ;;  %v4621_v37 = vpop.eup %4620  ;;  %v2273_v41 = vxor.u32 2147483648, %v4619_v11 }
 0x315   : > { %v2456_v35 = vor.u32 %v2455_v17, %v2454_v52  ;;  %v2459_v47 = vshll.u32 %v2458_v38, 23  ;;  %v2336_v20 = vsel %vm2334_vm15, %v2335_v55, %v6047_v57  ;;  %v2270_v33 = vxor.u32 2147483648, %v4621_v37 }
 0x316   : > { %v2337_v10 = vadd.s32 %v2336_v20, %v2332_v32  ;;  %v2485_v29 = vand.u32 2147483647, %v5502_v48  ;;  %v2497_v12 = vsel %vm2496_vm12, %v2495_v63, 0  ;;  %v2274_v49 = vsel %vm2272_vm13, %v2273_v41, %v4621_v37 }
 0x317   : > { %v3109_v28 = vsel %vm3107_vm1, %v2273_v41, %v4621_v37  ;;  %v2460_v61 = vor.u32 4788187, %v2459_v47  ;;  %v2470_v36 = vsel %vm6038_vm5, 0, %v2468_v40  ;;  %v2271_v50 = vsel %vm2269_vm10, %v4619_v11, %v2270_v33 }
 0x318   : > { %v3106_v31 = vsel %vm3104_vm6, %v4619_v11, %v2270_v33  ;;  %v2463_v25 = vcvt.s32.f32 %v2456_v35  ;;  %v2338_v6 = vadd.s32 536870912, %v2337_v10  ;;  %v2275_v19 = vsel %vm2268_vm11, %v2271_v50, %v2274_v49 }
 0x319   : > { %v3110_v57 = vsel %vm3103_vm8, %v3106_v31, %v3109_v28  ;;  %v2461_v22 = vand.u32 2147483647, %v2460_v61  ;;  %v2499_v45 = vand.u32 31, %v2497_v12  ;;  %v2276_v59 = vsel %vm2265_vm9, nan, %v2275_v19 }
 0x31a   : > { %v3111_v60 = vsel %vm2265_vm9, nan, %v3110_v57  ;;  %v2474_v26 = vadd.s32 3, %v2470_v36  ;;  %v6090_v44 = vshrl.u32 %v2338_v6, 30  ;;  %2593 = vst [vmem:[#allocation2 + $0x20] sm:$0xf] %v2276_v59  ;;  %v6100_v42 = vand.u32 3, %v2470_v36 }
 0x31b   : > { %v3434_v43 = vrot.slane %v3111_v60, 4  ;;  %v2464_v63 = vmul.f32 %v2463_v25, %v2461_v22  ;;  %v2492_v7 = vand.u32 8388607, %v2485_v29  ;;  %v2500_v52 = vsub.s32 32, %v2499_v45 }
 0x31c   : > { %v2340_v30 = vshll.u32 %v6090_v44, 30  ;;  %v6102_v55 = vand.u32 3, %v2474_v26  ;;  %v2498_v35 = vshrl.u32 %v2497_v12, 5  ;;  %v2502_v20 = vshll.u32 %v4677_v9, %v2499_v45 }
 0x31d   : > { %v6098_v17 = vsel %vm3429_vm14, %v3430_v58, %v3434_v43  ;;  %v2465_v38 = vxor.u32 2147483648, %v2464_v63  ;;  %v2503_v40 = vshrl.u32 %v4678_v13, %v2500_v52  ;;  %v2506_v32 = vshrl.u32 %v4679_v15, %v2500_v52 }
 0x31e   : > { %v6104_v11 = vsub.s32 %v2337_v10, %v2340_v30  ;;  %v2493_v41 = vor.u32 8388608, %v2492_v7  ;;  %v2509_v0 = vshrl.u32 %v4680_v18, %v2500_v52  ;;  %v2505_v33 = vshll.u32 %v4678_v13, %v2499_v45 }
 0x31f   : > { %v2466_v37 = vsel %vm2383_vm0, %v2465_v38, %v2464_v63  ;;  %v2508_v10 = vshll.u32 %v4679_v15, %v2499_v45  ;;  %v2511_v49 = vshll.u32 %v4680_v18, %v2499_v45  ;;  %v2512_v28 = vshrl.u32 %v4681_v5, %v2500_v52 }
 0x320   : > { %v2469_v58 = vsel %vm6038_vm5, %v5471_v51, %v2466_v37  ;;  %v2343_v47 = vsub.s32 0, %v6104_v11  ;;  %v2504_v61 = vor.u32 %v2503_v40, %v2502_v20  ;;  %v2507_v36 = vor.u32 %v2506_v32, %v2505_v33 }
 0x321   : > { %4622 = vcosq.f32 %v2469_v58  ;;  %v2510_v62 = vor.u32 %v2509_v0, %v2508_v10  ;;  %v2513_v50 = vor.u32 %v2512_v28, %v2511_v49  ;;  %v6121_v25 = vshll.u32 %v2493_v41, 8 }
 0x322   : > { %4624 = vsinq.f32 %v2469_v58  ;;  %v4438_v12 = vmin.u32 %v2343_v47, %v6104_v11  ;;  %vm3313_vm0 = vcmp.eq.s32.totalorder %v6100_v42, 2  ;;  %v2333_v13 = vadd.s32 %v6046_v56, %v6053_v21 }
 0x323   : > { %v2514_v15 = vshll.u32 %v4681_v5, %v2499_v45  ;;  %v2515_v18 = vshrl.u32 %v4682_v24, %v2500_v52  ;;  %vm2517_vm3 = vcmp.lt.s32.totalorder %v2498_v35, 1  ;;  %vm2477_vm4 = vcmp.eq.s32.totalorder %v6102_v55, 0 }
 0x324   : > { %v2345_v31 = vclz %v4438_v12  ;;  %vm3310_vm1 = vcmp.eq.s32.totalorder %v6100_v42, 0  ;;  %v2501_v19 = vshrl.u32 %v4677_v9, %v2500_v52  ;;  %vm2520_vm5 = vcmp.lt.s32.totalorder %v2498_v35, 4 }
 0x325   : > { %v2525_v57 = vsel %vm2517_vm3, %v2504_v61, %v2507_v36  ;;  %vm3309_vm6 = vcmp.lt.s32.totalorder %v6100_v42, 2  ;;  %v2516_v22 = vor.u32 %v2515_v18, %v2514_v15  ;;  %vm2519_vm7 = vcmp.lt.s32.totalorder %v2498_v35, 3 }
 0x326   : > { %v4439_v6 = vadd.s32 4294967294, %v2345_v31  ;;  %v2522_v56 = vsel %vm2520_vm5, %v2510_v62, 2102212464  ;;  %v2526_v21 = vsel %vm2520_vm5, %v2513_v50, 920167782  ;;  %vm2518_vm9 = vcmp.lt.s32.totalorder %v2498_v35, 2 }
 0x327   : > { %v2527_v5 = vsel %vm2519_vm7, %v2510_v62, %v2526_v21  ;;  %v2529_v24 = vsel %vm2517_vm3, %v2507_v36, %v2510_v62  ;;  %v2521_v59 = vsel %vm2517_vm3, %v2501_v19, %v2504_v61  ;;  %v2530_v9 = vsel %vm2520_vm5, %v2516_v22, 1326507024 }
 0x328   : > { %vm4440_vm8 = vcmp.lt.s32.totalorder %v4439_v6, 0  ;;  %v2528_v60 = vsel %vm2518_vm9, %v2525_v57, %v2527_v5  ;;  %v2523_v63 = vsel %vm2519_vm7, %v2507_v36, %v2522_v56  ;;  %v2531_v7 = vsel %vm2519_vm7, %v2513_v50, %v2530_v9 }
 0x329   : > { %v2348_v45 = vsel %vm4440_vm8, 0, %v4439_v6  ;;  %vm2480_vm11 = vcmp.eq.s32.totalorder %v6102_v55, 2  ;;  %v2532_v30 = vsel %vm2518_vm9, %v2529_v24, %v2531_v7  ;;  %v2524_v20 = vsel %vm2518_vm9, %v2521_v59, %v2523_v63 }
 0x32a   : > { %v2349_v26 = vsub.s32 32, %v2348_v45  ;;  %v2353_v43 = vsub.s32 4294967266, %v2348_v45  ;;  %v6139_v38 = vmul.u32.u64.low %v6121_v25, %v2528_v60  ;;  %v6140_v40 = vmul.u32.u64.high %v6121_v25, %v2528_v60, %v6139_v38 }
 0x32b   : > { %v4623_v52 = vpop.eup %4622  ;;  %v2350_v41 = vshll.u32 %v6104_v11, %v2348_v45  ;;  %v6146_v33 = vmul.u32.u64.low %v6121_v25, %v2532_v30  ;;  %v6147_v10 = vmul.u32.u64.high %v6121_v25, %v2532_v30, %v6146_v33  ;;  %vm2476_vm10 = vcmp.lt.s32.totalorder %v6102_v55, 2 }
 0x32c   : > { %v4625_v32 = vpop.eup %4624  ;;  %v2481_v37 = vxor.u32 2147483648, %v4623_v52  ;;  %v2351_v0 = vshrl.u32 %v2333_v13, %v2349_v26  ;;  %v2354_v58 = vadd.s32 127, %v2353_v43  ;;  %v2543_v35 = vadd.s32 1, %v6140_v40 }
 0x32d   : > { %v2478_v47 = vxor.u32 2147483648, %v4625_v32  ;;  %vm2473_vm13 = vweird.f32 %v5471_v51  ;;  %v2540_v18 = vmul.u32 %v6121_v25, %v2524_v20  ;;  %vm2542_vm15 = vc.u32 %v6147_v10, %v6139_v38 }
 0x32e   : > { %v2482_v49 = vsel %vm2480_vm11, %v2481_v37, %v4625_v32  ;;  %v3315_v28 = vsel %vm3313_vm0, %v2481_v37, %v4625_v32  ;;  %v2352_v12 = vor.u32 %v2351_v0, %v2350_v41  ;;  %v2355_v61 = vshll.u32 %v2354_v58, 23 }
 0x32f   : > { %v2479_v11 = vsel %vm2477_vm4, %v4623_v52, %v2478_v47  ;;  %v3312_v36 = vsel %vm3310_vm1, %v4623_v52, %v2478_v47  ;;  %v2544_v57 = vsel %vm2542_vm15, %v2543_v35, %v6140_v40  ;;  %v2363_v56 = vsub.s32 4, %v6090_v44 }
 0x330   : > { %v2483_v62 = vsel %vm2476_vm10, %v2479_v11, %v2482_v49  ;;  %v3316_v50 = vsel %vm3309_vm6, %v3312_v36, %v3315_v28  ;;  %v2356_v31 = vor.u32 4788187, %v2355_v61  ;;  %v2359_v19 = vcvt.s32.f32 %v2352_v12 }
 0x331   : > { %v2484_v13 = vsel %vm2473_vm13, nan, %v2483_v62  ;;  %v3317_v15 = vsel %vm2473_vm13, nan, %v3316_v50  ;;  %v2545_v22 = vadd.s32 %v2544_v57, %v2540_v18  ;;  %vm2279_vm12 = vcmp.lt.s32.totalorder %v5464_v46, 0 }
 0x332   : > { %2595 = vst [vmem:[#allocation2 + $0x30] sm:$0xf] %v2484_v13  ;;  %v3438_v55 = vrot.slane %v3317_v15, 4  ;;  %v2357_v6 = vand.u32 2147483647, %v2356_v31  ;;  %v2364_v45 = vsel %vm2279_vm12, %v2363_v56, %v6090_v44  ;;  %v2541_v58 = vadd.s32 %v6139_v38, %v6147_v10 }
 0x333   : > { %v2546_v21 = vadd.s32 536870912, %v2545_v22  ;;  %vm2278_vm0 = vcmp.le.f32.partialorder %v2277_v54, 0.7853982  ;;  %vm2369_vm9 = vweird.f32 %v5464_v46  ;;  %vm2487_vm11 = vcmp.lt.s32.totalorder %v5502_v48, 0 }
 0x334   : > { %v6167_v51 = vsel %vm3429_vm14, %v3432_v1, %v3438_v55  ;;  %v2360_v42 = vmul.f32 %v2359_v19, %v2357_v6  ;;  %v2366_v59 = vsel %vm2278_vm0, 0, %v2364_v45  ;;  %v3495_v19 = vld [vmem:[#allocation2 + $0x8] sm:$0xff]  ;;  %vm2486_vm10 = vcmp.le.f32.partialorder %v2485_v29, 0.7853982 }
 0x335   : > { %v6171_v5 = vshrl.u32 %v2546_v21, 30  ;;  %v2370_v26 = vadd.s32 3, %v2366_v59  ;;  %v3205_v63 = vand.u32 3, %v2366_v59  ;;  %v3511_v45 = vld [vmem:[#allocation2 + $0x88] sm:$0xff]  ;;  %v3506_v59 = vld [vmem:[#allocation2 + $0x60] sm:$0xff]  ;;  %vm3598_vm13 = vcmask 392192  }
 0x336   : > { %v2361_v25 = vxor.u32 2147483648, %v2360_v42 }
 0x337   : > { %v2548_v1 = vshll.u32 %v6171_v5, 30  ;;  %v2371_v52 = vand.u32 3, %v2370_v26  ;;  %vm3206_vm3 = vcmp.lt.s32.totalorder %v3205_v63, 2  ;;  %vm3207_vm4 = vcmp.eq.s32.totalorder %v3205_v63, 0 }
 0x338   : > { %v2362_v24 = vsel %vm2279_vm12, %v2361_v25, %v2360_v42  ;;  %vm3210_vm1 = vcmp.eq.s32.totalorder %v3205_v63, 2  ;;  %v2571_v6 = vsub.s32 4, %v6171_v5  ;;  %v3494_v42 = vld [vmem:[#allocation2] sm:$0xff]  ;;  %v3507_v25 = vld [vmem:[#allocation2 + $0x68] sm:$0xff] }
 0x339   : > { %v2365_v3 = vsel %vm2278_vm0, %v5464_v46, %v2362_v24  ;;  %v2549_v60 = vsub.s32 %v2545_v22, %v2548_v1  ;;  %vm2373_vm6 = vcmp.eq.s32.totalorder %v2371_v52, 0  ;;  %vm2376_vm7 = vcmp.eq.s32.totalorder %v2371_v52, 2  ;;  %v3498_v46 = vld [vmem:[#allocation2 + $0x20] sm:$0xff] }
 0x33a   : > { %4626 = vcosq.f32 %v2365_v3  ;;  %vm2372_vm8 = vcmp.lt.s32.totalorder %v2371_v52, 2  ;;  %v3518_v21 = vpack.c.bf16 %v3498_v46, %v3494_v42  ;;  %v2572_v24 = vsel %vm2487_vm11, %v2571_v6, %v6171_v5  ;;  %v3514_v63 = vld [vmem:[#allocation2 + $0xa0] sm:$0xff] }
 0x33b   : > { %4628 = vsinq.f32 %v2365_v3  ;;  %v2551_v9 = vsub.s32 0, %v2549_v60  ;;  %v3515_v3 = vld [vmem:[#allocation2 + $0xa8] sm:$0xff]  ;;  %v4594_v5 = vld [vmem:[%s6383_s8] sm:$0xff]  }
 0x33c   : > { %v3527_v26 = vpack.c.bf16 %v3515_v3, %v3511_v45 }
 0x33d   : > { %v4446_v43 = vmin.u32 %v2551_v9, %v2549_v60  ;;  %v2574_v9 = vsel %vm2486_vm10, 0, %v2572_v24 }
 0x33e   : > { %v2578_v29 = vadd.s32 3, %v2574_v9 }
 0x33f   : > { %v2553_v7 = vclz %v4446_v43  ;;  %v3510_v43 = vld [vmem:[#allocation2 + $0x80] sm:$0xff] }
 0x340   : > { %v2579_v52 = vand.u32 3, %v2578_v29 }
 0x341   : > { %v4447_v30 = vadd.s32 4294967294, %v2553_v7  ;;  %v3526_v7 = vpack.c.bf16 %v3514_v63, %v3510_v43 }
 0x342   : > { %vm2584_vm15 = vcmp.eq.s32.totalorder %v2579_v52, 2  ;;  %vm2581_vm0 = vcmp.eq.s32.totalorder %v2579_v52, 0 }
 0x343   : > { %vm4448_vm5 = vcmp.lt.s32.totalorder %v4447_v30, 0 }
 0x344   : > { %v4627_v40 = vpop.eup %4626  ;;  %v2556_v37 = vsel %vm4448_vm5, 0, %v4447_v30  ;;  %v3411_v30 = vand.u32 3, %v2574_v9  ;;  %vm2577_vm5 = vweird.f32 %v5502_v48 }
 0x345   : > { %v4629_v54 = vpop.eup %4628  ;;  %v2377_v32 = vxor.u32 2147483648, %v4627_v40  ;;  %v2557_v47 = vsub.s32 32, %v2556_v37  ;;  %v2561_v49 = vsub.s32 4294967266, %v2556_v37  ;;  %v2558_v35 = vshll.u32 %v2549_v60, %v2556_v37 }
 0x346   : > { %v2374_v44 = vxor.u32 2147483648, %v4629_v54  ;;  %v3522_v60 = vpack.c.bf16 %v3506_v59, %v6098_v17  ;;  %vm3416_vm12 = vcmp.eq.s32.totalorder %v3411_v30, 2 }
 0x347   : > { %v2378_v41 = vsel %vm2376_vm7, %v2377_v32, %v4629_v54  ;;  %v3212_v0 = vsel %vm3210_vm1, %v2377_v32, %v4629_v54  ;;  %v2559_v61 = vshrl.u32 %v2541_v58, %v2557_v47  ;;  %v2562_v62 = vadd.s32 127, %v2561_v49 }
 0x348   : > { %v2375_v20 = vsel %vm2373_vm6, %v4627_v40, %v2374_v44  ;;  %v3209_v33 = vsel %vm3207_vm4, %v4627_v40, %v2374_v44  ;;  %vm2580_vm4 = vcmp.lt.s32.totalorder %v2579_v52, 2  ;;  %vm3412_vm1 = vcmp.lt.s32.totalorder %v3411_v30, 2 }
 0x349   : > { %v2379_v28 = vsel %vm2372_vm8, %v2375_v20, %v2378_v41  ;;  %v3213_v12 = vsel %vm3206_vm3, %v3209_v33, %v3212_v0  ;;  %v2560_v31 = vor.u32 %v2559_v61, %v2558_v35  ;;  %v2563_v13 = vshll.u32 %v2562_v62, 23  ;;  %v4595_v41 = vld [vmem:[%s6383_s8 + $0x8] sm:$0xff]   ;;  %v4596_v61 = vld [vmem:[%s6383_s8 + $0x10] sm:$0xff]  }
 0x34a   : > { %v2380_v11 = vsel %vm2369_vm9, nan, %v2379_v28  ;;  %v3214_v36 = vsel %vm2369_vm9, nan, %v3213_v12  ;;  %vm3413_vm3 = vcmp.eq.s32.totalorder %v3411_v30, 0  ;;  %v3496_v35 = vld [vmem:[#allocation2 + $0x10] sm:$0xff] }
 0x34b   : > { %2594 = vst [vmem:[#allocation2 + $0x28] sm:$0xf] %v2380_v11  ;;  %v3436_v50 = vrot.slane %v3214_v36, 4  ;;  %v2564_v10 = vor.u32 4788187, %v2563_v13  ;;  %v2567_v18 = vcvt.s32.f32 %v2560_v31  ;;  %v3500_v11 = vld [vmem:[#allocation2 + $0x30] sm:$0xff] }
 0x34c   : > { %v3520_v62 = vpack.c.bf16 %v3500_v11, %v3496_v35  ;;  %v3508_v13 = vld [vmem:[#allocation2 + $0x70] sm:$0xff] }
 0x34d   : > { %v3437_v38 = vsel %vm3429_vm14, %v3431_v39, %v3436_v50  ;;  %v2565_v15 = vand.u32 2147483647, %v2564_v10  ;;  %v3509_v50 = vld [vmem:[#allocation2 + $0x78] sm:$0xff] }
 0x34e   : > { %v3523_v53 = vpack.c.bf16 %v3507_v25, %v3437_v38  ;;  %v4597_v38 = vld [vmem:[%s6383_s8 + $0x18] sm:$0xff]  }
 0x34f   : > { %v2568_v55 = vmul.f32 %v2567_v18, %v2565_v15  ;;  %v3512_v15 = vld [vmem:[#allocation2 + $0x90] sm:$0xff] }
 0x350   : > { %v3516_v18 = vld [vmem:[#allocation2 + $0xb0] sm:$0xff] }
 0x351   : > { %v2569_v56 = vxor.u32 2147483648, %v2568_v55  ;;  %v3528_v46 = vpack.c.bf16 %v3516_v18, %v3512_v15 }
 0x352   : > { %v3499_v57 = vld [vmem:[#allocation2 + $0x28] sm:$0xff] }
 0x353   : > { %v3519_v22 = vpack.c.bf16 %v3499_v57, %v3495_v19  ;;  %v2570_v39 = vsel %vm2487_vm11, %v2569_v56, %v2568_v55  ;;  %v6229_v57 = vpop.permute.xlu1 %3545 }
 0x354   : > { %v2573_v1 = vsel %vm2486_vm10, %v5502_v48, %v2570_v39 }
 0x355   : > { %3611 = vmatprep.subr.bf16.mxu0 %v3519_v22  ;;  %4630 = vcosq.f32 %v2573_v1 }
 0x356   : > { %3612 = vmatpush1.bf16.msra.mxu0 %v3518_v21  ;;  %4632 = vsinq.f32 %v2573_v1 }
 0x357   : > { %3613 = vmatprep.subr.bf16.mxu0 %v3523_v53  ;;  %v6237_v43 = vpop.permute.xlu1 %3555 }
 0x35a   : > { %3614 = vmatpush1.bf16.msra.mxu0 %v3522_v60 }
 0x35b   : > { %3615 = vmatprep.subr.bf16.mxu0 %v3527_v26 }
 0x35e   : > { %3616 = vmatpush1.bf16.msra.mxu0 %v3526_v7 }
 0x35f   : > { %v4631_v17 = vpop.eup %4630 }
 0x360   : > { %v4633_v40 = vpop.eup %4632  ;;  %v2585_v54 = vxor.u32 2147483648, %v4631_v17 }
 0x361   : > { %4485 = vmatmul.mubr.msk.bf16.vlgmr.msra.gmra.mrb[24].mxu0 %vm3598_vm13, %v4594_v5  ;;  %v2582_v32 = vxor.u32 2147483648, %v4633_v40 }
 0x362   : > { %3653 = vmatprep.mubr.bf16.mxu0 %v4674_v16  ;;  %v2586_v44 = vsel %vm2584_vm15, %v2585_v54, %v4633_v40  ;;  %v3418_v37 = vsel %vm3416_vm12, %v2585_v54, %v4633_v40 }
 0x363   : > { %v2583_v0 = vsel %vm2581_vm0, %v4631_v17, %v2582_v32  ;;  %v3415_v58 = vsel %vm3413_vm3, %v4631_v17, %v2582_v32 }
 0x364   : > { %v2587_v47 = vsel %vm2580_vm4, %v2583_v0, %v2586_v44  ;;  %v3419_v20 = vsel %vm3412_vm1, %v3415_v58, %v3418_v37 }
 0x365   : > { %v2588_v33 = vsel %vm2577_vm5, nan, %v2587_v47  ;;  %v3420_v49 = vsel %vm2577_vm5, nan, %v3419_v20  ;;  %v6245_v47 = vpop.permute.xlu1 %3565 }
 0x366   : > { %2596 = vst [vmem:[#allocation2 + $0x38] sm:$0xf] %v2588_v33  ;;  %v3440_v28 = vrot.slane %v3420_v49, 4 }
 0x368   : > { %v3441_v12 = vsel %vm3429_vm14, %v3433_v14, %v3440_v28  ;;  %v3517_v14 = vld [vmem:[#allocation2 + $0xb8] sm:$0xff] }
 0x369   : > { %4486 = vmatmul.mubr.msk.bf16.gmra.mrb[28].mxu0 %vm3598_vm13, %v4595_v41  ;;  %v3525_v31 = vpack.c.bf16 %v3509_v50, %v3441_v12  ;;  %v3529_v10 = vpack.c.bf16 %v3517_v14, %v3513_v8 }
 0x36a   : > { %3663 = vmatprep.mubr.bf16.mxu0 %v4674_v16 }
 0x36d   : > { %v3501_v48 = vld [vmem:[#allocation2 + $0x38] sm:$0xff] }
 0x36e   : > { %v3521_v36 = vpack.c.bf16 %v3501_v48, %v5992_v34  ;;  %v3524_v34 = vpack.c.bf16 %v3508_v13, %v6167_v51  ;;  %v6226_v51 = vpop.permute.xlu0 %3540  ;;  %v6253_v13 = vpop.permute.xlu1 %3575 }
 0x370   : > { %3684 = vmatprep.subr.bf16.mxu1 %v3521_v36 }
 0x371   : > { %4487 = vmatmul.mubr.msk.bf16.gmra.mrb[32].mxu0 %vm3598_vm13, %v4596_v61  ;;  %3685 = vmatpush1.bf16.msra.mxu1 %v3520_v62 }
 0x372   : > { %3673 = vmatprep.mubr.bf16.mxu0 %v4674_v16  ;;  %3686 = vmatprep.subr.bf16.mxu1 %v3525_v31  ;;  %v6234_v1 = vpop.permute.xlu0 %3550 }
 0x375   : > { %3687 = vmatpush1.bf16.msra.mxu1 %v3524_v34 }
 0x376   : > { %3688 = vmatprep.subr.bf16.mxu1 %v3529_v10  ;;  %v6242_v44 = vpop.permute.xlu0 %3560 }
 0x379   : > { %4488 = vmatmul.mubr.msk.bf16.gmra.mrb[36].mxu0 %vm3598_vm13, %v4597_v38  ;;  %3689 = vmatpush1.bf16.msra.mxu1 %v3528_v46 }
 0x37a   : > { %3925 = vmatprep.mubr.bf16.mxu0 %v4674_v16  ;;  %v6250_v62 = vpop.permute.xlu0 %3570 }
 0x37c   : > { %4489 = vmatmul.mubr.msk.bf16.vlgmr.msra.gmra.mrb[24].mxu1 %vm3598_vm13, %v4594_v5 }
 0x37d   : > { %3726 = vmatprep.mubr.bf16.mxu1 %v4674_v16 }
 0x384   : > { %4490 = vmatmul.mubr.msk.bf16.gmra.mrb[28].mxu1 %vm3598_vm13, %v4595_v41 }
 0x385   : > { %3736 = vmatprep.mubr.bf16.mxu1 %v4674_v16 }
 0x38c   : > { %4491 = vmatmul.mubr.msk.bf16.gmra.mrb[32].mxu1 %vm3598_vm13, %v4596_v61 }
 0x38d   : > { %3746 = vmatprep.mubr.bf16.mxu1 %v4674_v16 }
 0x394   : > { %4492 = vmatmul.mubr.msk.bf16.gmra.mrb[36].mxu1 %vm3598_vm13, %v4597_v38 }
 0x395   : > { %3998 = vmatprep.mubr.bf16.mxu1 %v4674_v16 }
 0x434   : > { %v3645_v55 = vpop.f32.mrb[24].mxu0 }
 0x435   : > { %v3646_v6 = vadd.f32 %v3645_v55, %v6226_v51  ;;  %v3647_v19 = vpop.f32.mrb[25].mxu0 }
 0x436   : > { %v3648_v22 = vadd.f32 %v3647_v19, %v6226_v51  ;;  %v3649_v42 = vpop.f32.mrb[26].mxu0 }
 0x437   : > { %v3650_v56 = vadd.f32 %v3649_v42, %v6229_v57  ;;  %v3651_v21 = vpop.f32.mrb[27].mxu0  ;;  %v3757_v53 = vmax.f32 %v3646_v6, 0.0 }
 0x438   : > { %v3652_v25 = vadd.f32 %v3651_v21, %v6229_v57  ;;  %v3758_v24 = vmax.f32 %v3648_v22, 0.0 }
 0x439   : > { %v3761_v39 = vmax.f32 %v3650_v56, 0.0 }
 0x43a   : > { %v3762_v45 = vmax.f32 %v3652_v25, 0.0 }
 0x43b   : > { %v3797_v3 = vpack.c.bf16 %v3761_v39, %v3757_v53 }
 0x43c   : > { %v3798_v59 = vpack.c.bf16 %v3762_v45, %v3758_v24  ;;  %v3655_v60 = vpop.f32.mrb[28].mxu0 }
 0x43d   : > { %v3656_v9 = vadd.f32 %v3655_v60, %v6234_v1  ;;  %v3657_v26 = vpop.f32.mrb[29].mxu0 }
 0x43e   : > { %v3658_v63 = vadd.f32 %v3657_v26, %v6234_v1  ;;  %v3659_v29 = vpop.f32.mrb[30].mxu0  ;;  %3893 = vmatprep.subr.bf16.mxu0 %v3798_v59  ;;  %v6265_v59 = vld [vmem:[%s6385_s10] sm:$0xff]  }
 0x43f   : > { %v3660_v7 = vadd.f32 %v3659_v29, %v6237_v43  ;;  %v3661_v5 = vpop.f32.mrb[31].mxu0  ;;  %3894 = vmatpush1.bf16.msra.mxu0 %v3797_v3  ;;  %v3765_v30 = vmax.f32 %v3656_v9, 0.0 }
 0x440   : > { %v3662_v52 = vadd.f32 %v3661_v5, %v6237_v43  ;;  %v3766_v40 = vmax.f32 %v3658_v63, 0.0 }
 0x441   : > { %v3769_v17 = vmax.f32 %v3660_v7, 0.0 }
 0x442   : > { %v3770_v54 = vmax.f32 %v3662_v52, 0.0 }
 0x443   : > { %v3801_v32 = vpack.c.bf16 %v3769_v17, %v3765_v30 }
 0x444   : > { %v3802_v37 = vpack.c.bf16 %v3770_v54, %v3766_v40  ;;  %v3665_v41 = vpop.f32.mrb[32].mxu0 }
 0x445   : > { %v3666_v0 = vadd.f32 %v3665_v41, %v6242_v44  ;;  %v3667_v58 = vpop.f32.mrb[33].mxu0 }
 0x446   : > { %v3668_v20 = vadd.f32 %v3667_v58, %v6242_v44  ;;  %v3669_v33 = vpop.f32.mrb[34].mxu0  ;;  %3895 = vmatprep.subr.bf16.mxu0 %v3802_v37 }
 0x447   : > { %v3670_v49 = vadd.f32 %v3669_v33, %v6245_v47  ;;  %v3671_v28 = vpop.f32.mrb[35].mxu0  ;;  %3896 = vmatpush1.bf16.msra.mxu0 %v3801_v32  ;;  %v3773_v61 = vmax.f32 %v3666_v0, 0.0  ;;  %v4599_v32 = vld [vmem:[%s6385_s10 + $0x8] sm:$0xff]  }
 0x448   : > { %v3672_v12 = vadd.f32 %v3671_v28, %v6245_v47  ;;  %v3774_v48 = vmax.f32 %v3668_v20, 0.0 }
 0x449   : > { %v3777_v11 = vmax.f32 %v3670_v49, 0.0 }
 0x44a   : > { %v3778_v36 = vmax.f32 %v3672_v12, 0.0 }
 0x44b   : > { %v3805_v35 = vpack.c.bf16 %v3777_v11, %v3773_v61 }
 0x44c   : > { %v3806_v50 = vpack.c.bf16 %v3778_v36, %v3774_v48  ;;  %v3675_v31 = vpop.f32.mrb[36].mxu0  ;;  %v4600_v36 = vld [vmem:[%s6385_s10 + $0x10] sm:$0xff]  }
 0x44d   : > { %v3676_v8 = vadd.f32 %v3675_v31, %v6250_v62  ;;  %v3677_v14 = vpop.f32.mrb[37].mxu0 }
 0x44e   : > { %v3678_v38 = vadd.f32 %v3677_v14, %v6250_v62  ;;  %v3679_v34 = vpop.f32.mrb[38].mxu0  ;;  %3897 = vmatprep.subr.bf16.mxu0 %v3806_v50 }
 0x44f   : > { %v3680_v10 = vadd.f32 %v3679_v34, %v6253_v13  ;;  %v3681_v15 = vpop.f32.mrb[39].mxu0  ;;  %3898 = vmatpush1.bf16.msra.mxu0 %v3805_v35  ;;  %v3781_v46 = vmax.f32 %v3676_v8, 0.0  ;;  %v3718_v6 = vpop.f32.mrb[24].mxu1 }
 0x450   : > { %v3682_v18 = vadd.f32 %v3681_v15, %v6253_v13  ;;  %v3782_v19 = vmax.f32 %v3678_v38, 0.0  ;;  %v3719_v42 = vadd.f32 %v3718_v6, %v6226_v51  ;;  %v3720_v56 = vpop.f32.mrb[25].mxu1  ;;  %v4601_v6 = vld [vmem:[%s6385_s10 + $0x18] sm:$0xff]  }
 0x451   : > { %v3785_v55 = vmax.f32 %v3680_v10, 0.0  ;;  %v3721_v25 = vadd.f32 %v3720_v56, %v6226_v51  ;;  %v3722_v53 = vpop.f32.mrb[26].mxu1 }
 0x452   : > { %v3786_v22 = vmax.f32 %v3682_v18, 0.0  ;;  %v3723_v24 = vadd.f32 %v3722_v53, %v6229_v57  ;;  %v3724_v45 = vpop.f32.mrb[27].mxu1  ;;  %v3759_v60 = vmax.f32 %v3719_v42, 0.0 }
 0x453   : > { %v3809_v21 = vpack.c.bf16 %v3785_v55, %v3781_v46  ;;  %v3725_v3 = vadd.f32 %v3724_v45, %v6229_v57  ;;  %v3760_v26 = vmax.f32 %v3721_v25, 0.0 }
 0x454   : > { %v3810_v39 = vpack.c.bf16 %v3786_v22, %v3782_v19  ;;  %v3763_v9 = vmax.f32 %v3723_v24, 0.0  ;;  %v6309_v24 = vpop.permute.xlu1 %3828 }
 0x455   : > { %v3764_v63 = vmax.f32 %v3725_v3, 0.0 }
 0x456   : > { %3899 = vmatprep.subr.bf16.mxu0 %v3810_v39  ;;  %v3799_v29 = vpack.c.bf16 %v3763_v9, %v3759_v60 }
 0x457   : > { %3900 = vmatpush1.bf16.msra.mxu0 %v3809_v21  ;;  %v3800_v51 = vpack.c.bf16 %v3764_v63, %v3760_v26  ;;  %v3728_v7 = vpop.f32.mrb[28].mxu1 }
 0x458   : > { %v3729_v5 = vadd.f32 %v3728_v7, %v6234_v1  ;;  %v3730_v57 = vpop.f32.mrb[29].mxu1 }
 0x459   : > { %v3731_v52 = vadd.f32 %v3730_v57, %v6234_v1  ;;  %v3732_v30 = vpop.f32.mrb[30].mxu1  ;;  %3966 = vmatprep.subr.bf16.mxu1 %v3800_v51 }
 0x45a   : > { %4497 = vmatmul.mubr.msk.bf16.vlgmr.msra.gmra.mrb[40].mxu0 %vm1484_vm2, %v6265_v59  ;;  %v3733_v17 = vadd.f32 %v3732_v30, %v6237_v43  ;;  %v3734_v40 = vpop.f32.mrb[31].mxu1  ;;  %3967 = vmatpush1.bf16.msra.mxu1 %v3799_v29  ;;  %v3767_v37 = vmax.f32 %v3729_v5, 0.0 }
 0x45b   : > { %3935 = vmatprep.mubr.bf16.mxu0 %v4674_v16  ;;  %v3735_v54 = vadd.f32 %v3734_v40, %v6237_v43  ;;  %v3768_v0 = vmax.f32 %v3731_v52, 0.0 }
 0x45c   : > { %v3771_v41 = vmax.f32 %v3733_v17, 0.0  ;;  %v6317_v17 = vpop.permute.xlu1 %3838 }
 0x45d   : > { %v3772_v58 = vmax.f32 %v3735_v54, 0.0 }
 0x45e   : > { %v3803_v20 = vpack.c.bf16 %v3771_v41, %v3767_v37 }
 0x45f   : > { %v3804_v33 = vpack.c.bf16 %v3772_v58, %v3768_v0  ;;  %v3738_v49 = vpop.f32.mrb[32].mxu1 }
 0x460   : > { %v3739_v1 = vadd.f32 %v3738_v49, %v6242_v44  ;;  %v3740_v28 = vpop.f32.mrb[33].mxu1 }
 0x461   : > { %v3741_v43 = vadd.f32 %v3740_v28, %v6242_v44  ;;  %v3742_v12 = vpop.f32.mrb[34].mxu1  ;;  %3968 = vmatprep.subr.bf16.mxu1 %v3804_v33 }
 0x462   : > { %4498 = vmatmul.mubr.msk.bf16.gmra.mrb[44].mxu0 %vm1484_vm2, %v4599_v32  ;;  %v3743_v61 = vadd.f32 %v3742_v12, %v6245_v47  ;;  %v3744_v11 = vpop.f32.mrb[35].mxu1  ;;  %3969 = vmatpush1.bf16.msra.mxu1 %v3803_v20  ;;  %v3775_v35 = vmax.f32 %v3739_v1, 0.0 }
 0x463   : > { %3945 = vmatprep.mubr.bf16.mxu0 %v4674_v16  ;;  %v3745_v48 = vadd.f32 %v3744_v11, %v6245_v47  ;;  %v3776_v31 = vmax.f32 %v3741_v43, 0.0  ;;  %v6325_v11 = vpop.permute.xlu1 %3848 }
 0x464   : > { %v3779_v50 = vmax.f32 %v3743_v61, 0.0 }
 0x465   : > { %v3780_v8 = vmax.f32 %v3745_v48, 0.0 }
 0x466   : > { %v3807_v14 = vpack.c.bf16 %v3779_v50, %v3775_v35 }
 0x467   : > { %v3808_v38 = vpack.c.bf16 %v3780_v8, %v3776_v31  ;;  %v3748_v34 = vpop.f32.mrb[36].mxu1 }
 0x468   : > { %v3749_v44 = vadd.f32 %v3748_v34, %v6250_v62  ;;  %v3750_v10 = vpop.f32.mrb[37].mxu1 }
 0x469   : > { %v3751_v47 = vadd.f32 %v3750_v10, %v6250_v62  ;;  %v3752_v15 = vpop.f32.mrb[38].mxu1  ;;  %3970 = vmatprep.subr.bf16.mxu1 %v3808_v38  ;;  %v6306_v62 = vpop.permute.xlu0 %3823 }
 0x46a   : > { %4499 = vmatmul.mubr.msk.bf16.gmra.mrb[48].mxu0 %vm1484_vm2, %v4600_v36  ;;  %v3753_v18 = vadd.f32 %v3752_v15, %v6253_v13  ;;  %v3754_v46 = vpop.f32.mrb[39].mxu1  ;;  %3971 = vmatpush1.bf16.msra.mxu1 %v3807_v14  ;;  %v3783_v19 = vmax.f32 %v3749_v44, 0.0 }
 0x46b   : > { %3955 = vmatprep.mubr.bf16.mxu0 %v4674_v16  ;;  %v3755_v55 = vadd.f32 %v3754_v46, %v6253_v13  ;;  %v3784_v42 = vmax.f32 %v3751_v47, 0.0 }
 0x46c   : > { %v3787_v22 = vmax.f32 %v3753_v18, 0.0 }
 0x46d   : > { %v3788_v56 = vmax.f32 %v3755_v55, 0.0  ;;  %v6314_v7 = vpop.permute.xlu0 %3833  ;;  %v6333_v55 = vpop.permute.xlu1 %3858 }
 0x46e   : > { %v3811_v21 = vpack.c.bf16 %v3787_v22, %v3783_v19 }
 0x46f   : > { %v3812_v25 = vpack.c.bf16 %v3788_v56, %v3784_v42 }
 0x471   : > { %3972 = vmatprep.subr.bf16.mxu1 %v3812_v25  ;;  %v6322_v1 = vpop.permute.xlu0 %3843 }
 0x472   : > { %4500 = vmatmul.mubr.msk.bf16.gmra.mrb[52].mxu0 %vm1484_vm2, %v4601_v6  ;;  %3973 = vmatpush1.bf16.msra.mxu1 %v3811_v21 }
 0x473   : > { %4129 = vmatprep.mubr.bf16.mxu0 %v4674_v16 }
 0x475   : > { %4501 = vmatmul.mubr.msk.bf16.vlgmr.msra.gmra.mrb[40].mxu1 %vm1484_vm2, %v6265_v59  ;;  %v6330_v10 = vpop.permute.xlu0 %3853 }
 0x476   : > { %4008 = vmatprep.mubr.bf16.mxu1 %v4674_v16 }
 0x47d   : > { %4502 = vmatmul.mubr.msk.bf16.gmra.mrb[44].mxu1 %vm1484_vm2, %v4599_v32 }
 0x47e   : > { %4018 = vmatprep.mubr.bf16.mxu1 %v4674_v16 }
 0x485   : > { %4503 = vmatmul.mubr.msk.bf16.gmra.mrb[48].mxu1 %vm1484_vm2, %v4600_v36 }
 0x486   : > { %4028 = vmatprep.mubr.bf16.mxu1 %v4674_v16 }
 0x48d   : > { %4504 = vmatmul.mubr.msk.bf16.gmra.mrb[52].mxu1 %vm1484_vm2, %v4601_v6 }
 0x48e   : > { %4170 = vmatprep.mubr.bf16.mxu1 %v4674_v16 }
 0x52d   : > { %v3927_v13 = vpop.f32.mrb[40].mxu0 }
 0x52e   : > { %v3928_v53 = vadd.f32 %v3927_v13, %v6306_v62  ;;  %v3929_v39 = vpop.f32.mrb[41].mxu0 }
 0x52f   : > { %v3930_v45 = vadd.f32 %v3929_v39, %v6306_v62  ;;  %v3931_v3 = vpop.f32.mrb[42].mxu0 }
 0x530   : > { %v3932_v59 = vadd.f32 %v3931_v3, %v6309_v24  ;;  %v3933_v60 = vpop.f32.mrb[43].mxu0  ;;  %v4039_v26 = vmax.f32 %v3928_v53, 0.0 }
 0x531   : > { %v3934_v9 = vadd.f32 %v3933_v60, %v6309_v24  ;;  %v4040_v29 = vmax.f32 %v3930_v45, 0.0 }
 0x532   : > { %v4043_v63 = vmax.f32 %v3932_v59, 0.0 }
 0x533   : > { %v4044_v16 = vmax.f32 %v3934_v9, 0.0 }
 0x534   : > { %v4072_v51 = vpack.c.bf16 %v4043_v63, %v4039_v26 }
 0x535   : > { %v4073_v5 = vpack.c.bf16 %v4044_v16, %v4040_v29  ;;  %v3937_v57 = vpop.f32.mrb[44].mxu0 }
 0x536   : > { %v3938_v52 = vadd.f32 %v3937_v57, %v6314_v7  ;;  %v3939_v30 = vpop.f32.mrb[45].mxu0  ;;  %v4071_v57 = vld [vmem:[%s6387_s12] sm:$0x3] }
 0x537   : > { %v3940_v40 = vadd.f32 %v3939_v30, %v6314_v7  ;;  %v3941_v54 = vpop.f32.mrb[46].mxu0  ;;  %4097 = vmatprep.subr.bf16.mxu0 %v4073_v5 }
 0x538   : > { %v3942_v32 = vadd.f32 %v3941_v54, %v6317_v17  ;;  %v3943_v37 = vpop.f32.mrb[47].mxu0  ;;  %4098 = vmatpush1.bf16.msra.mxu0 %v4072_v51  ;;  %v4047_v0 = vmax.f32 %v3938_v52, 0.0 }
 0x539   : > { %v3944_v41 = vadd.f32 %v3943_v37, %v6317_v17  ;;  %v4048_v20 = vmax.f32 %v3940_v40, 0.0 }
 0x53a   : > { %v4051_v58 = vmax.f32 %v3942_v32, 0.0 }
 0x53b   : > { %v4052_v33 = vmax.f32 %v3944_v41, 0.0 }
 0x53c   : > { %v4076_v49 = vpack.c.bf16 %v4051_v58, %v4047_v0 }
 0x53d   : > { %v4077_v28 = vpack.c.bf16 %v4052_v33, %v4048_v20  ;;  %v3947_v43 = vpop.f32.mrb[48].mxu0 }
 0x53e   : > { %v3948_v12 = vadd.f32 %v3947_v43, %v6322_v1  ;;  %v3949_v61 = vpop.f32.mrb[49].mxu0 }
 0x53f   : > { %v3950_v48 = vadd.f32 %v3949_v61, %v6322_v1  ;;  %v3951_v36 = vpop.f32.mrb[50].mxu0  ;;  %4099 = vmatprep.subr.bf16.mxu0 %v4077_v28 }
 0x540   : > { %v3952_v35 = vadd.f32 %v3951_v36, %v6325_v11  ;;  %v3953_v50 = vpop.f32.mrb[51].mxu0  ;;  %4100 = vmatpush1.bf16.msra.mxu0 %v4076_v49  ;;  %v4055_v8 = vmax.f32 %v3948_v12, 0.0 }
 0x541   : > { %v3954_v31 = vadd.f32 %v3953_v50, %v6325_v11  ;;  %v4056_v38 = vmax.f32 %v3950_v48, 0.0 }
 0x542   : > { %v4059_v14 = vmax.f32 %v3952_v35, 0.0 }
 0x543   : > { %v4060_v34 = vmax.f32 %v3954_v31, 0.0 }
 0x544   : > { %v4080_v44 = vpack.c.bf16 %v4059_v14, %v4055_v8 }
 0x545   : > { %v4081_v47 = vpack.c.bf16 %v4060_v34, %v4056_v38  ;;  %v3957_v15 = vpop.f32.mrb[52].mxu0 }
 0x546   : > { %v3958_v18 = vadd.f32 %v3957_v15, %v6330_v10  ;;  %v3959_v46 = vpop.f32.mrb[53].mxu0 }
 0x547   : > { %v3960_v6 = vadd.f32 %v3959_v46, %v6330_v10  ;;  %v3961_v19 = vpop.f32.mrb[54].mxu0  ;;  %4101 = vmatprep.subr.bf16.mxu0 %v4081_v47 }
 0x548   : > { %v3962_v22 = vadd.f32 %v3961_v19, %v6333_v55  ;;  %v3963_v42 = vpop.f32.mrb[55].mxu0  ;;  %4102 = vmatpush1.bf16.msra.mxu0 %v4080_v44  ;;  %v4063_v21 = vmax.f32 %v3958_v18, 0.0  ;;  %v4000_v13 = vpop.f32.mrb[40].mxu1 }
 0x549   : > { %v3964_v56 = vadd.f32 %v3963_v42, %v6333_v55  ;;  %v4064_v53 = vmax.f32 %v3960_v6, 0.0  ;;  %v4001_v45 = vadd.f32 %v4000_v13, %v6306_v62  ;;  %v4002_v3 = vpop.f32.mrb[41].mxu1 }
 0x54a   : > { %v4067_v25 = vmax.f32 %v3962_v22, 0.0  ;;  %v4003_v60 = vadd.f32 %v4002_v3, %v6306_v62  ;;  %v4004_v9 = vpop.f32.mrb[42].mxu1 }
 0x54b   : > { %v4068_v39 = vmax.f32 %v3964_v56, 0.0  ;;  %v4005_v63 = vadd.f32 %v4004_v9, %v6309_v24  ;;  %v4006_v29 = vpop.f32.mrb[43].mxu1  ;;  %v4041_v51 = vmax.f32 %v4001_v45, 0.0  ;;  %v4092_v45 = vpop.permute.xlu0 %4091 }
 0x54c   : > { %v4084_v59 = vpack.c.bf16 %v4067_v25, %v4063_v21  ;;  %v4007_v16 = vadd.f32 %v4006_v29, %v6309_v24  ;;  %v4042_v52 = vmax.f32 %v4003_v60, 0.0 }
 0x54d   : > { %v4085_v26 = vpack.c.bf16 %v4068_v39, %v4064_v53  ;;  %v4045_v5 = vmax.f32 %v4005_v63, 0.0 }
 0x54e   : > { %v4046_v30 = vmax.f32 %v4007_v16, 0.0 }
 0x54f   : > { %4103 = vmatprep.subr.bf16.mxu0 %v4085_v26  ;;  %v4074_v40 = vpack.c.bf16 %v4045_v5, %v4041_v51 }
 0x550   : > { %4104 = vmatpush1.bf16.msra.mxu0 %v4084_v59  ;;  %v4075_v54 = vpack.c.bf16 %v4046_v30, %v4042_v52  ;;  %v4010_v62 = vpop.f32.mrb[44].mxu1 }
 0x551   : > { %v4011_v32 = vadd.f32 %v4010_v62, %v6314_v7  ;;  %v4012_v37 = vpop.f32.mrb[45].mxu1 }
 0x552   : > { %v4013_v24 = vadd.f32 %v4012_v37, %v6314_v7  ;;  %v4014_v41 = vpop.f32.mrb[46].mxu1  ;;  %4138 = vmatprep.subr.bf16.mxu1 %v4075_v54 }
 0x553   : > { %4505 = vmatmul.mubr.msk.bf16.vlgmr.msra.gmra.mrb[56].mxu0 %vm1484_vm2, %v4071_v57  ;;  %v4015_v0 = vadd.f32 %v4014_v41, %v6317_v17  ;;  %v4016_v58 = vpop.f32.mrb[47].mxu1  ;;  %4139 = vmatpush1.bf16.msra.mxu1 %v4074_v40  ;;  %v4049_v33 = vmax.f32 %v4011_v32, 0.0 }
 0x554   : > { %v4017_v20 = vadd.f32 %v4016_v58, %v6317_v17  ;;  %v4050_v28 = vmax.f32 %v4013_v24, 0.0 }
 0x555   : > { %v4053_v49 = vmax.f32 %v4015_v0, 0.0 }
 0x556   : > { %v4054_v43 = vmax.f32 %v4017_v20, 0.0 }
 0x557   : > { %v4078_v12 = vpack.c.bf16 %v4053_v49, %v4049_v33 }
 0x558   : > { %v4079_v61 = vpack.c.bf16 %v4054_v43, %v4050_v28  ;;  %v4020_v48 = vpop.f32.mrb[48].mxu1 }
 0x559   : > { %v4021_v36 = vadd.f32 %v4020_v48, %v6322_v1  ;;  %v4022_v35 = vpop.f32.mrb[49].mxu1 }
 0x55a   : > { %v4023_v7 = vadd.f32 %v4022_v35, %v6322_v1  ;;  %v4024_v50 = vpop.f32.mrb[50].mxu1  ;;  %4140 = vmatprep.subr.bf16.mxu1 %v4079_v61 }
 0x55b   : > { %v4025_v31 = vadd.f32 %v4024_v50, %v6325_v11  ;;  %v4026_v8 = vpop.f32.mrb[51].mxu1  ;;  %4141 = vmatpush1.bf16.msra.mxu1 %v4078_v12  ;;  %v4057_v14 = vmax.f32 %v4021_v36, 0.0 }
 0x55c   : > { %v4027_v17 = vadd.f32 %v4026_v8, %v6325_v11  ;;  %v4058_v34 = vmax.f32 %v4023_v7, 0.0 }
 0x55d   : > { %v4061_v38 = vmax.f32 %v4025_v31, 0.0 }
 0x55e   : > { %v4062_v44 = vmax.f32 %v4027_v17, 0.0 }
 0x55f   : > { %v4082_v47 = vpack.c.bf16 %v4061_v38, %v4057_v14 }
 0x560   : > { %v4083_v15 = vpack.c.bf16 %v4062_v44, %v4058_v34  ;;  %v4030_v18 = vpop.f32.mrb[52].mxu1 }
 0x561   : > { %v4031_v46 = vadd.f32 %v4030_v18, %v6330_v10  ;;  %v4032_v6 = vpop.f32.mrb[53].mxu1 }
 0x562   : > { %v4033_v1 = vadd.f32 %v4032_v6, %v6330_v10  ;;  %v4034_v19 = vpop.f32.mrb[54].mxu1  ;;  %4142 = vmatprep.subr.bf16.mxu1 %v4083_v15 }
 0x563   : > { %v4035_v22 = vadd.f32 %v4034_v19, %v6333_v55  ;;  %v4036_v42 = vpop.f32.mrb[55].mxu1  ;;  %4143 = vmatpush1.bf16.msra.mxu1 %v4082_v47  ;;  %v4065_v56 = vmax.f32 %v4031_v46, 0.0 }
 0x564   : > { %v4037_v11 = vadd.f32 %v4036_v42, %v6333_v55  ;;  %v4066_v25 = vmax.f32 %v4033_v1, 0.0 }
 0x565   : > { %v4069_v21 = vmax.f32 %v4035_v22, 0.0 }
 0x566   : > { %v4070_v13 = vmax.f32 %v4037_v11, 0.0 }
 0x567   : > { %v4086_v53 = vpack.c.bf16 %v4069_v21, %v4065_v56 }
 0x568   : > { %v4087_v39 = vpack.c.bf16 %v4070_v13, %v4066_v25 }
 0x56a   : > { %4144 = vmatprep.subr.bf16.mxu1 %v4087_v39 }
 0x56b   : > { %4145 = vmatpush1.bf16.msra.mxu1 %v4086_v53 }
 0x56e   : > { %4506 = vmatmul.mubr.msk.bf16.vlgmr.msra.gmra.mrb[56].mxu1 %vm1484_vm2, %v4071_v57 }
 0x626   : > { %v4131_v10 = vpop.f32.mrb[56].mxu0 }
 0x627   : > { %v4132_v3 = vadd.f32 %v4131_v10, %v4092_v45  ;;  %v4133_v59 = vpop.f32.mrb[57].mxu0 }
 0x628   : > { %v4134_v60 = vadd.f32 %v4133_v59, %v4092_v45  ;;  %v4135_v9 = vpop.f32.mrb[58].mxu0 }
 0x629   : > { %v4507_v26 = vmul.f32 -1.442695, %v4132_v3  ;;  %v4136_v63 = vpop.f32.mrb[59].mxu0 }
 0x62a   : > { %v4508_v29 = vmul.f32 -1.442695, %v4134_v60 }
 0x62b   : > { %4634 = vpow2.f32 %v4507_v26 }
 0x62c   : > { %4636 = vpow2.f32 %v4508_v29 }
 0x635   : > { %v4635_v55 = vpop.eup %4634 }
 0x636   : > { %v4637_v16 = vpop.eup %4636  ;;  %v4191_v51 = vadd.f32 1.0, %v4635_v55 }
 0x637   : > { %v4192_v5 = vadd.f32 1.0, %v4637_v16 }
 0x638   : > { %4638 = vrcp.f32 %v4191_v51 }
 0x639   : > { %4640 = vrcp.f32 %v4192_v5 }
 0x641   : > { %v4172_v40 = vpop.f32.mrb[56].mxu1 }
 0x642   : > { %v4639_v52 = vpop.eup %4638  ;;  %v4173_v62 = vadd.f32 %v4172_v40, %v4092_v45  ;;  %v4174_v32 = vpop.f32.mrb[57].mxu1 }
 0x643   : > { %v4641_v57 = vpop.eup %4640  ;;  %v4203_v30 = vmul.f32 %v4639_v52, %v5422_v2  ;;  %v4175_v24 = vadd.f32 %v4174_v32, %v4092_v45  ;;  %v4176_v41 = vpop.f32.mrb[58].mxu1 }
 0x644   : > { %v4204_v54 = vmul.f32 %v4641_v57, %v5425_v4  ;;  %v4509_v0 = vmul.f32 -1.442695, %v4173_v62  ;;  %v4177_v58 = vpop.f32.mrb[59].mxu1 }
 0x645   : > { %v4510_v20 = vmul.f32 -1.442695, %v4175_v24 }
 0x646   : > { %v4211_v37 = vcombine.low %v4203_v30, %v4204_v54  ;;  %4642 = vpow2.f32 %v4509_v0 }
 0x647   : > { %4644 = vpow2.f32 %v4510_v20 }
 0x648   : > { %4215 = vst [vmem:[%s5479_s24] sm:$0x77] %v4211_v37 }
 0x650   : > { %v4643_v33 = vpop.eup %4642 }
 0x651   : > { %v4645_v49 = vpop.eup %4644  ;;  %v4193_v28 = vadd.f32 1.0, %v4643_v33 }
 0x652   : > { %v4194_v43 = vadd.f32 1.0, %v4645_v49 }
 0x653   : > { %4646 = vrcp.f32 %v4193_v28 }
 0x654   : > { %4648 = vrcp.f32 %v4194_v43 }
 0x65d   : > { %v4647_v2 = vpop.eup %4646 }
 0x65e   : > { %v4649_v4 = vpop.eup %4648  ;;  %v4205_v12 = vmul.f32 %v4647_v2, %v5435_v23 }
 0x65f   : > { %v4206_v61 = vmul.f32 %v4649_v4, %v5440_v27 }
 0x661   : > { %v4212_v48 = vcombine.low %v4205_v12, %v4206_v61 }
 0x663   : > { %4216 = vst [vmem:[%s5479_s24 + $0x8] sm:$0x77] %v4212_v48 }
 0x664 PF: > { %p22_p9 = scmp.ge.s32.totalorder %s4780_s22, 4   ;;  %s6406_s18 = smov %s4668_s19 }
 0x665   : > { %s6407_s19 = smov %s4789_s25  ;;  %s6408_s20 = smov %s4780_s22 }
 0x666   :  { %24 = sbr.rel (!%p22_p9) target bundleno = 2 (0x2), region = 232 }

</bundles_post_ra>
